<compile_context>
chip_gen: v5e
topology: v5e:2x2
jax: 0.10.0
libtpu: 0.0.40
codegen_flags: <defaults>
</compile_context>

<pallas_src>
import functools

import jax
import jax.numpy as jnp
from jax.experimental import pallas as pl
from jax.experimental.pallas import tpu as pltpu

EPS = 1e-5
LANE = 128
F32 = jnp.float32
BF16 = jnp.bfloat16

MM_VMEM_LIMIT = 48 * 1024 * 1024
DECONV_VMEM_LIMIT = 48 * 1024 * 1024
DECONV_VMEM_BUDGET = 36 * 1024 * 1024      # conservative: fits v7x (64 MiB physical)


def _rup(x, m):
    return (x + m - 1) // m * m


# ---------------------------------------------------------------------------
# Kernel A/C: [optional BN-apply + ReLU on input] -> matmul -> partial BN sums
#   x tile: (TM, K) f32   w: (K, N) bf16 resident   scale/shift: (1, K) resident
#   outputs: y tile (TM, N) f32, per-tile sum / sumsq (1, 1, N)
# ---------------------------------------------------------------------------
def _mm_stats_kernel(x_ref, w_ref, sc_ref, sh_ref,
                     y_ref, sum_ref, sq_ref, *, act, mask, rows_last):
    x = x_ref[...]
    if act:                                   # fused BN-apply + ReLU of prev stage
        x = jnp.maximum(x * sc_ref[...] + sh_ref[...], 0.0)
    y = jnp.dot(x.astype(BF16), w_ref[...], preferred_element_type=F32)
    y_ref[...] = y
    n_out = y.shape[1]
    sum_ref[...] = jnp.sum(y, axis=0, keepdims=True).reshape(1, 1, n_out)
    sq_ref[...] = jnp.sum(y * y, axis=0, keepdims=True).reshape(1, 1, n_out)
    if mask:
        # Only the final grid step can hold padded rows; redo just its stats
        # with those rows zeroed (the padded y rows are discarded by the
        # caller, so only the BN sums need masking).
        @pl.when(pl.program_id(0) == pl.num_programs(0) - 1)
        def _():
            row = jax.lax.broadcasted_iota(jnp.int32, y.shape, 0)
            ym = jnp.where(row < rows_last, y, 0.0)
            sum_ref[...] = jnp.sum(ym, axis=0, keepdims=True).reshape(1, 1, n_out)
            sq_ref[...] = jnp.sum(ym * ym, axis=0, keepdims=True).reshape(1, 1, n_out)


def matmul_bn_stats(x2d, w_bf16, scale, shift, *, act, m_true, tm):
    m_pad, k = x2d.shape
    n_out = w_bf16.shape[1]
    nt = m_pad // tm
    # Stage 1 (act=False): padded rows of x are exact zeros -> stats already exact.
    mask = act and (m_pad != m_true)
    kern = functools.partial(_mm_stats_kernel, act=act, mask=mask,
                             rows_last=m_true - (nt - 1) * tm)
    y, s_sum, s_sq = pl.pallas_call(
        kern,
        grid=(nt,),
        in_specs=[
            pl.BlockSpec((tm, k), lambda i: (i, 0)),
            pl.BlockSpec((k, n_out), lambda i: (0, 0)),      # resident bf16 weights
            pl.BlockSpec((1, k), lambda i: (0, 0)),           # resident scale
            pl.BlockSpec((1, k), lambda i: (0, 0)),           # resident shift
        ],
        out_specs=[
            pl.BlockSpec((tm, n_out), lambda i: (i, 0)),
            pl.BlockSpec((1, 1, n_out), lambda i: (i, 0, 0)),
            pl.BlockSpec((1, 1, n_out), lambda i: (i, 0, 0)),
        ],
        out_shape=[
            jax.ShapeDtypeStruct((m_pad, n_out), F32),
            jax.ShapeDtypeStruct((nt, 1, n_out), F32),
            jax.ShapeDtypeStruct((nt, 1, n_out), F32),
        ],
        compiler_params=pltpu.CompilerParams(
            dimension_semantics=("parallel",),
            vmem_limit_bytes=MM_VMEM_LIMIT),
    )(x2d, w_bf16, scale, shift)
    return y, s_sum.sum(axis=(0, 1)), s_sq.sum(axis=(0, 1))


# ---------------------------------------------------------------------------
# Kernel B: BN1 apply + ReLU + ConvTranspose2d(3,s=2,p=1,op=1) as 4 sub-pixel
#           phases (tap-major matmuls) + partial BN2 sums.
#           Row-tiled over H with a 1-row halo; grid = (N, H/th).
# ---------------------------------------------------------------------------
def _deconv_kernel(y_ref, yh_ref, sc_ref, sh_ref,
                   wh_ref, wr_ref, wd_ref, wrd_ref,
                   o_ref, sum_ref, sq_ref, *, th, w, c):
    t = pl.program_id(1)
    last_t = pl.num_programs(1) - 1
    sc = sc_ref[...]                               # (1, c)
    sh = sh_ref[...]

    y = y_ref[0]                                   # (th, w, c) raw conv1 rows
    yh = yh_ref[0]                                 # (1,  w, c) raw halo row

    hh = jnp.maximum(y * sc + sh, 0.0)             # BN1 + ReLU
    halo = jnp.maximum(yh * sc + sh, 0.0)
    halo = halo * (t < last_t).astype(F32)         # rows below the image are zero

    m = th * w
    h2 = hh.reshape(m, c)                                              # h1[r, col]
    if th > 1:
        hd = jnp.concatenate([hh[1:], halo], axis=0)                   # h1[r+1, col]
    else:
        hd = halo
    hd2 = hd.reshape(m, c)

    # Column shift (col+1): sublane roll of the row-flattened block by -1
    # (shift = m-1 is the non-negative equivalent).  The circular wrap at
    # col == w-1 (picks up the next row) is masked to zero.
    col = jax.lax.broadcasted_iota(jnp.int32, (th, w, c), 1).reshape(m, c)
    col_ok = col < (w - 1)
    hr2 = jnp.where(col_ok, pltpu.roll(h2, shift=m - 1, axis=0), 0.0)
    hrd2 = jnp.where(col_ok, pltpu.roll(hd2, shift=m - 1, axis=0), 0.0)

    # Tap-major phase matmuls: weights N-concatenated per shifted activation,
    # so the MXU sees N = 4c / 2c / 2c / c with no LHS copies.
    p0 = jnp.dot(h2.astype(BF16), wh_ref[...], preferred_element_type=F32)     # (m, 4c)
    p1 = jnp.dot(hr2.astype(BF16), wr_ref[...], preferred_element_type=F32)    # (m, 2c)
    p2 = jnp.dot(hd2.astype(BF16), wd_ref[...], preferred_element_type=F32)    # (m, 2c)
    p3 = jnp.dot(hrd2.astype(BF16), wrd_ref[...], preferred_element_type=F32)  # (m, c)

    ee = p0[:, 0 * c:1 * c]
    eo = p0[:, 1 * c:2 * c] + p1[:, 0:c]
    oe = p0[:, 2 * c:3 * c] + p2[:, 0:c]
    oo = p0[:, 3 * c:4 * c] + p1[:, c:2 * c] + p2[:, c:2 * c] + p3

    # Phase-major store; each slice is written directly (no 4-way concat).
    o_ref[0, :, :, 0 * c:1 * c] = ee.reshape(th, w, c)
    o_ref[0, :, :, 1 * c:2 * c] = eo.reshape(th, w, c)
    o_ref[0, :, :, 2 * c:3 * c] = oe.reshape(th, w, c)
    o_ref[0, :, :, 3 * c:4 * c] = oo.reshape(th, w, c)

    s = (jnp.sum(ee, axis=0, keepdims=True) + jnp.sum(eo, axis=0, keepdims=True)
         + jnp.sum(oe, axis=0, keepdims=True) + jnp.sum(oo, axis=0, keepdims=True))
    q = (jnp.sum(ee * ee, axis=0, keepdims=True)
         + jnp.sum(eo * eo, axis=0, keepdims=True)
         + jnp.sum(oe * oe, axis=0, keepdims=True)
         + jnp.sum(oo * oo, axis=0, keepdims=True))
    sum_ref[...] = s.reshape(1, 1, 1, c)
    sq_ref[...] = q.reshape(1, 1, 1, c)


def _pick_th(h, w, c, budget_bytes=DECONV_VMEM_BUDGET):
    # ~32x the f32 (th, w, c) input tile covers double-buffered in/out blocks,
    # the BN'd / shifted activations, bf16 casts and the phase partials.
    # TODO(synk): size this per TPU generation (v7x: 64 MiB physical VMEM,
    #             v5e/v6e: 128 MiB) instead of one conservative budget.
    best = 1
    for cand in range(1, h + 1):
        if h % cand == 0 and 32 * cand * w * c * 4 <= budget_bytes:
            best = cand
    return best


def deconv_phases(y1_sp, sc1, sh1, w_h, w_r, w_d, w_rd, *, th):
    n, h, w, c = y1_sp.shape
    nt_h = h // th
    c4 = 4 * c

    def halo_map(b, t):
        # first row of the next tile; wraps to row 0 on the last tile, where
        # the kernel zeroes the halo anyway.
        return (b, ((t + 1) % nt_h) * th, 0, 0)

    kern = functools.partial(_deconv_kernel, th=th, w=w, c=c)
    out, s_sum, s_sq = pl.pallas_call(
        kern,
        grid=(n, nt_h),
        in_specs=[
            pl.BlockSpec((1, th, w, c), lambda b, t: (b, t, 0, 0)),
            pl.BlockSpec((1, 1, w, c), halo_map),
            pl.BlockSpec((1, c), lambda b, t: (0, 0)),
            pl.BlockSpec((1, c), lambda b, t: (0, 0)),
            pl.BlockSpec((c, 4 * c), lambda b, t: (0, 0)),
            pl.BlockSpec((c, 2 * c), lambda b, t: (0, 0)),
            pl.BlockSpec((c, 2 * c), lambda b, t: (0, 0)),
            pl.BlockSpec((c, c), lambda b, t: (0, 0)),
        ],
        out_specs=[
            pl.BlockSpec((1, th, w, c4), lambda b, t: (b, t, 0, 0)),
            pl.BlockSpec((1, 1, 1, c), lambda b, t: (b, t, 0, 0)),
            pl.BlockSpec((1, 1, 1, c), lambda b, t: (b, t, 0, 0)),
        ],
        out_shape=[
            jax.ShapeDtypeStruct((n, h, w, c4), F32),
            jax.ShapeDtypeStruct((n, nt_h, 1, c), F32),
            jax.ShapeDtypeStruct((n, nt_h, 1, c), F32),
        ],
        compiler_params=pltpu.CompilerParams(
            dimension_semantics=("parallel", "parallel"),
            vmem_limit_bytes=DECONV_VMEM_LIMIT),
    )(y1_sp, y1_sp, sc1, sh1, w_h, w_r, w_d, w_rd)
    return out, s_sum.sum(axis=(0, 1, 2)), s_sq.sum(axis=(0, 1, 2))


# ---------------------------------------------------------------------------
# Tiny XLA epilogue: global batch stats -> per-channel scale / shift
# ---------------------------------------------------------------------------
def _scale_shift(s_sum, s_sq, gamma, beta, count, c_pad):
    mean = s_sum / count
    var = jnp.maximum(s_sq / count - mean * mean, 0.0)   # biased var (training BN)
    g = jnp.pad(gamma.astype(F32), (0, c_pad - gamma.shape[0]))
    b = jnp.pad(beta.astype(F32), (0, c_pad - beta.shape[0]))
    scale = g * jax.lax.rsqrt(var + EPS)
    shift = b - mean * scale
    return scale.reshape(1, c_pad), shift.reshape(1, c_pad)


# ---------------------------------------------------------------------------
# Full DecoderBlock forward
# ---------------------------------------------------------------------------
@jax.jit
def decoder_block_forward(x_nchw, params):
    (w1, b1, g1, be1, wt, bt, g2, be2, w3, b3, g3, be3) = params
    del b1, bt, b3            # conv biases are cancelled by batch-norm mean sub.

    n, cin, h, w = x_nchw.shape
    cmid = w1.shape[0]
    nf = w3.shape[0]
    cin_p, cmid_p, nf_p = _rup(cin, LANE), _rup(cmid, LANE), _rup(nf, LANE)

    x = jnp.transpose(x_nchw.astype(F32), (0, 2, 3, 1))          # NHWC
    x = jnp.pad(x, ((0, 0), (0, 0), (0, 0), (0, cin_p - cin)))

    # ---- stage 1: conv1 (1x1) + BN1 partial stats --------------------------
    m1 = n * h * w
    tm1 = min(1024, _rup(m1, 16))
    m1_pad = _rup(m1, tm1)
    x2d = x.reshape(m1, cin_p)
    if m1_pad != m1:
        x2d = jnp.pad(x2d, ((0, m1_pad - m1), (0, 0)))
    w1m = jnp.pad(jnp.transpose(w1[:, :, 0, 0], (1, 0)),
                  ((0, cin_p - cin), (0, cmid_p - cmid))).astype(BF16)
    dummy = jnp.zeros((1, cin_p), F32)
    y1, s1, q1 = matmul_bn_stats(x2d, w1m, dummy, dummy,
                                 act=False, m_true=m1, tm=tm1)
    sc1, sh1 = _scale_shift(s1, q1, g1, be1, m1, cmid_p)

    # ---- stage 2: BN1+ReLU + deconv2 (sub-pixel phases) + BN2 partial stats -
    y1_sp = y1[:m1].reshape(n, h, w, cmid_p)

    def tap(kh, kw):                 # padded (Cin, Cout) matrix of one kernel tap
        t = wt[:, :, kh, kw]
        return jnp.pad(t, ((0, cmid_p - cmid), (0, cmid_p - cmid)))

    # Tap-major, N-concatenated weights (one bundle per shifted activation):
    #   ee = h[r,c]W11                     eo = h[r,c]W12 + h[r,c+1]W10
    #   oe = h[r,c]W21 + h[r+1,c]W01       oo = h[r,c]W22 + h[r,c+1]W20
    #                                           + h[r+1,c]W02 + h[r+1,c+1]W00
    w_h = jnp.concatenate([tap(1, 1), tap(1, 2), tap(2, 1), tap(2, 2)],
                          axis=1).astype(BF16)
    w_r = jnp.concatenate([tap(1, 0), tap(2, 0)], axis=1).astype(BF16)
    w_d = jnp.concatenate([tap(0, 1), tap(0, 2)], axis=1).astype(BF16)
    w_rd = tap(0, 0).astype(BF16)

    th = _pick_th(h, w, cmid_p)
    y2, s2, q2 = deconv_phases(y1_sp, sc1, sh1, w_h, w_r, w_d, w_rd, th=th)
    m2 = 4 * m1
    sc2, sh2 = _scale_shift(s2, q2, g2, be2, m2, cmid_p)

    # ---- stage 3: BN2+ReLU + conv3 (1x1) + BN3 partial stats ---------------
    tm2 = min(1024, _rup(m2, 16))
    m2_pad = _rup(m2, tm2)
    y2_rows = y2.reshape(m2, cmid_p)      # phase-major rows == output pixels (free)
    if m2_pad != m2:
        y2_rows = jnp.pad(y2_rows, ((0, m2_pad - m2), (0, 0)))
    w3m = jnp.pad(jnp.transpose(w3[:, :, 0, 0], (1, 0)),
                  ((0, cmid_p - cmid), (0, nf_p - nf))).astype(BF16)
    y3, s3, q3 = matmul_bn_stats(y2_rows, w3m, sc2, sh2,
                                 act=True, m_true=m2, tm=tm2)
    sc3, sh3 = _scale_shift(s3, q3, g3, be3, m2, nf_p)

    # ---- BN3 apply + ReLU fused into the XLA un-interleave epilogue --------
    act3 = jnp.maximum(y3[:m2] * sc3 + sh3, 0.0)
    out = act3.reshape(n, h, w, 2, 2, nf_p)[..., :nf]
    out = jnp.transpose(out, (0, 1, 3, 2, 4, 5)).reshape(n, 2 * h, 2 * w, nf)
    return jnp.transpose(out, (0, 3, 1, 2))


# ---------------------------------------------------------------------------
# Pure-JAX reference (lax convs) used only to sanity-check the kernels.
# ---------------------------------------------------------------------------
def reference_forward(x, params):
    (w1, b1, g1, be1, wt, bt, g2, be2, w3, b3, g3, be3) = params

    def bn(y, g, b):
        mean = jnp.mean(y, axis=(0, 2, 3), keepdims=True)
        var = jnp.mean(jnp.square(y - mean), axis=(0, 2, 3), keepdims=True)
        return ((y - mean) / jnp.sqrt(var + EPS) * g.reshape(1, -1, 1, 1)
                + b.reshape(1, -1, 1, 1))

    dn = ('NCHW', 'OIHW', 'NCHW')
    y = jax.lax.conv_general_dilated(x, w1, (1, 1), 'VALID', dimension_numbers=dn)
    y = jnp.maximum(bn(y + b1.reshape(1, -1, 1, 1), g1, be1), 0.0)

    w_rhs = jnp.flip(jnp.transpose(wt, (1, 0, 2, 3)), axis=(2, 3))
    y = jax.lax.conv_general_dilated(y, w_rhs, (1, 1), ((1, 2), (1, 2)),
                                     lhs_dilation=(2, 2), dimension_numbers=dn)
    y = jnp.maximum(bn(y + bt.reshape(1, -1, 1, 1), g2, be2), 0.0)

    y = jax.lax.conv_general_dilated(y, w3, (1, 1), 'VALID', dimension_numbers=dn)
    y = jnp.maximum(bn(y + b3.reshape(1, -1, 1, 1), g3, be3), 0.0)
    return y


if __name__ == "__main__":
    # Small deterministic config: in_channels=16, n_filters=8, x: (2,16,8,8)
    N, CIN, H, W = 2, 16, 8, 8
    CMID, NF = CIN // 4, 8

    key = jax.random.PRNGKey(0)
    ks = jax.random.split(key, 13)
    f32 = jnp.float32

    params = (
        0.2 * jax.random.normal(ks[0], (CMID, CIN, 1, 1), f32),   # conv1 weight
        0.1 * jax.random.normal(ks[1], (CMID,), f32),             # conv1 bias
        1.0 + 0.1 * jax.random.normal(ks[2], (CMID,), f32),       # norm1 gamma
        0.1 * jax.random.normal(ks[3], (CMID,), f32),             # norm1 beta
        0.2 * jax.random.normal(ks[4], (CMID, CMID, 3, 3), f32),  # deconv2 weight
        0.1 * jax.random.normal(ks[5], (CMID,), f32),             # deconv2 bias
        1.0 + 0.1 * jax.random.normal(ks[6], (CMID,), f32),       # norm2 gamma
        0.1 * jax.random.normal(ks[7], (CMID,), f32),             # norm2 beta
        0.2 * jax.random.normal(ks[8], (NF, CMID, 1, 1), f32),    # conv3 weight
        0.1 * jax.random.normal(ks[9], (NF,), f32),               # conv3 bias
        1.0 + 0.1 * jax.random.normal(ks[10], (NF,), f32),        # norm3 gamma
        0.1 * jax.random.normal(ks[11], (NF,), f32),              # norm3 beta
    )

    x = jax.random.normal(ks[12], (N, CIN, H, W), f32)

    out = decoder_block_forward(x, params)
    out = jax.block_until_ready(out)
    assert out.shape == (N, NF, 2 * H, 2 * W), out.shape

    ref = reference_forward(x, params)
    err = float(jnp.max(jnp.abs(out - ref)))
    ref_scale = float(jnp.max(jnp.abs(ref)))
    # bf16 MXU operands (f32 accumulation) -> slightly looser tolerance than
    # the pure-f32 reference.
    assert err <= 0.03 * ref_scale + 0.03, (
        f"max abs error too large: {err} (ref max {ref_scale})")

    print("KERNEL_OK")
</pallas_src>

<mosaic_0001>
module attributes {stable_mosaic.version = 11 : i64} {
  func.func @_deconv_kernel(%arg0: i32, %arg1: i32, %arg2: memref<1x8x8x128xf32, #tpu.memory_space<vmem>>, %arg3: memref<1x1x8x128xf32, #tpu.memory_space<vmem>>, %arg4: memref<1x128xf32, #tpu.memory_space<vmem>>, %arg5: memref<1x128xf32, #tpu.memory_space<vmem>>, %arg6: memref<128x512xbf16, #tpu.memory_space<vmem>>, %arg7: memref<128x256xbf16, #tpu.memory_space<vmem>>, %arg8: memref<128x256xbf16, #tpu.memory_space<vmem>>, %arg9: memref<128x128xbf16, #tpu.memory_space<vmem>>, %arg10: memref<1x8x8x512xf32, #tpu.memory_space<vmem>>, %arg11: memref<1x1x1x128xf32, #tpu.memory_space<vmem>>, %arg12: memref<1x1x1x128xf32, #tpu.memory_space<vmem>>) attributes {dimension_semantics = [#tpu.dimension_semantics<parallel>, #tpu.dimension_semantics<parallel>], iteration_bounds = array<i64: 2, 1>, scalar_prefetch = 0 : i64, scratch_operands = 0 : i64, tpu.core_type = #tpu.core_type<tc>, window_params = [{transform_indices = @transform_0, window_bounds = array<i64: 1, 8, 8, 128>}, {transform_indices = @transform_1, window_bounds = array<i64: 1, 1, 8, 128>}, {pipeline_mode = #tpu.pipeline_mode<synchronous>, transform_indices = @transform_2, window_bounds = array<i64: 1, 128>}, {pipeline_mode = #tpu.pipeline_mode<synchronous>, transform_indices = @transform_3, window_bounds = array<i64: 1, 128>}, {pipeline_mode = #tpu.pipeline_mode<synchronous>, transform_indices = @transform_4, window_bounds = array<i64: 128, 512>}, {pipeline_mode = #tpu.pipeline_mode<synchronous>, transform_indices = @transform_5, window_bounds = array<i64: 128, 256>}, {pipeline_mode = #tpu.pipeline_mode<synchronous>, transform_indices = @transform_6, window_bounds = array<i64: 128, 256>}, {pipeline_mode = #tpu.pipeline_mode<synchronous>, transform_indices = @transform_7, window_bounds = array<i64: 128, 128>}, {transform_indices = @transform_8, window_bounds = array<i64: 1, 8, 8, 512>}, {transform_indices = @transform_9, window_bounds = array<i64: 1, 1, 1, 128>}, {transform_indices = @transform_10, window_bounds = array<i64: 1, 1, 1, 128>}]} {
    %c0 = arith.constant 0 : index
    %c0_0 = arith.constant 0 : index
    %0 = vector.load %arg4[%c0, %c0_0] : memref<1x128xf32, #tpu.memory_space<vmem>>, vector<1x128xf32>
    %c0_1 = arith.constant 0 : index
    %c0_2 = arith.constant 0 : index
    %1 = vector.load %arg5[%c0_1, %c0_2] : memref<1x128xf32, #tpu.memory_space<vmem>>, vector<1x128xf32>
    %c0_3 = arith.constant 0 : index
    %c0_4 = arith.constant 0 : index
    %c0_5 = arith.constant 0 : index
    %c0_6 = arith.constant 0 : index
    %2 = vector.load %arg2[%c0_3, %c0_4, %c0_5, %c0_6] : memref<1x8x8x128xf32, #tpu.memory_space<vmem>>, vector<1x8x8x128xf32>
    %3 = vector.shape_cast %2 : vector<1x8x8x128xf32> to vector<8x8x128xf32>
    %c0_7 = arith.constant 0 : index
    %c0_8 = arith.constant 0 : index
    %c0_9 = arith.constant 0 : index
    %c0_10 = arith.constant 0 : index
    %4 = vector.load %arg3[%c0_7, %c0_8, %c0_9, %c0_10] : memref<1x1x8x128xf32, #tpu.memory_space<vmem>>, vector<1x1x8x128xf32>
    %5 = vector.shape_cast %4 : vector<1x1x8x128xf32> to vector<1x8x128xf32>
    %6 = vector.shape_cast %0 : vector<1x128xf32> to vector<1x1x128xf32>
    %7 = vector.broadcast %6 : vector<1x1x128xf32> to vector<8x8x128xf32>
    %8 = arith.mulf %3, %7 : vector<8x8x128xf32>
    %9 = vector.shape_cast %1 : vector<1x128xf32> to vector<1x1x128xf32>
    %10 = vector.broadcast %9 : vector<1x1x128xf32> to vector<8x8x128xf32>
    %11 = arith.addf %8, %10 : vector<8x8x128xf32>
    %cst = arith.constant 0.000000e+00 : f32
    %12 = vector.broadcast %cst : f32 to vector<8x8x128xf32>
    %13 = arith.maximumf %11, %12 : vector<8x8x128xf32>
    %14 = vector.shape_cast %0 : vector<1x128xf32> to vector<1x1x128xf32>
    %15 = vector.broadcast %14 : vector<1x1x128xf32> to vector<1x8x128xf32>
    %16 = arith.mulf %5, %15 : vector<1x8x128xf32>
    %17 = vector.shape_cast %1 : vector<1x128xf32> to vector<1x1x128xf32>
    %18 = vector.broadcast %17 : vector<1x1x128xf32> to vector<1x8x128xf32>
    %19 = arith.addf %16, %18 : vector<1x8x128xf32>
    %cst_11 = arith.constant 0.000000e+00 : f32
    %20 = vector.broadcast %cst_11 : f32 to vector<1x8x128xf32>
    %21 = arith.maximumf %19, %20 : vector<1x8x128xf32>
    %c0_i32 = arith.constant 0 : i32
    %22 = arith.cmpi slt, %arg1, %c0_i32 : i32
    %23 = arith.extui %22 : i1 to i32
    %24 = arith.sitofp %23 : i32 to f32
    %25 = vector.broadcast %24 : f32 to vector<1x8x128xf32>
    %26 = arith.mulf %21, %25 : vector<1x8x128xf32>
    %27 = vector.shape_cast %13 : vector<8x8x128xf32> to vector<64x128xf32>
    %28 = vector.extract_strided_slice %13 {offsets = [1, 0, 0], sizes = [7, 8, 128], strides = [1, 1, 1]} : vector<8x8x128xf32> to vector<7x8x128xf32>
    %29 = tpu.concatenate %28, %26 in 0 : vector<7x8x128xf32>, vector<1x8x128xf32> -> vector<8x8x128xf32>
    %30 = vector.shape_cast %29 : vector<8x8x128xf32> to vector<64x128xf32>
    %31 = tpu.iota {dimensions = array<i32: 1>} : vector<8x8x128xi32>
    %32 = vector.shape_cast %31 : vector<8x8x128xi32> to vector<64x128xi32>
    %c7_i32 = arith.constant 7 : i32
    %33 = vector.broadcast %c7_i32 : i32 to vector<64x128xi32>
    %34 = arith.cmpi slt, %32, %33 : vector<64x128xi32>
    %c63_i32 = arith.constant 63 : i32
    %35 = tpu.dynamic_rotate %27 by %c63_i32 dim 0 : vector<64x128xf32>, i32 -> vector<64x128xf32>
    %cst_12 = arith.constant 0.000000e+00 : f32
    %36 = vector.broadcast %cst_12 : f32 to vector<64x128xf32>
    %37 = arith.select %34, %35, %36 : vector<64x128xi1>, vector<64x128xf32>
    %c63_i32_13 = arith.constant 63 : i32
    %38 = tpu.dynamic_rotate %30 by %c63_i32_13 dim 0 : vector<64x128xf32>, i32 -> vector<64x128xf32>
    %cst_14 = arith.constant 0.000000e+00 : f32
    %39 = vector.broadcast %cst_14 : f32 to vector<64x128xf32>
    %40 = arith.select %34, %38, %39 : vector<64x128xi1>, vector<64x128xf32>
    %41 = arith.truncf %27 : vector<64x128xf32> to vector<64x128xbf16>
    %c0_15 = arith.constant 0 : index
    %c0_16 = arith.constant 0 : index
    %42 = vector.load %arg6[%c0_15, %c0_16] : memref<128x512xbf16, #tpu.memory_space<vmem>>, vector<128x512xbf16>
    %cst_17 = arith.constant dense<0.000000e+00> : vector<64x512xf32>
    %43 = tpu.matmul %41, %42, %cst_17 {dimension_numbers = #tpu.dot_dimension_numbers<[1], [0], [0], [1], [0, 0, 1, 1], [], []>} : vector<64x128xbf16>, vector<128x512xbf16>, vector<64x512xf32> -> vector<64x512xf32>
    %44 = arith.truncf %37 : vector<64x128xf32> to vector<64x128xbf16>
    %c0_18 = arith.constant 0 : index
    %c0_19 = arith.constant 0 : index
    %45 = vector.load %arg7[%c0_18, %c0_19] : memref<128x256xbf16, #tpu.memory_space<vmem>>, vector<128x256xbf16>
    %cst_20 = arith.constant dense<0.000000e+00> : vector<64x256xf32>
    %46 = tpu.matmul %44, %45, %cst_20 {dimension_numbers = #tpu.dot_dimension_numbers<[1], [0], [0], [1], [0, 0, 1, 1], [], []>} : vector<64x128xbf16>, vector<128x256xbf16>, vector<64x256xf32> -> vector<64x256xf32>
    %47 = arith.truncf %30 : vector<64x128xf32> to vector<64x128xbf16>
    %c0_21 = arith.constant 0 : index
    %c0_22 = arith.constant 0 : index
    %48 = vector.load %arg8[%c0_21, %c0_22] : memref<128x256xbf16, #tpu.memory_space<vmem>>, vector<128x256xbf16>
    %cst_23 = arith.constant dense<0.000000e+00> : vector<64x256xf32>
    %49 = tpu.matmul %47, %48, %cst_23 {dimension_numbers = #tpu.dot_dimension_numbers<[1], [0], [0], [1], [0, 0, 1, 1], [], []>} : vector<64x128xbf16>, vector<128x256xbf16>, vector<64x256xf32> -> vector<64x256xf32>
    %50 = arith.truncf %40 : vector<64x128xf32> to vector<64x128xbf16>
    %c0_24 = arith.constant 0 : index
    %c0_25 = arith.constant 0 : index
    %51 = vector.load %arg9[%c0_24, %c0_25] : memref<128x128xbf16, #tpu.memory_space<vmem>>, vector<128x128xbf16>
    %cst_26 = arith.constant dense<0.000000e+00> : vector<64x128xf32>
    %52 = tpu.matmul %50, %51, %cst_26 {dimension_numbers = #tpu.dot_dimension_numbers<[1], [0], [0], [1], [0, 0, 1, 1], [], []>} : vector<64x128xbf16>, vector<128x128xbf16>, vector<64x128xf32> -> vector<64x128xf32>
    %53 = vector.extract_strided_slice %43 {offsets = [0, 0], sizes = [64, 128], strides = [1, 1]} : vector<64x512xf32> to vector<64x128xf32>
    %54 = vector.extract_strided_slice %43 {offsets = [0, 128], sizes = [64, 128], strides = [1, 1]} : vector<64x512xf32> to vector<64x128xf32>
    %55 = vector.extract_strided_slice %46 {offsets = [0, 0], sizes = [64, 128], strides = [1, 1]} : vector<64x256xf32> to vector<64x128xf32>
    %56 = arith.addf %54, %55 : vector<64x128xf32>
    %57 = vector.extract_strided_slice %43 {offsets = [0, 256], sizes = [64, 128], strides = [1, 1]} : vector<64x512xf32> to vector<64x128xf32>
    %58 = vector.extract_strided_slice %49 {offsets = [0, 0], sizes = [64, 128], strides = [1, 1]} : vector<64x256xf32> to vector<64x128xf32>
    %59 = arith.addf %57, %58 : vector<64x128xf32>
    %60 = vector.extract_strided_slice %43 {offsets = [0, 384], sizes = [64, 128], strides = [1, 1]} : vector<64x512xf32> to vector<64x128xf32>
    %61 = vector.extract_strided_slice %46 {offsets = [0, 128], sizes = [64, 128], strides = [1, 1]} : vector<64x256xf32> to vector<64x128xf32>
    %62 = arith.addf %60, %61 : vector<64x128xf32>
    %63 = vector.extract_strided_slice %49 {offsets = [0, 128], sizes = [64, 128], strides = [1, 1]} : vector<64x256xf32> to vector<64x128xf32>
    %64 = arith.addf %62, %63 : vector<64x128xf32>
    %65 = arith.addf %64, %52 : vector<64x128xf32>
    %66 = vector.shape_cast %53 : vector<64x128xf32> to vector<8x8x128xf32>
    %c0_27 = arith.constant 0 : index
    %c0_28 = arith.constant 0 : index
    %c0_29 = arith.constant 0 : index
    %c0_30 = arith.constant 0 : index
    %67 = vector.load %arg10[%c0_27, %c0_28, %c0_29, %c0_30] : memref<1x8x8x512xf32, #tpu.memory_space<vmem>>, vector<1x8x8x128xf32>
    %68 = vector.shape_cast %67 : vector<1x8x8x128xf32> to vector<8x8x128xf32>
    %69 = vector.shape_cast %66 : vector<8x8x128xf32> to vector<1x8x8x128xf32>
    tpu.vector_store %arg10[%c0_27, %c0_28, %c0_29, %c0_30], %69 {strides = array<i32>} : memref<1x8x8x512xf32, #tpu.memory_space<vmem>>, vector<1x8x8x128xf32>,
    %70 = vector.shape_cast %56 : vector<64x128xf32> to vector<8x8x128xf32>
    %c0_31 = arith.constant 0 : index
    %c0_32 = arith.constant 0 : index
    %c0_33 = arith.constant 0 : index
    %c128 = arith.constant 128 : index
    %71 = vector.load %arg10[%c0_31, %c0_32, %c0_33, %c128] : memref<1x8x8x512xf32, #tpu.memory_space<vmem>>, vector<1x8x8x128xf32>
    %72 = vector.shape_cast %71 : vector<1x8x8x128xf32> to vector<8x8x128xf32>
    %73 = vector.shape_cast %70 : vector<8x8x128xf32> to vector<1x8x8x128xf32>
    tpu.vector_store %arg10[%c0_31, %c0_32, %c0_33, %c128], %73 {strides = array<i32>} : memref<1x8x8x512xf32, #tpu.memory_space<vmem>>, vector<1x8x8x128xf32>,
    %74 = vector.shape_cast %59 : vector<64x128xf32> to vector<8x8x128xf32>
    %c0_34 = arith.constant 0 : index
    %c0_35 = arith.constant 0 : index
    %c0_36 = arith.constant 0 : index
    %c256 = arith.constant 256 : index
    %75 = vector.load %arg10[%c0_34, %c0_35, %c0_36, %c256] : memref<1x8x8x512xf32, #tpu.memory_space<vmem>>, vector<1x8x8x128xf32>
    %76 = vector.shape_cast %75 : vector<1x8x8x128xf32> to vector<8x8x128xf32>
    %77 = vector.shape_cast %74 : vector<8x8x128xf32> to vector<1x8x8x128xf32>
    tpu.vector_store %arg10[%c0_34, %c0_35, %c0_36, %c256], %77 {strides = array<i32>} : memref<1x8x8x512xf32, #tpu.memory_space<vmem>>, vector<1x8x8x128xf32>,
    %78 = vector.shape_cast %65 : vector<64x128xf32> to vector<8x8x128xf32>
    %c0_37 = arith.constant 0 : index
    %c0_38 = arith.constant 0 : index
    %c0_39 = arith.constant 0 : index
    %c384 = arith.constant 384 : index
    %79 = vector.load %arg10[%c0_37, %c0_38, %c0_39, %c384] : memref<1x8x8x512xf32, #tpu.memory_space<vmem>>, vector<1x8x8x128xf32>
    %80 = vector.shape_cast %79 : vector<1x8x8x128xf32> to vector<8x8x128xf32>
    %81 = vector.shape_cast %78 : vector<8x8x128xf32> to vector<1x8x8x128xf32>
    tpu.vector_store %arg10[%c0_37, %c0_38, %c0_39, %c384], %81 {strides = array<i32>} : memref<1x8x8x512xf32, #tpu.memory_space<vmem>>, vector<1x8x8x128xf32>,
    %cst_40 = arith.constant dense<0.000000e+00> : vector<128xf32>
    %82 = vector.multi_reduction <add>, %53, %cst_40 [0] : vector<64x128xf32> to vector<128xf32>
    %83 = vector.shape_cast %82 : vector<128xf32> to vector<1x128xf32>
    %cst_41 = arith.constant dense<0.000000e+00> : vector<128xf32>
    %84 = vector.multi_reduction <add>, %56, %cst_41 [0] : vector<64x128xf32> to vector<128xf32>
    %85 = vector.shape_cast %84 : vector<128xf32> to vector<1x128xf32>
    %86 = arith.addf %83, %85 : vector<1x128xf32>
    %cst_42 = arith.constant dense<0.000000e+00> : vector<128xf32>
    %87 = vector.multi_reduction <add>, %59, %cst_42 [0] : vector<64x128xf32> to vector<128xf32>
    %88 = vector.shape_cast %87 : vector<128xf32> to vector<1x128xf32>
    %89 = arith.addf %86, %88 : vector<1x128xf32>
    %cst_43 = arith.constant dense<0.000000e+00> : vector<128xf32>
    %90 = vector.multi_reduction <add>, %65, %cst_43 [0] : vector<64x128xf32> to vector<128xf32>
    %91 = vector.shape_cast %90 : vector<128xf32> to vector<1x128xf32>
    %92 = arith.addf %89, %91 : vector<1x128xf32>
    %93 = arith.mulf %53, %53 : vector<64x128xf32>
    %cst_44 = arith.constant dense<0.000000e+00> : vector<128xf32>
    %94 = vector.multi_reduction <add>, %93, %cst_44 [0] : vector<64x128xf32> to vector<128xf32>
    %95 = vector.shape_cast %94 : vector<128xf32> to vector<1x128xf32>
    %96 = arith.mulf %56, %56 : vector<64x128xf32>
    %cst_45 = arith.constant dense<0.000000e+00> : vector<128xf32>
    %97 = vector.multi_reduction <add>, %96, %cst_45 [0] : vector<64x128xf32> to vector<128xf32>
    %98 = vector.shape_cast %97 : vector<128xf32> to vector<1x128xf32>
    %99 = arith.addf %95, %98 : vector<1x128xf32>
    %100 = arith.mulf %59, %59 : vector<64x128xf32>
    %cst_46 = arith.constant dense<0.000000e+00> : vector<128xf32>
    %101 = vector.multi_reduction <add>, %100, %cst_46 [0] : vector<64x128xf32> to vector<128xf32>
    %102 = vector.shape_cast %101 : vector<128xf32> to vector<1x128xf32>
    %103 = arith.addf %99, %102 : vector<1x128xf32>
    %104 = arith.mulf %65, %65 : vector<64x128xf32>
    %cst_47 = arith.constant dense<0.000000e+00> : vector<128xf32>
    %105 = vector.multi_reduction <add>, %104, %cst_47 [0] : vector<64x128xf32> to vector<128xf32>
    %106 = vector.shape_cast %105 : vector<128xf32> to vector<1x128xf32>
    %107 = arith.addf %103, %106 : vector<1x128xf32>
    %108 = vector.shape_cast %92 : vector<1x128xf32> to vector<1x1x1x128xf32>
    %c0_48 = arith.constant 0 : index
    %c0_49 = arith.constant 0 : index
    %c0_50 = arith.constant 0 : index
    %c0_51 = arith.constant 0 : index
    %109 = vector.load %arg11[%c0_48, %c0_49, %c0_50, %c0_51] : memref<1x1x1x128xf32, #tpu.memory_space<vmem>>, vector<1x1x1x128xf32>
    tpu.vector_store %arg11[%c0_48, %c0_49, %c0_50, %c0_51], %108 {strides = array<i32>} : memref<1x1x1x128xf32, #tpu.memory_space<vmem>>, vector<1x1x1x128xf32>,
    %110 = vector.shape_cast %107 : vector<1x128xf32> to vector<1x1x1x128xf32>
    %c0_52 = arith.constant 0 : index
    %c0_53 = arith.constant 0 : index
    %c0_54 = arith.constant 0 : index
    %c0_55 = arith.constant 0 : index
    %111 = vector.load %arg12[%c0_52, %c0_53, %c0_54, %c0_55] : memref<1x1x1x128xf32, #tpu.memory_space<vmem>>, vector<1x1x1x128xf32>
    tpu.vector_store %arg12[%c0_52, %c0_53, %c0_54, %c0_55], %110 {strides = array<i32>} : memref<1x1x1x128xf32, #tpu.memory_space<vmem>>, vector<1x1x1x128xf32>,
    return
  }
  func.func @transform_0(%arg0: i32, %arg1: i32) -> (i32, i32, i32, i32) {
    %c0_i32 = arith.constant 0 : i32
    %c0_i32_0 = arith.constant 0 : i32
    %c0_i32_1 = arith.constant 0 : i32
    return %arg0, %arg1, %c0_i32, %c0_i32_0 : i32, i32, i32, i32
  }
  func.func @transform_1(%arg0: i32, %arg1: i32) -> (i32, i32, i32, i32) {
    %c1_i32 = arith.constant 1 : i32
    %0 = arith.addi %arg1, %c1_i32 : i32
    %c1_i32_0 = arith.constant 1 : i32
    %c0_i32 = arith.constant 0 : i32
    %1 = arith.cmpi eq, %c1_i32_0, %c0_i32 : i32
    %c1_i32_1 = arith.constant 1 : i32
    %2 = arith.select %1, %c1_i32_1, %c1_i32_0 : i32
    %3 = arith.remsi %0, %2 : i32
    %c0_i32_2 = arith.constant 0 : i32
    %4 = arith.cmpi ne, %3, %c0_i32_2 : i32
    %c0_i32_3 = arith.constant 0 : i32
    %5 = arith.cmpi slt, %3, %c0_i32_3 : i32
    %c0_i32_4 = arith.constant 0 : i32
    %6 = arith.cmpi slt, %2, %c0_i32_4 : i32
    %7 = arith.xori %5, %6 : i1
    %8 = arith.andi %7, %4 : i1
    %9 = arith.addi %3, %2 : i32
    %10 = arith.select %8, %9, %3 : i32
    %c8_i32 = arith.constant 8 : i32
    %11 = arith.muli %10, %c8_i32 : i32
    %c0_i32_5 = arith.constant 0 : i32
    %c0_i32_6 = arith.constant 0 : i32
    %c0_i32_7 = arith.constant 0 : i32
    return %arg0, %11, %c0_i32_5, %c0_i32_6 : i32, i32, i32, i32
  }
  func.func @transform_2(%arg0: i32, %arg1: i32) -> (i32, i32) {
    %c0_i32 = arith.constant 0 : i32
    %c0_i32_0 = arith.constant 0 : i32
    %c0_i32_1 = arith.constant 0 : i32
    return %c0_i32, %c0_i32_0 : i32, i32
  }
  func.func @transform_3(%arg0: i32, %arg1: i32) -> (i32, i32) {
    %c0_i32 = arith.constant 0 : i32
    %c0_i32_0 = arith.constant 0 : i32
    %c0_i32_1 = arith.constant 0 : i32
    return %c0_i32, %c0_i32_0 : i32, i32
  }
  func.func @transform_4(%arg0: i32, %arg1: i32) -> (i32, i32) {
    %c0_i32 = arith.constant 0 : i32
    %c0_i32_0 = arith.constant 0 : i32
    %c0_i32_1 = arith.constant 0 : i32
    return %c0_i32, %c0_i32_0 : i32, i32
  }
  func.func @transform_5(%arg0: i32, %arg1: i32) -> (i32, i32) {
    %c0_i32 = arith.constant 0 : i32
    %c0_i32_0 = arith.constant 0 : i32
    %c0_i32_1 = arith.constant 0 : i32
    return %c0_i32, %c0_i32_0 : i32, i32
  }
  func.func @transform_6(%arg0: i32, %arg1: i32) -> (i32, i32) {
    %c0_i32 = arith.constant 0 : i32
    %c0_i32_0 = arith.constant 0 : i32
    %c0_i32_1 = arith.constant 0 : i32
    return %c0_i32, %c0_i32_0 : i32, i32
  }
  func.func @transform_7(%arg0: i32, %arg1: i32) -> (i32, i32) {
    %c0_i32 = arith.constant 0 : i32
    %c0_i32_0 = arith.constant 0 : i32
    %c0_i32_1 = arith.constant 0 : i32
    return %c0_i32, %c0_i32_0 : i32, i32
  }
  func.func @transform_8(%arg0: i32, %arg1: i32) -> (i32, i32, i32, i32) {
    %c0_i32 = arith.constant 0 : i32
    %c0_i32_0 = arith.constant 0 : i32
    %c0_i32_1 = arith.constant 0 : i32
    return %arg0, %arg1, %c0_i32, %c0_i32_0 : i32, i32, i32, i32
  }
  func.func @transform_9(%arg0: i32, %arg1: i32) -> (i32, i32, i32, i32) {
    %c0_i32 = arith.constant 0 : i32
    %c0_i32_0 = arith.constant 0 : i32
    %c0_i32_1 = arith.constant 0 : i32
    return %arg0, %arg1, %c0_i32, %c0_i32_0 : i32, i32, i32, i32
  }
  func.func @transform_10(%arg0: i32, %arg1: i32) -> (i32, i32, i32, i32) {
    %c0_i32 = arith.constant 0 : i32
    %c0_i32_0 = arith.constant 0 : i32
    %c0_i32_1 = arith.constant 0 : i32
    return %arg0, %arg1, %c0_i32, %c0_i32_0 : i32, i32, i32, i32
  }
}

module attributes {stable_mosaic.version = 11 : i64} {
  func.func @_mm_stats_kernel(%arg0: i32, %arg1: memref<128x128xf32, #tpu.memory_space<vmem>>, %arg2: memref<128x128xbf16, #tpu.memory_space<vmem>>, %arg3: memref<1x128xf32, #tpu.memory_space<vmem>>, %arg4: memref<1x128xf32, #tpu.memory_space<vmem>>, %arg5: memref<128x128xf32, #tpu.memory_space<vmem>>, %arg6: memref<1x1x128xf32, #tpu.memory_space<vmem>>, %arg7: memref<1x1x128xf32, #tpu.memory_space<vmem>>) attributes {dimension_semantics = [#tpu.dimension_semantics<parallel>], iteration_bounds = array<i64: 1>, scalar_prefetch = 0 : i64, scratch_operands = 0 : i64, tpu.core_type = #tpu.core_type<tc>, window_params = [{transform_indices = @transform_0, window_bounds = array<i64: 128, 128>}, {pipeline_mode = #tpu.pipeline_mode<synchronous>, transform_indices = @transform_1, window_bounds = array<i64: 128, 128>}, {pipeline_mode = #tpu.pipeline_mode<synchronous>, transform_indices = @transform_2, window_bounds = array<i64: 1, 128>}, {pipeline_mode = #tpu.pipeline_mode<synchronous>, transform_indices = @transform_3, window_bounds = array<i64: 1, 128>}, {transform_indices = @transform_4, window_bounds = array<i64: 128, 128>}, {transform_indices = @transform_5, window_bounds = array<i64: 1, 1, 128>}, {transform_indices = @transform_6, window_bounds = array<i64: 1, 1, 128>}]} {
    %c0 = arith.constant 0 : index
    %c0_0 = arith.constant 0 : index
    %0 = vector.load %arg1[%c0, %c0_0] : memref<128x128xf32, #tpu.memory_space<vmem>>, vector<128x128xf32>
    %1 = arith.truncf %0 : vector<128x128xf32> to vector<128x128xbf16>
    %c0_1 = arith.constant 0 : index
    %c0_2 = arith.constant 0 : index
    %2 = vector.load %arg2[%c0_1, %c0_2] : memref<128x128xbf16, #tpu.memory_space<vmem>>, vector<128x128xbf16>
    %cst = arith.constant dense<0.000000e+00> : vector<128x128xf32>
    %3 = tpu.matmul %1, %2, %cst {dimension_numbers = #tpu.dot_dimension_numbers<[1], [0], [0], [1], [0, 0, 1, 1], [], []>} : vector<128x128xbf16>, vector<128x128xbf16>, vector<128x128xf32> -> vector<128x128xf32>
    %c0_3 = arith.constant 0 : index
    %c0_4 = arith.constant 0 : index
    %4 = vector.load %arg5[%c0_3, %c0_4] : memref<128x128xf32, #tpu.memory_space<vmem>>, vector<128x128xf32>
    tpu.vector_store %arg5[%c0_3, %c0_4], %3 {strides = array<i32>} : memref<128x128xf32, #tpu.memory_space<vmem>>, vector<128x128xf32>,
    %cst_5 = arith.constant dense<0.000000e+00> : vector<128xf32>
    %5 = vector.multi_reduction <add>, %3, %cst_5 [0] : vector<128x128xf32> to vector<128xf32>
    %6 = vector.shape_cast %5 : vector<128xf32> to vector<1x128xf32>
    %7 = vector.shape_cast %6 : vector<1x128xf32> to vector<1x1x128xf32>
    %c0_6 = arith.constant 0 : index
    %c0_7 = arith.constant 0 : index
    %c0_8 = arith.constant 0 : index
    %8 = vector.load %arg6[%c0_6, %c0_7, %c0_8] : memref<1x1x128xf32, #tpu.memory_space<vmem>>, vector<1x1x128xf32>
    tpu.vector_store %arg6[%c0_6, %c0_7, %c0_8], %7 {strides = array<i32>} : memref<1x1x128xf32, #tpu.memory_space<vmem>>, vector<1x1x128xf32>,
    %9 = arith.mulf %3, %3 : vector<128x128xf32>
    %cst_9 = arith.constant dense<0.000000e+00> : vector<128xf32>
    %10 = vector.multi_reduction <add>, %9, %cst_9 [0] : vector<128x128xf32> to vector<128xf32>
    %11 = vector.shape_cast %10 : vector<128xf32> to vector<1x128xf32>
    %12 = vector.shape_cast %11 : vector<1x128xf32> to vector<1x1x128xf32>
    %c0_10 = arith.constant 0 : index
    %c0_11 = arith.constant 0 : index
    %c0_12 = arith.constant 0 : index
    %13 = vector.load %arg7[%c0_10, %c0_11, %c0_12] : memref<1x1x128xf32, #tpu.memory_space<vmem>>, vector<1x1x128xf32>
    tpu.vector_store %arg7[%c0_10, %c0_11, %c0_12], %12 {strides = array<i32>} : memref<1x1x128xf32, #tpu.memory_space<vmem>>, vector<1x1x128xf32>,
    return
  }
  func.func @transform_0(%arg0: i32) -> (i32, i32) {
    %c0_i32 = arith.constant 0 : i32
    %c0_i32_0 = arith.constant 0 : i32
    return %arg0, %c0_i32 : i32, i32
  }
  func.func @transform_1(%arg0: i32) -> (i32, i32) {
    %c0_i32 = arith.constant 0 : i32
    %c0_i32_0 = arith.constant 0 : i32
    %c0_i32_1 = arith.constant 0 : i32
    return %c0_i32, %c0_i32_0 : i32, i32
  }
  func.func @transform_2(%arg0: i32) -> (i32, i32) {
    %c0_i32 = arith.constant 0 : i32
    %c0_i32_0 = arith.constant 0 : i32
    %c0_i32_1 = arith.constant 0 : i32
    return %c0_i32, %c0_i32_0 : i32, i32
  }
  func.func @transform_3(%arg0: i32) -> (i32, i32) {
    %c0_i32 = arith.constant 0 : i32
    %c0_i32_0 = arith.constant 0 : i32
    %c0_i32_1 = arith.constant 0 : i32
    return %c0_i32, %c0_i32_0 : i32, i32
  }
  func.func @transform_4(%arg0: i32) -> (i32, i32) {
    %c0_i32 = arith.constant 0 : i32
    %c0_i32_0 = arith.constant 0 : i32
    return %arg0, %c0_i32 : i32, i32
  }
  func.func @transform_5(%arg0: i32) -> (i32, i32, i32) {
    %c0_i32 = arith.constant 0 : i32
    %c0_i32_0 = arith.constant 0 : i32
    %c0_i32_1 = arith.constant 0 : i32
    return %arg0, %c0_i32, %c0_i32_0 : i32, i32, i32
  }
  func.func @transform_6(%arg0: i32) -> (i32, i32, i32) {
    %c0_i32 = arith.constant 0 : i32
    %c0_i32_0 = arith.constant 0 : i32
    %c0_i32_1 = arith.constant 0 : i32
    return %arg0, %c0_i32, %c0_i32_0 : i32, i32, i32
  }
}

module attributes {stable_mosaic.version = 11 : i64} {
  func.func @_mm_stats_kernel(%arg0: i32, %arg1: memref<512x128xf32, #tpu.memory_space<vmem>>, %arg2: memref<128x128xbf16, #tpu.memory_space<vmem>>, %arg3: memref<1x128xf32, #tpu.memory_space<vmem>>, %arg4: memref<1x128xf32, #tpu.memory_space<vmem>>, %arg5: memref<512x128xf32, #tpu.memory_space<vmem>>, %arg6: memref<1x1x128xf32, #tpu.memory_space<vmem>>, %arg7: memref<1x1x128xf32, #tpu.memory_space<vmem>>) attributes {dimension_semantics = [#tpu.dimension_semantics<parallel>], iteration_bounds = array<i64: 1>, scalar_prefetch = 0 : i64, scratch_operands = 0 : i64, tpu.core_type = #tpu.core_type<tc>, window_params = [{transform_indices = @transform_0, window_bounds = array<i64: 512, 128>}, {pipeline_mode = #tpu.pipeline_mode<synchronous>, transform_indices = @transform_1, window_bounds = array<i64: 128, 128>}, {pipeline_mode = #tpu.pipeline_mode<synchronous>, transform_indices = @transform_2, window_bounds = array<i64: 1, 128>}, {pipeline_mode = #tpu.pipeline_mode<synchronous>, transform_indices = @transform_3, window_bounds = array<i64: 1, 128>}, {transform_indices = @transform_4, window_bounds = array<i64: 512, 128>}, {transform_indices = @transform_5, window_bounds = array<i64: 1, 1, 128>}, {transform_indices = @transform_6, window_bounds = array<i64: 1, 1, 128>}]} {
    %c0 = arith.constant 0 : index
    %c0_0 = arith.constant 0 : index
    %0 = vector.load %arg1[%c0, %c0_0] : memref<512x128xf32, #tpu.memory_space<vmem>>, vector<512x128xf32>
    %c0_1 = arith.constant 0 : index
    %c0_2 = arith.constant 0 : index
    %1 = vector.load %arg3[%c0_1, %c0_2] : memref<1x128xf32, #tpu.memory_space<vmem>>, vector<1x128xf32>
    %2 = vector.broadcast %1 : vector<1x128xf32> to vector<512x128xf32>
    %3 = arith.mulf %0, %2 : vector<512x128xf32>
    %c0_3 = arith.constant 0 : index
    %c0_4 = arith.constant 0 : index
    %4 = vector.load %arg4[%c0_3, %c0_4] : memref<1x128xf32, #tpu.memory_space<vmem>>, vector<1x128xf32>
    %5 = vector.broadcast %4 : vector<1x128xf32> to vector<512x128xf32>
    %6 = arith.addf %3, %5 : vector<512x128xf32>
    %cst = arith.constant 0.000000e+00 : f32
    %7 = vector.broadcast %cst : f32 to vector<512x128xf32>
    %8 = arith.maximumf %6, %7 : vector<512x128xf32>
    %9 = arith.truncf %8 : vector<512x128xf32> to vector<512x128xbf16>
    %c0_5 = arith.constant 0 : index
    %c0_6 = arith.constant 0 : index
    %10 = vector.load %arg2[%c0_5, %c0_6] : memref<128x128xbf16, #tpu.memory_space<vmem>>, vector<128x128xbf16>
    %cst_7 = arith.constant dense<0.000000e+00> : vector<512x128xf32>
    %11 = tpu.matmul %9, %10, %cst_7 {dimension_numbers = #tpu.dot_dimension_numbers<[1], [0], [0], [1], [0, 0, 1, 1], [], []>} : vector<512x128xbf16>, vector<128x128xbf16>, vector<512x128xf32> -> vector<512x128xf32>
    %c0_8 = arith.constant 0 : index
    %c0_9 = arith.constant 0 : index
    %12 = vector.load %arg5[%c0_8, %c0_9] : memref<512x128xf32, #tpu.memory_space<vmem>>, vector<512x128xf32>
    tpu.vector_store %arg5[%c0_8, %c0_9], %11 {strides = array<i32>} : memref<512x128xf32, #tpu.memory_space<vmem>>, vector<512x128xf32>,
    %cst_10 = arith.constant dense<0.000000e+00> : vector<128xf32>
    %13 = vector.multi_reduction <add>, %11, %cst_10 [0] : vector<512x128xf32> to vector<128xf32>
    %14 = vector.shape_cast %13 : vector<128xf32> to vector<1x128xf32>
    %15 = vector.shape_cast %14 : vector<1x128xf32> to vector<1x1x128xf32>
    %c0_11 = arith.constant 0 : index
    %c0_12 = arith.constant 0 : index
    %c0_13 = arith.constant 0 : index
    %16 = vector.load %arg6[%c0_11, %c0_12, %c0_13] : memref<1x1x128xf32, #tpu.memory_space<vmem>>, vector<1x1x128xf32>
    tpu.vector_store %arg6[%c0_11, %c0_12, %c0_13], %15 {strides = array<i32>} : memref<1x1x128xf32, #tpu.memory_space<vmem>>, vector<1x1x128xf32>,
    %17 = arith.mulf %11, %11 : vector<512x128xf32>
    %cst_14 = arith.constant dense<0.000000e+00> : vector<128xf32>
    %18 = vector.multi_reduction <add>, %17, %cst_14 [0] : vector<512x128xf32> to vector<128xf32>
    %19 = vector.shape_cast %18 : vector<128xf32> to vector<1x128xf32>
    %20 = vector.shape_cast %19 : vector<1x128xf32> to vector<1x1x128xf32>
    %c0_15 = arith.constant 0 : index
    %c0_16 = arith.constant 0 : index
    %c0_17 = arith.constant 0 : index
    %21 = vector.load %arg7[%c0_15, %c0_16, %c0_17] : memref<1x1x128xf32, #tpu.memory_space<vmem>>, vector<1x1x128xf32>
    tpu.vector_store %arg7[%c0_15, %c0_16, %c0_17], %20 {strides = array<i32>} : memref<1x1x128xf32, #tpu.memory_space<vmem>>, vector<1x1x128xf32>,
    return
  }
  func.func @transform_0(%arg0: i32) -> (i32, i32) {
    %c0_i32 = arith.constant 0 : i32
    %c0_i32_0 = arith.constant 0 : i32
    return %arg0, %c0_i32 : i32, i32
  }
  func.func @transform_1(%arg0: i32) -> (i32, i32) {
    %c0_i32 = arith.constant 0 : i32
    %c0_i32_0 = arith.constant 0 : i32
    %c0_i32_1 = arith.constant 0 : i32
    return %c0_i32, %c0_i32_0 : i32, i32
  }
  func.func @transform_2(%arg0: i32) -> (i32, i32) {
    %c0_i32 = arith.constant 0 : i32
    %c0_i32_0 = arith.constant 0 : i32
    %c0_i32_1 = arith.constant 0 : i32
    return %c0_i32, %c0_i32_0 : i32, i32
  }
  func.func @transform_3(%arg0: i32) -> (i32, i32) {
    %c0_i32 = arith.constant 0 : i32
    %c0_i32_0 = arith.constant 0 : i32
    %c0_i32_1 = arith.constant 0 : i32
    return %c0_i32, %c0_i32_0 : i32, i32
  }
  func.func @transform_4(%arg0: i32) -> (i32, i32) {
    %c0_i32 = arith.constant 0 : i32
    %c0_i32_0 = arith.constant 0 : i32
    return %arg0, %c0_i32 : i32, i32
  }
  func.func @transform_5(%arg0: i32) -> (i32, i32, i32) {
    %c0_i32 = arith.constant 0 : i32
    %c0_i32_0 = arith.constant 0 : i32
    %c0_i32_1 = arith.constant 0 : i32
    return %arg0, %c0_i32, %c0_i32_0 : i32, i32, i32
  }
  func.func @transform_6(%arg0: i32) -> (i32, i32, i32) {
    %c0_i32 = arith.constant 0 : i32
    %c0_i32_0 = arith.constant 0 : i32
    %c0_i32_1 = arith.constant 0 : i32
    return %arg0, %c0_i32, %c0_i32_0 : i32, i32, i32
  }
}

</mosaic_0001>

<bundles_post_ra>
// kernel: decoder_block_forward.3
= control target key start
LH: loop header
LB: loop body
LE: loop exit
PB: predicated region body
PF: predicated region fallthrough
CT: control target
= control target key end

     0   :  { %s470_s1 = inlined_call_operand.vmem [shape: bf16[128,128], index: 1, kind: input, shape index: {}]   ;;  %s471_s2 = inlined_call_operand.vmem [shape: f32[1,128], index: 2, kind: input, shape index: {}, may-alias: {2,3}]   ;;  %s472_s3 = inlined_call_operand.vmem [shape: f32[1,128], index: 3, kind: input, shape index: {}, may-alias: {2,3}]   ;;  %s473_s0 = inlined_call_operand.vmem [shape: f32[128,128], index: 0, kind: input, shape index: {}]   ;;  %s474_s4 = inlined_call_operand.vmem [shape: f32[128,128], index: 4, kind: output, shape index: {0}]   ;;  %s475_s5 = inlined_call_operand.vmem [shape: f32[1,1,128], index: 5, kind: output, shape index: {1}]   ;;  %s476_s6 = inlined_call_operand.vmem [shape: f32[1,1,128], index: 6, kind: output, shape index: {2}]  }
   0x1   :  { %v284_v0 = vld [vmem:[%s470_s1 + $0x38] sm:$0xff]  ;;  %v283_v1 = vld [vmem:[%s470_s1 + $0x30] sm:$0xff]  ;;  %v282_v2 = vld [vmem:[%s470_s1 + $0x28] sm:$0xff] }
   0x2   :  { %108 = vmatpush.bf16.msra.mxu0 %v284_v0  ;;  %285 = vmatpush.bf16.msra.mxu1 %v284_v0  ;;  %v281_v3 = vld [vmem:[%s470_s1 + $0x20] sm:$0xff]  ;;  %v280_v4 = vld [vmem:[%s470_s1 + $0x18] sm:$0xff]  ;;  %v279_v5 = vld [vmem:[%s470_s1 + $0x10] sm:$0xff] }
   0x3   :  { %286 = vmatpush.bf16.msra.mxu2 %v284_v0  ;;  %287 = vmatpush.bf16.msra.mxu3 %v284_v0  ;;  %v278_v6 = vld [vmem:[%s470_s1 + $0x8] sm:$0xff]  ;;  %v277_v7 = vld [vmem:[%s470_s1] sm:$0xff]  ;;  %v22_v20 = vld [vmem:[%s473_s0 + $0x10] sm:$0xff] }
   0x4   :  { %v20_v8 = vld [vmem:[%s473_s0] sm:$0xff]  ;;  %v21_v9 = vld [vmem:[%s473_s0 + $0x8] sm:$0xff]  ;;  %v23_v21 = vld [vmem:[%s473_s0 + $0x18] sm:$0xff] }
   0x5   :  { %v24_v10 = vld [vmem:[%s473_s0 + $0x20] sm:$0xff]  ;;  %v25_v11 = vld [vmem:[%s473_s0 + $0x28] sm:$0xff]  ;;  %v36_v16 = vpack.c.bf16 %v21_v9, %v20_v8  ;;  %v26_v22 = vld [vmem:[%s473_s0 + $0x30] sm:$0xff]  ;;  %v37_v28 = vpack.c.bf16 %v23_v21, %v22_v20 }
   0x6   :  { %109 = vmatpush.bf16.msra.mxu0 %v283_v1  ;;  %288 = vmatpush.bf16.msra.mxu1 %v283_v1  ;;  %v28_v12 = vld [vmem:[%s473_s0 + $0x40] sm:$0xff]  ;;  %v29_v13 = vld [vmem:[%s473_s0 + $0x48] sm:$0xff]  ;;  %v38_v17 = vpack.c.bf16 %v25_v11, %v24_v10  ;;  %v27_v23 = vld [vmem:[%s473_s0 + $0x38] sm:$0xff] }
   0x7   :  { %289 = vmatpush.bf16.msra.mxu2 %v283_v1  ;;  %290 = vmatpush.bf16.msra.mxu3 %v283_v1  ;;  %v32_v14 = vld [vmem:[%s473_s0 + $0x60] sm:$0xff]  ;;  %v33_v15 = vld [vmem:[%s473_s0 + $0x68] sm:$0xff]  ;;  %v40_v18 = vpack.c.bf16 %v29_v13, %v28_v12  ;;  %v30_v24 = vld [vmem:[%s473_s0 + $0x50] sm:$0xff]  ;;  %v39_v29 = vpack.c.bf16 %v27_v23, %v26_v22 }
   0x8   :  { %v42_v19 = vpack.c.bf16 %v33_v15, %v32_v14  ;;  %v31_v25 = vld [vmem:[%s473_s0 + $0x58] sm:$0xff]  ;;  %v34_v26 = vld [vmem:[%s473_s0 + $0x70] sm:$0xff] }
   0x9   :  { %v35_v27 = vld [vmem:[%s473_s0 + $0x78] sm:$0xff]  ;;  %v41_v30 = vpack.c.bf16 %v31_v25, %v30_v24 }
   0xa   :  { %110 = vmatpush.bf16.msra.mxu0 %v282_v2  ;;  %291 = vmatpush.bf16.msra.mxu1 %v282_v2  ;;  %v43_v31 = vpack.c.bf16 %v35_v27, %v34_v26 }
   0xb   :  { %292 = vmatpush.bf16.msra.mxu2 %v282_v2  ;;  %293 = vmatpush.bf16.msra.mxu3 %v282_v2 }
   0xe   :  { %111 = vmatpush.bf16.msra.mxu0 %v281_v3  ;;  %294 = vmatpush.bf16.msra.mxu1 %v281_v3 }
   0xf   :  { %295 = vmatpush.bf16.msra.mxu2 %v281_v3  ;;  %296 = vmatpush.bf16.msra.mxu3 %v281_v3 }
  0x12   :  { %112 = vmatpush.bf16.msra.mxu0 %v280_v4  ;;  %297 = vmatpush.bf16.msra.mxu1 %v280_v4 }
  0x13   :  { %298 = vmatpush.bf16.msra.mxu2 %v280_v4  ;;  %299 = vmatpush.bf16.msra.mxu3 %v280_v4 }
  0x16   :  { %113 = vmatpush.bf16.msra.mxu0 %v279_v5  ;;  %300 = vmatpush.bf16.msra.mxu1 %v279_v5 }
  0x17   :  { %301 = vmatpush.bf16.msra.mxu2 %v279_v5  ;;  %302 = vmatpush.bf16.msra.mxu3 %v279_v5 }
  0x1a   :  { %114 = vmatpush.bf16.msra.mxu0 %v278_v6  ;;  %303 = vmatpush.bf16.msra.mxu1 %v278_v6 }
  0x1b   :  { %304 = vmatpush.bf16.msra.mxu2 %v278_v6  ;;  %305 = vmatpush.bf16.msra.mxu3 %v278_v6 }
  0x1e   :  { %115 = vmatpush.bf16.msra.mxu0 %v277_v7  ;;  %306 = vmatpush.bf16.msra.mxu1 %v277_v7 }
  0x1f   :  { %307 = vmatpush.bf16.msra.mxu2 %v277_v7  ;;  %308 = vmatpush.bf16.msra.mxu3 %v277_v7 }
  0x21   :  { %116 = vmatmul.bf16.vlgmr.msra.gmra.mxu0 %v36_v16  ;;  %126 = vmatmul.bf16.vlgmr.msra.gmra.mxu1 %v38_v17 }
  0x22   :  { %136 = vmatmul.bf16.vlgmr.msra.gmra.mxu2 %v40_v18  ;;  %146 = vmatmul.bf16.vlgmr.msra.gmra.mxu3 %v42_v19 }
  0x31   :  { %121 = vmatmul.bf16.gmra.mxu0 %v37_v28  ;;  %131 = vmatmul.bf16.gmra.mxu1 %v39_v29 }
  0x32   :  { %141 = vmatmul.bf16.gmra.mxu2 %v41_v30  ;;  %151 = vmatmul.bf16.gmra.mxu3 %v43_v31 }
  0x9e   :  { %v117_v32 = vpop.f32.mrf.mxu0  ;;  %v127_v33 = vpop.f32.mrf.mxu1 }
  0x9f   :  { %157 = vst [vmem:[%s474_s4] sm:$0xff] %v117_v32  ;;  %v195_v43 = vmul.f32 %v117_v32, %v117_v32  ;;  %v199_v55 = vmul.f32 %v127_v33, %v127_v33 }
  0xa0   :  { %161 = vst [vmem:[%s474_s4 + $0x20] sm:$0xff] %v127_v33 }
  0xa5   :  { %v137_v34 = vpop.f32.mrf.mxu2  ;;  %v147_v35 = vpop.f32.mrf.mxu3 }
  0xa6   :  { %v119_v36 = vpop.f32.mrf.mxu0  ;;  %v129_v37 = vpop.f32.mrf.mxu1  ;;  %165 = vst [vmem:[%s474_s4 + $0x40] sm:$0xff] %v137_v34  ;;  %v203_v5 = vmul.f32 %v137_v34, %v137_v34  ;;  %v207_v17 = vmul.f32 %v147_v35, %v147_v35 }
  0xa7   :  { %158 = vst [vmem:[%s474_s4 + $0x8] sm:$0xff] %v119_v36  ;;  %v196_v42 = vmul.f32 %v119_v36, %v119_v36  ;;  %v173_v44 = vadd.f32 %v119_v36, %v117_v32  ;;  %v200_v58 = vmul.f32 %v129_v37, %v129_v37 }
  0xa8   :  { %162 = vst [vmem:[%s474_s4 + $0x28] sm:$0xff] %v129_v37 }
  0xa9   :  { %169 = vst [vmem:[%s474_s4 + $0x60] sm:$0xff] %v147_v35  ;;  %v211_v46 = vadd.f32 %v196_v42, %v195_v43 }
  0xad   :  { %v139_v38 = vpop.f32.mrf.mxu2  ;;  %v149_v39 = vpop.f32.mrf.mxu3 }
  0xae   :  { %v122_v40 = vpop.f32.mrf.mxu0  ;;  %v132_v41 = vpop.f32.mrf.mxu1  ;;  %166 = vst [vmem:[%s474_s4 + $0x48] sm:$0xff] %v139_v38  ;;  %v204_v8 = vmul.f32 %v139_v38, %v139_v38  ;;  %v208_v20 = vmul.f32 %v149_v39, %v149_v39 }
  0xaf   :  { %159 = vst [vmem:[%s474_s4 + $0x10] sm:$0xff] %v122_v40  ;;  %v197_v45 = vmul.f32 %v122_v40, %v122_v40  ;;  %v174_v47 = vadd.f32 %v173_v44, %v122_v40  ;;  %v201_v61 = vmul.f32 %v132_v41, %v132_v41 }
  0xb0   :  { %163 = vst [vmem:[%s474_s4 + $0x30] sm:$0xff] %v132_v41 }
  0xb1   :  { %170 = vst [vmem:[%s474_s4 + $0x68] sm:$0xff] %v149_v39  ;;  %v212_v52 = vadd.f32 %v211_v46, %v197_v45 }
  0xb5   :  { %v142_v48 = vpop.f32.mrf.mxu2  ;;  %v152_v49 = vpop.f32.mrf.mxu3 }
  0xb6   :  { %v124_v50 = vpop.f32.mrf.mxu0  ;;  %v134_v51 = vpop.f32.mrf.mxu1  ;;  %167 = vst [vmem:[%s474_s4 + $0x50] sm:$0xff] %v142_v48  ;;  %v205_v12 = vmul.f32 %v142_v48, %v142_v48  ;;  %v209_v24 = vmul.f32 %v152_v49, %v152_v49 }
  0xb7   :  { %160 = vst [vmem:[%s474_s4 + $0x18] sm:$0xff] %v124_v50  ;;  %v175_v53 = vadd.f32 %v174_v47, %v124_v50  ;;  %v198_v54 = vmul.f32 %v124_v50, %v124_v50  ;;  %v202_v3 = vmul.f32 %v134_v51, %v134_v51 }
  0xb8   :  { %164 = vst [vmem:[%s474_s4 + $0x38] sm:$0xff] %v134_v51 }
  0xb9   :  { %v176_v56 = vadd.f32 %v175_v53, %v127_v33  ;;  %v213_v57 = vadd.f32 %v212_v52, %v198_v54  ;;  %171 = vst [vmem:[%s474_s4 + $0x70] sm:$0xff] %v152_v49 }
  0xbb   :  { %v214_v59 = vadd.f32 %v213_v57, %v199_v55  ;;  %v177_v60 = vadd.f32 %v176_v56, %v129_v37 }
  0xbd   :  { %v178_v62 = vadd.f32 %v177_v60, %v132_v41  ;;  %v215_v63 = vadd.f32 %v214_v59, %v200_v58  ;;  %v144_v0 = vpop.f32.mrf.mxu2  ;;  %v154_v1 = vpop.f32.mrf.mxu3 }
  0xbe   :  { %168 = vst [vmem:[%s474_s4 + $0x58] sm:$0xff] %v144_v0  ;;  %v206_v16 = vmul.f32 %v144_v0, %v144_v0  ;;  %v210_v28 = vmul.f32 %v154_v1, %v154_v1 }
  0xbf   :  { %v179_v2 = vadd.f32 %v178_v62, %v134_v51  ;;  %v216_v4 = vadd.f32 %v215_v63, %v201_v61  ;;  %172 = vst [vmem:[%s474_s4 + $0x78] sm:$0xff] %v154_v1 }
  0xc1   :  { %v180_v6 = vadd.f32 %v179_v2, %v137_v34  ;;  %v217_v7 = vadd.f32 %v216_v4, %v202_v3 }
  0xc3   :  { %v218_v9 = vadd.f32 %v217_v7, %v203_v5  ;;  %v181_v10 = vadd.f32 %v180_v6, %v139_v38 }
  0xc5   :  { %v182_v11 = vadd.f32 %v181_v10, %v142_v48  ;;  %v219_v13 = vadd.f32 %v218_v9, %v204_v8 }
  0xc7   :  { %v220_v14 = vadd.f32 %v219_v13, %v205_v12  ;;  %v183_v15 = vadd.f32 %v182_v11, %v144_v0 }
  0xc9   :  { %v184_v18 = vadd.f32 %v183_v15, %v147_v35  ;;  %v221_v19 = vadd.f32 %v220_v14, %v206_v16 }
  0xcb   :  { %v222_v21 = vadd.f32 %v221_v19, %v207_v17  ;;  %v185_v22 = vadd.f32 %v184_v18, %v149_v39 }
  0xcd   :  { %v186_v23 = vadd.f32 %v185_v22, %v152_v49  ;;  %v223_v25 = vadd.f32 %v222_v21, %v208_v20 }
  0xcf   :  { %v224_v26 = vadd.f32 %v223_v25, %v209_v24  ;;  %v187_v27 = vadd.f32 %v186_v23, %v154_v1 }
  0xd1   :  { %v188_v29 = vrot.slane %v187_v27, 4  ;;  %v225_v30 = vadd.f32 %v224_v26, %v210_v28 }
  0xd3   :  { %v189_v31 = vadd.f32 %v188_v29, %v187_v27  ;;  %v226_v32 = vrot.slane %v225_v30, 4 }
  0xd5   :  { %v190_v33 = vrot.slane %v189_v31, 2  ;;  %v227_v34 = vadd.f32 %v226_v32, %v225_v30 }
  0xd7   :  { %v191_v36 = vadd.f32 %v190_v33, %v189_v31  ;;  %v228_v37 = vrot.slane %v227_v34, 2 }
  0xd9   :  { %v192_v38 = vrot.slane %v191_v36, 1  ;;  %v229_v35 = vadd.f32 %v228_v37, %v227_v34 }
  0xdb   :  { %v193_v40 = vadd.f32 %v192_v38, %v191_v36  ;;  %v230_v41 = vrot.slane %v229_v35, 1 }
  0xdd   :  { %194 = vst [vmem:[%s475_s5] sm:$0x1] %v193_v40  ;;  %v231_v39 = vadd.f32 %v230_v41, %v229_v35 }
  0xdf   :  { %232 = vst [vmem:[%s476_s6] sm:$0x1] %v231_v39 }

// kernel: decoder_block_forward.5
= control target key start
LH: loop header
LB: loop body
LE: loop exit
PB: predicated region body
PF: predicated region fallthrough
CT: control target
= control target key end

     0   :  { %s1770_s1 = inlined_call_operand.vmem [shape: bf16[128,128], index: 1, kind: input, shape index: {}]   ;;  %s1771_s2 = inlined_call_operand.vmem [shape: f32[1,128], index: 2, kind: input, shape index: {}]   ;;  %s1772_s3 = inlined_call_operand.vmem [shape: f32[1,128], index: 3, kind: input, shape index: {}]   ;;  %s1773_s0 = inlined_call_operand.vmem [shape: f32[512,128], index: 0, kind: input, shape index: {}]   ;;  %s1774_s4 = inlined_call_operand.vmem [shape: f32[512,128], index: 4, kind: output, shape index: {0}]   ;;  %s1775_s5 = inlined_call_operand.vmem [shape: f32[1,1,128], index: 5, kind: output, shape index: {1}]   ;;  %s1776_s6 = inlined_call_operand.vmem [shape: f32[1,1,128], index: 6, kind: output, shape index: {2}]  }
   0x1   :  { %v868_v0 = vld [vmem:[%s1770_s1 + $0x38] sm:$0xff]  ;;  %v867_v1 = vld [vmem:[%s1770_s1 + $0x30] sm:$0xff]  ;;  %v866_v2 = vld [vmem:[%s1770_s1 + $0x28] sm:$0xff] }
   0x2   :  { %380 = vmatpush.bf16.msra.mxu0 %v868_v0  ;;  %869 = vmatpush.bf16.msra.mxu1 %v868_v0  ;;  %v865_v3 = vld [vmem:[%s1770_s1 + $0x20] sm:$0xff]  ;;  %v864_v5 = vld [vmem:[%s1770_s1 + $0x18] sm:$0xff]  ;;  %v21_v7 = vld [vmem:[%s1773_s0 + $0x8] sm:$0xff] }
   0x3   :  { %870 = vmatpush.bf16.msra.mxu2 %v868_v0  ;;  %871 = vmatpush.bf16.msra.mxu3 %v868_v0  ;;  %v945_v4 = vld [vmem:[%s1771_s2] ss:$0 sm:$0xff]  ;;  %v37_v9 = vld [vmem:[%s1773_s0 + $0x88] sm:$0xff]  ;;  %v863_v15 = vld [vmem:[%s1770_s1 + $0x10] sm:$0xff] }
   0x4   :  { %v20_v6 = vld [vmem:[%s1773_s0] sm:$0xff]  ;;  %v89_v11 = vmul.f32 %v945_v4, %v21_v7  ;;  %v105_v14 = vmul.f32 %v945_v4, %v37_v9  ;;  %v862_v20 = vld [vmem:[%s1770_s1 + $0x8] sm:$0xff]  ;;  %v22_v27 = vld [vmem:[%s1773_s0 + $0x10] sm:$0xff] }
   0x5   :  { %v36_v8 = vld [vmem:[%s1773_s0 + $0x80] sm:$0xff]  ;;  %v88_v10 = vmul.f32 %v945_v4, %v20_v6  ;;  %v23_v29 = vld [vmem:[%s1773_s0 + $0x18] sm:$0xff]  ;;  %v90_v30 = vmul.f32 %v945_v4, %v22_v27  ;;  %v38_v31 = vld [vmem:[%s1773_s0 + $0x90] sm:$0xff] }
   0x6   :  { %381 = vmatpush.bf16.msra.mxu0 %v867_v1  ;;  %872 = vmatpush.bf16.msra.mxu1 %v867_v1  ;;  %v967_v12 = vld [vmem:[%s1772_s3] ss:$0 sm:$0xff]  ;;  %v104_v13 = vmul.f32 %v945_v4, %v36_v8  ;;  %v39_v32 = vld [vmem:[%s1773_s0 + $0x98] sm:$0xff]  ;;  %v91_v33 = vmul.f32 %v945_v4, %v23_v29  ;;  %v106_v34 = vmul.f32 %v945_v4, %v38_v31  ;;  %v53_v45 = vld [vmem:[%s1773_s0 + $0x108] sm:$0xff] }
   0x7   :  { %873 = vmatpush.bf16.msra.mxu2 %v867_v1  ;;  %874 = vmatpush.bf16.msra.mxu3 %v867_v1  ;;  %v156_v16 = vadd.f32 %v967_v12, %v88_v10  ;;  %v157_v17 = vadd.f32 %v967_v12, %v89_v11  ;;  %v173_v19 = vadd.f32 %v967_v12, %v105_v14  ;;  %v861_v25 = vld [vmem:[%s1770_s1] sm:$0xff]  ;;  %v25_v50 = vld [vmem:[%s1773_s0 + $0x28] sm:$0xff]  ;;  %v54_v8 = vld [vmem:[%s1773_s0 + $0x110] sm:$0xff] }
   0x8   :  { %v172_v18 = vadd.f32 %v967_v12, %v104_v13  ;;  %v107_v35 = vmul.f32 %v945_v4, %v39_v32  ;;  %v158_v36 = vadd.f32 %v967_v12, %v90_v30  ;;  %v159_v37 = vadd.f32 %v967_v12, %v91_v33  ;;  %v52_v44 = vld [vmem:[%s1773_s0 + $0x100] sm:$0xff]  ;;  %v41_v59 = vld [vmem:[%s1773_s0 + $0xa8] sm:$0xff]  ;;  %v55_v9 = vld [vmem:[%s1773_s0 + $0x118] sm:$0xff] }
   0x9   :  { %v220_v21 = vmax.f32 %v156_v16, 0.0  ;;  %v221_v22 = vmax.f32 %v157_v17, 0.0  ;;  %v237_v24 = vmax.f32 %v173_v19, 0.0  ;;  %v174_v38 = vadd.f32 %v967_v12, %v106_v34  ;;  %v24_v49 = vld [vmem:[%s1773_s0 + $0x20] sm:$0xff]  ;;  %v26_v14 = vld [vmem:[%s1773_s0 + $0x30] sm:$0xff] }
   0xa   :  { %382 = vmatpush.bf16.msra.mxu0 %v866_v2  ;;  %875 = vmatpush.bf16.msra.mxu1 %v866_v2  ;;  %v236_v23 = vmax.f32 %v172_v18, 0.0  ;;  %v175_v39 = vadd.f32 %v967_v12, %v107_v35  ;;  %v222_v40 = vmax.f32 %v158_v36, 0.0  ;;  %v223_v41 = vmax.f32 %v159_v37, 0.0  ;;  %v40_v58 = vld [vmem:[%s1773_s0 + $0xa0] sm:$0xff]  ;;  %v57_v37 = vld [vmem:[%s1773_s0 + $0x128] sm:$0xff] }
   0xb   :  { %876 = vmatpush.bf16.msra.mxu2 %v866_v2  ;;  %877 = vmatpush.bf16.msra.mxu3 %v866_v2  ;;  %v284_v26 = vpack.c.bf16 %v221_v22, %v220_v21  ;;  %v238_v42 = vmax.f32 %v174_v38, 0.0  ;;  %v120_v46 = vmul.f32 %v945_v4, %v52_v44  ;;  %v121_v47 = vmul.f32 %v945_v4, %v53_v45  ;;  %v56_v36 = vld [vmem:[%s1773_s0 + $0x120] sm:$0xff] }
   0xc   :  { %v292_v28 = vpack.c.bf16 %v237_v24, %v236_v23  ;;  %v239_v43 = vmax.f32 %v175_v39, 0.0  ;;  %v285_v48 = vpack.c.bf16 %v223_v41, %v222_v40  ;;  %v92_v56 = vmul.f32 %v945_v4, %v24_v49  ;;  %v42_v23 = vld [vmem:[%s1773_s0 + $0xb0] sm:$0xff]  ;;  %v43_v24 = vld [vmem:[%s1773_s0 + $0xb8] sm:$0xff]  ;;  %v68_v38 = vld [vmem:[%s1773_s0 + $0x180] sm:$0xff] }
   0xd   :  { %v188_v52 = vadd.f32 %v967_v12, %v120_v46  ;;  %v189_v53 = vadd.f32 %v967_v12, %v121_v47  ;;  %v93_v57 = vmul.f32 %v945_v4, %v25_v50  ;;  %v108_v61 = vmul.f32 %v945_v4, %v40_v58  ;;  %v69_v41 = vld [vmem:[%s1773_s0 + $0x188] sm:$0xff]  ;;  %v28_v45 = vld [vmem:[%s1773_s0 + $0x40] sm:$0xff] }
   0xe   :  { %383 = vmatpush.bf16.msra.mxu0 %v865_v3  ;;  %878 = vmatpush.bf16.msra.mxu1 %v865_v3  ;;  %v293_v51 = vpack.c.bf16 %v239_v43, %v238_v42  ;;  %v109_v62 = vmul.f32 %v945_v4, %v41_v59  ;;  %v160_v63 = vadd.f32 %v967_v12, %v92_v56  ;;  %v29_v46 = vld [vmem:[%s1773_s0 + $0x48] sm:$0xff]  ;;  %v44_v58 = vld [vmem:[%s1773_s0 + $0xc0] sm:$0xff] }
   0xf   :  { %879 = vmatpush.bf16.msra.mxu2 %v865_v3  ;;  %880 = vmatpush.bf16.msra.mxu3 %v865_v3  ;;  %v252_v54 = vmax.f32 %v188_v52, 0.0  ;;  %v253_v55 = vmax.f32 %v189_v53, 0.0  ;;  %v161_v0 = vadd.f32 %v967_v12, %v93_v57  ;;  %v176_v1 = vadd.f32 %v967_v12, %v108_v61  ;;  %v45_v59 = vld [vmem:[%s1773_s0 + $0xc8] sm:$0xff] }
  0x10   :  { %v177_v2 = vadd.f32 %v967_v12, %v109_v62  ;;  %v224_v3 = vmax.f32 %v160_v63, 0.0  ;;  %v122_v10 = vmul.f32 %v945_v4, %v54_v8  ;;  %v123_v11 = vmul.f32 %v945_v4, %v55_v9  ;;  %v58_v9 = vld [vmem:[%s1773_s0 + $0x130] sm:$0xff] }
  0x11   :  { %v300_v60 = vpack.c.bf16 %v253_v55, %v252_v54  ;;  %v240_v6 = vmax.f32 %v176_v1, 0.0  ;;  %v94_v21 = vmul.f32 %v945_v4, %v26_v14  ;;  %v111_v27 = vmul.f32 %v945_v4, %v43_v24 }
  0x12   :  { %384 = vmatpush.bf16.msra.mxu0 %v864_v5  ;;  %881 = vmatpush.bf16.msra.mxu1 %v864_v5  ;;  %v241_v7 = vmax.f32 %v177_v2, 0.0  ;;  %v190_v17 = vadd.f32 %v967_v12, %v122_v10  ;;  %v191_v18 = vadd.f32 %v967_v12, %v123_v11  ;;  %v124_v39 = vmul.f32 %v945_v4, %v56_v36  ;;  %v59_v10 = vld [vmem:[%s1773_s0 + $0x138] sm:$0xff]  ;;  %v70_v11 = vld [vmem:[%s1773_s0 + $0x190] sm:$0xff] }
  0x13   :  { %882 = vmatpush.bf16.msra.mxu2 %v864_v5  ;;  %883 = vmatpush.bf16.msra.mxu3 %v864_v5  ;;  %v225_v5 = vmax.f32 %v161_v0, 0.0  ;;  %v179_v31 = vadd.f32 %v967_v12, %v111_v27  ;;  %v125_v40 = vmul.f32 %v945_v4, %v57_v37  ;;  %v136_v42 = vmul.f32 %v945_v4, %v68_v38 }
  0x14   :  { %v294_v16 = vpack.c.bf16 %v241_v7, %v240_v6  ;;  %v254_v19 = vmax.f32 %v190_v17, 0.0  ;;  %v137_v44 = vmul.f32 %v945_v4, %v69_v41  ;;  %v96_v55 = vmul.f32 %v945_v4, %v28_v45 }
  0x15   :  { %v286_v13 = vpack.c.bf16 %v225_v5, %v224_v3  ;;  %v243_v35 = vmax.f32 %v179_v31, 0.0  ;;  %v193_v49 = vadd.f32 %v967_v12, %v125_v40  ;;  %v204_v50 = vadd.f32 %v967_v12, %v136_v42 }
  0x16   :  { %385 = vmatpush.bf16.msra.mxu0 %v863_v15  ;;  %884 = vmatpush.bf16.msra.mxu1 %v863_v15  ;;  %v97_v56 = vmul.f32 %v945_v4, %v29_v46  ;;  %v112_v61 = vmul.f32 %v945_v4, %v44_v58  ;;  %v113_v62 = vmul.f32 %v945_v4, %v45_v59  ;;  %v60_v46 = vld [vmem:[%s1773_s0 + $0x140] sm:$0xff] }
  0x17   :  { %885 = vmatpush.bf16.msra.mxu2 %v863_v15  ;;  %886 = vmatpush.bf16.msra.mxu3 %v863_v15  ;;  %v27_v15 = vld [vmem:[%s1773_s0 + $0x38] sm:$0xff]  ;;  %v257_v53 = vmax.f32 %v193_v49, 0.0  ;;  %v268_v54 = vmax.f32 %v204_v50, 0.0  ;;  %v164_v0 = vadd.f32 %v967_v12, %v96_v55  ;;  %v127_v14 = vmul.f32 %v945_v4, %v59_v10  ;;  %v32_v55 = vld [vmem:[%s1773_s0 + $0x60] sm:$0xff] }
  0x18   :  { %v95_v22 = vmul.f32 %v945_v4, %v27_v15  ;;  %v165_v1 = vadd.f32 %v967_v12, %v97_v56  ;;  %v180_v2 = vadd.f32 %v967_v12, %v112_v61  ;;  %v181_v3 = vadd.f32 %v967_v12, %v113_v62  ;;  %v71_v15 = vld [vmem:[%s1773_s0 + $0x198] sm:$0xff]  ;;  %v33_v56 = vld [vmem:[%s1773_s0 + $0x68] sm:$0xff] }
  0x19   :  { %v228_v5 = vmax.f32 %v164_v0, 0.0  ;;  %v128_v49 = vmul.f32 %v945_v4, %v60_v46 }
  0x1a   :  { %386 = vmatpush.bf16.msra.mxu0 %v862_v20  ;;  %887 = vmatpush.bf16.msra.mxu1 %v862_v20  ;;  %v163_v29 = vadd.f32 %v967_v12, %v95_v22  ;;  %v229_v6 = vmax.f32 %v165_v1, 0.0  ;;  %v244_v7 = vmax.f32 %v180_v2, 0.0  ;;  %v245_v8 = vmax.f32 %v181_v3, 0.0 }
  0x1b   :  { %888 = vmatpush.bf16.msra.mxu2 %v862_v20  ;;  %889 = vmatpush.bf16.msra.mxu3 %v862_v20  ;;  %v255_v20 = vmax.f32 %v191_v18, 0.0  ;;  %v139_v18 = vmul.f32 %v945_v4, %v71_v15  ;;  %v196_v58 = vadd.f32 %v967_v12, %v128_v49  ;;  %v100_v1 = vmul.f32 %v945_v4, %v32_v55 }
  0x1c   :  { %v227_v33 = vmax.f32 %v163_v29, 0.0  ;;  %v288_v17 = vpack.c.bf16 %v229_v6, %v228_v5  ;;  %v101_v2 = vmul.f32 %v945_v4, %v33_v56  ;;  %v48_v5 = vld [vmem:[%s1773_s0 + $0xe0] sm:$0xff]  ;;  %v49_v6 = vld [vmem:[%s1773_s0 + $0xe8] sm:$0xff] }
  0x1d   :  { %v260_v62 = vmax.f32 %v196_v58, 0.0  ;;  %v64_v56 = vld [vmem:[%s1773_s0 + $0x160] sm:$0xff] }
  0x1e   :  { %387 = vmatpush.bf16.msra.mxu0 %v861_v25  ;;  %890 = vmatpush.bf16.msra.mxu1 %v861_v25  ;;  %v76_v58 = vld [vmem:[%s1773_s0 + $0x1c0] sm:$0xff] }
  0x1f   :  { %891 = vmatpush.bf16.msra.mxu2 %v861_v25  ;;  %892 = vmatpush.bf16.msra.mxu3 %v861_v25  ;;  %v301_v25 = vpack.c.bf16 %v255_v20, %v254_v19  ;;  %v30_v19 = vld [vmem:[%s1773_s0 + $0x50] sm:$0xff]  ;;  %v31_v20 = vld [vmem:[%s1773_s0 + $0x58] sm:$0xff] }
  0x20   :  { %v98_v29 = vmul.f32 %v945_v4, %v30_v19 }
  0x21   :  { %388 = vmatmul.bf16.vlgmr.msra.gmra.mxu0 %v284_v26  ;;  %428 = vmatmul.bf16.vlgmr.msra.gmra.mxu1 %v292_v28  ;;  %v110_v26 = vmul.f32 %v945_v4, %v42_v23  ;;  %v162_v28 = vadd.f32 %v967_v12, %v94_v21  ;;  %v296_v21 = vpack.c.bf16 %v245_v8, %v244_v7 }
  0x22   :  { %468 = vmatmul.bf16.vlgmr.msra.gmra.mxu2 %v300_v60  ;;  %v195_v23 = vadd.f32 %v967_v12, %v127_v14  ;;  %v166_v38 = vadd.f32 %v967_v12, %v98_v29  ;;  %v116_v8 = vmul.f32 %v945_v4, %v48_v5  ;;  %v34_v29 = vld [vmem:[%s1773_s0 + $0x70] sm:$0xff] }
  0x23   :  { %v178_v30 = vadd.f32 %v967_v12, %v110_v26  ;;  %v226_v32 = vmax.f32 %v162_v28, 0.0 }
  0x24   :  { %v259_v27 = vmax.f32 %v195_v23, 0.0  ;;  %v230_v42 = vmax.f32 %v166_v38, 0.0  ;;  %v184_v14 = vadd.f32 %v967_v12, %v116_v8 }
  0x25   :  { %v242_v34 = vmax.f32 %v178_v30, 0.0  ;;  %v287_v43 = vpack.c.bf16 %v227_v33, %v226_v32  ;;  %v99_v30 = vmul.f32 %v945_v4, %v31_v20  ;;  %v46_v32 = vld [vmem:[%s1773_s0 + $0xd0] sm:$0xff]  ;;  %v47_v33 = vld [vmem:[%s1773_s0 + $0xd8] sm:$0xff] }
  0x26   :  { %v115_v36 = vmul.f32 %v945_v4, %v47_v33  ;;  %v62_v20 = vld [vmem:[%s1773_s0 + $0x150] sm:$0xff] }
  0x27   :  { %v295_v47 = vpack.c.bf16 %v243_v35, %v242_v34  ;;  %v114_v35 = vmul.f32 %v945_v4, %v46_v32  ;;  %v130_v23 = vmul.f32 %v945_v4, %v62_v20 }
  0x28   :  { %v183_v41 = vadd.f32 %v967_v12, %v115_v36 }
  0x29   :  { %v182_v40 = vadd.f32 %v967_v12, %v114_v35  ;;  %v198_v32 = vadd.f32 %v967_v12, %v130_v23 }
  0x2a   :  { %v247_v45 = vmax.f32 %v183_v41, 0.0 }
  0x2b   :  { %v262_v36 = vmax.f32 %v198_v32, 0.0 }
  0x31   :  { %393 = vmatmul.bf16.gmra.mxu0 %v285_v48  ;;  %433 = vmatmul.bf16.gmra.mxu1 %v293_v51  ;;  %v192_v48 = vadd.f32 %v967_v12, %v124_v39  ;;  %v205_v51 = vadd.f32 %v967_v12, %v137_v44  ;;  %v167_v39 = vadd.f32 %v967_v12, %v99_v30  ;;  %v246_v44 = vmax.f32 %v182_v40, 0.0  ;;  %v35_v30 = vld [vmem:[%s1773_s0 + $0x78] sm:$0xff] }
  0x32   :  { %473 = vmatmul.bf16.gmra.mxu2 %v301_v25  ;;  %v207_v25 = vadd.f32 %v967_v12, %v139_v18  ;;  %v248_v18 = vmax.f32 %v184_v14, 0.0  ;;  %v103_v40 = vmul.f32 %v945_v4, %v35_v30  ;;  %v66_v14 = vld [vmem:[%s1773_s0 + $0x170] sm:$0xff] }
  0x33   :  { %v256_v52 = vmax.f32 %v192_v48, 0.0  ;;  %v269_v57 = vmax.f32 %v205_v51, 0.0  ;;  %v72_v48 = vld [vmem:[%s1773_s0 + $0x1a0] sm:$0xff]  ;;  %v73_v51 = vld [vmem:[%s1773_s0 + $0x1a8] sm:$0xff] }
  0x34   :  { %v271_v31 = vmax.f32 %v207_v25, 0.0  ;;  %v75_v25 = vld [vmem:[%s1773_s0 + $0x1b8] sm:$0xff]  ;;  %v171_v49 = vadd.f32 %v967_v12, %v103_v40  ;;  %v80_v40 = vld [vmem:[%s1773_s0 + $0x1e0] sm:$0xff] }
  0x35   :  { %v302_v60 = vpack.c.bf16 %v257_v53, %v256_v52  ;;  %v308_v63 = vpack.c.bf16 %v269_v57, %v268_v54  ;;  %v140_v52 = vmul.f32 %v945_v4, %v72_v48  ;;  %v141_v54 = vmul.f32 %v945_v4, %v73_v51 }
  0x36   :  { %v297_v57 = vpack.c.bf16 %v247_v45, %v246_v44 }
  0x37   :  { %508 = vmatmul.bf16.vlgmr.msra.gmra.mxu3 %v308_v63  ;;  %v209_v61 = vadd.f32 %v967_v12, %v141_v54 }
  0x39   :  { %v273_v3 = vmax.f32 %v209_v61, 0.0  ;;  %v77_v61 = vld [vmem:[%s1773_s0 + $0x1c8] sm:$0xff] }
  0x41   :  { %398 = vmatmul.bf16.gmra.mxu0 %v286_v13  ;;  %438 = vmatmul.bf16.gmra.mxu1 %v294_v16  ;;  %v126_v13 = vmul.f32 %v945_v4, %v58_v9  ;;  %v138_v16 = vmul.f32 %v945_v4, %v70_v11  ;;  %v117_v9 = vmul.f32 %v945_v4, %v49_v6 }
  0x42   :  { %478 = vmatmul.bf16.gmra.mxu2 %v302_v60  ;;  %v208_v60 = vadd.f32 %v967_v12, %v140_v52  ;;  %v168_v11 = vadd.f32 %v967_v12, %v100_v1 }
  0x43   :  { %v194_v22 = vadd.f32 %v967_v12, %v126_v13  ;;  %v206_v24 = vadd.f32 %v967_v12, %v138_v16  ;;  %v169_v13 = vadd.f32 %v967_v12, %v101_v2  ;;  %v185_v15 = vadd.f32 %v967_v12, %v117_v9 }
  0x44   :  { %v272_v0 = vmax.f32 %v208_v60, 0.0  ;;  %v232_v16 = vmax.f32 %v168_v11, 0.0 }
  0x45   :  { %v258_v26 = vmax.f32 %v194_v22, 0.0  ;;  %v270_v28 = vmax.f32 %v206_v24, 0.0  ;;  %v249_v19 = vmax.f32 %v185_v15, 0.0  ;;  %v74_v22 = vld [vmem:[%s1773_s0 + $0x1b0] sm:$0xff]  ;;  %v67_v15 = vld [vmem:[%s1773_s0 + $0x178] sm:$0xff] }
  0x46   :  { %v310_v10 = vpack.c.bf16 %v273_v3, %v272_v0  ;;  %v145_v0 = vmul.f32 %v945_v4, %v77_v61  ;;  %v83_v61 = vld [vmem:[%s1773_s0 + $0x1f8] sm:$0xff] }
  0x47   :  { %v303_v34 = vpack.c.bf16 %v259_v27, %v258_v26  ;;  %v309_v37 = vpack.c.bf16 %v271_v31, %v270_v28  ;;  %v142_v26 = vmul.f32 %v945_v4, %v74_v22  ;;  %v143_v28 = vmul.f32 %v945_v4, %v75_v25 }
  0x48   :  { %v298_v31 = vpack.c.bf16 %v249_v19, %v248_v18  ;;  %v213_v6 = vadd.f32 %v967_v12, %v145_v0  ;;  %v135_v18 = vmul.f32 %v945_v4, %v67_v15  ;;  %v79_v19 = vld [vmem:[%s1773_s0 + $0x1d8] sm:$0xff] }
  0x49   :  { %513 = vmatmul.bf16.gmra.mxu3 %v309_v37  ;;  %v211_v35 = vadd.f32 %v967_v12, %v143_v28 }
  0x4a   :  { %v203_v23 = vadd.f32 %v967_v12, %v135_v18 }
  0x4b   :  { %v275_v41 = vmax.f32 %v211_v35, 0.0 }
  0x51   :  { %403 = vmatmul.bf16.gmra.mxu0 %v287_v43  ;;  %443 = vmatmul.bf16.gmra.mxu1 %v295_v47  ;;  %v231_v43 = vmax.f32 %v167_v39, 0.0  ;;  %v61_v47 = vld [vmem:[%s1773_s0 + $0x148] sm:$0xff]  ;;  %v102_v39 = vmul.f32 %v945_v4, %v34_v29  ;;  %v267_v29 = vmax.f32 %v203_v23, 0.0 }
  0x52   :  { %483 = vmatmul.bf16.gmra.mxu2 %v303_v34  ;;  %v129_v50 = vmul.f32 %v945_v4, %v61_v47  ;;  %v210_v34 = vadd.f32 %v967_v12, %v142_v26 }
  0x53   :  { %v289_v53 = vpack.c.bf16 %v231_v43, %v230_v42  ;;  %v50_v42 = vld [vmem:[%s1773_s0 + $0xf0] sm:$0xff]  ;;  %v51_v43 = vld [vmem:[%s1773_s0 + $0xf8] sm:$0xff]  ;;  %v170_v48 = vadd.f32 %v967_v12, %v102_v39 }
  0x54   :  { %v197_v59 = vadd.f32 %v967_v12, %v129_v50  ;;  %v274_v38 = vmax.f32 %v210_v34, 0.0  ;;  %v118_v45 = vmul.f32 %v945_v4, %v50_v42  ;;  %v119_v46 = vmul.f32 %v945_v4, %v51_v43 }
  0x55   :  { %v234_v52 = vmax.f32 %v170_v48, 0.0  ;;  %v148_v42 = vmul.f32 %v945_v4, %v80_v40 }
  0x56   :  { %v261_v63 = vmax.f32 %v197_v59, 0.0  ;;  %v311_v47 = vpack.c.bf16 %v275_v41, %v274_v38  ;;  %v186_v50 = vadd.f32 %v967_v12, %v118_v45  ;;  %v187_v51 = vadd.f32 %v967_v12, %v119_v46  ;;  %v81_v41 = vld [vmem:[%s1773_s0 + $0x1e8] sm:$0xff] }
  0x57   :  { %v132_v59 = vmul.f32 %v945_v4, %v64_v56  ;;  %v149_v43 = vmul.f32 %v945_v4, %v81_v41 }
  0x58   :  { %v304_v7 = vpack.c.bf16 %v261_v63, %v260_v62  ;;  %v250_v54 = vmax.f32 %v186_v50, 0.0  ;;  %v251_v55 = vmax.f32 %v187_v51, 0.0  ;;  %v144_v62 = vmul.f32 %v945_v4, %v76_v58 }
  0x59   :  { %518 = vmatmul.bf16.gmra.mxu3 %v310_v10  ;;  %v200_v2 = vadd.f32 %v967_v12, %v132_v59  ;;  %v277_v10 = vmax.f32 %v213_v6, 0.0  ;;  %v217_v45 = vadd.f32 %v967_v12, %v149_v43 }
  0x5a   :  { %v299_v1 = vpack.c.bf16 %v251_v55, %v250_v54  ;;  %v212_v5 = vadd.f32 %v967_v12, %v144_v62 }
  0x5b   :  { %v281_v51 = vmax.f32 %v217_v45, 0.0 }
  0x5c   :  { %v276_v9 = vmax.f32 %v212_v5, 0.0 }
  0x61   :  { %408 = vmatmul.bf16.gmra.mxu0 %v288_v17  ;;  %448 = vmatmul.bf16.gmra.mxu1 %v296_v21  ;;  %v233_v17 = vmax.f32 %v169_v13, 0.0  ;;  %v63_v21 = vld [vmem:[%s1773_s0 + $0x158] sm:$0xff]  ;;  %v312_v13 = vpack.c.bf16 %v277_v10, %v276_v9 }
  0x62   :  { %488 = vmatmul.bf16.gmra.mxu2 %v304_v7  ;;  %v131_v24 = vmul.f32 %v945_v4, %v63_v21  ;;  %v264_v7 = vmax.f32 %v200_v2, 0.0  ;;  %v147_v21 = vmul.f32 %v945_v4, %v79_v19 }
  0x63   :  { %v290_v27 = vpack.c.bf16 %v233_v17, %v232_v16  ;;  %v78_v16 = vld [vmem:[%s1773_s0 + $0x1d0] sm:$0xff]  ;;  %v134_v17 = vmul.f32 %v945_v4, %v66_v14 }
  0x64   :  { %v199_v33 = vadd.f32 %v967_v12, %v131_v24  ;;  %v146_v20 = vmul.f32 %v945_v4, %v78_v16 }
  0x65   :  { %v202_v22 = vadd.f32 %v967_v12, %v134_v17 }
  0x66   :  { %v263_v37 = vmax.f32 %v199_v33, 0.0  ;;  %v214_v24 = vadd.f32 %v967_v12, %v146_v20 }
  0x67   :  { %v266_v28 = vmax.f32 %v202_v22, 0.0 }
  0x68   :  { %v305_v44 = vpack.c.bf16 %v263_v37, %v262_v36  ;;  %v278_v30 = vmax.f32 %v214_v24, 0.0 }
  0x69   :  { %523 = vmatmul.bf16.gmra.mxu3 %v311_v47  ;;  %v307_v32 = vpack.c.bf16 %v267_v29, %v266_v28 }
  0x71   :  { %413 = vmatmul.bf16.gmra.mxu0 %v289_v53  ;;  %453 = vmatmul.bf16.gmra.mxu1 %v297_v57  ;;  %v235_v53 = vmax.f32 %v171_v49, 0.0  ;;  %v65_v57 = vld [vmem:[%s1773_s0 + $0x168] sm:$0xff] }
  0x72   :  { %493 = vmatmul.bf16.gmra.mxu2 %v305_v44  ;;  %v133_v60 = vmul.f32 %v945_v4, %v65_v57  ;;  %v216_v44 = vadd.f32 %v967_v12, %v148_v42 }
  0x73   :  { %v291_v63 = vpack.c.bf16 %v235_v53, %v234_v52 }
  0x74   :  { %v201_v3 = vadd.f32 %v967_v12, %v133_v60  ;;  %v280_v50 = vmax.f32 %v216_v44, 0.0  ;;  %v82_v60 = vld [vmem:[%s1773_s0 + $0x1f0] sm:$0xff] }
  0x75   :  { %v150_v62 = vmul.f32 %v945_v4, %v82_v60 }
  0x76   :  { %v265_v8 = vmax.f32 %v201_v3, 0.0  ;;  %v314_v53 = vpack.c.bf16 %v281_v51, %v280_v50 }
  0x77   :  { %v218_v0 = vadd.f32 %v967_v12, %v150_v62 }
  0x78   :  { %v306_v11 = vpack.c.bf16 %v265_v8, %v264_v7 }
  0x79   :  { %528 = vmatmul.bf16.gmra.mxu3 %v312_v13  ;;  %v282_v8 = vmax.f32 %v218_v0, 0.0 }
  0x81   :  { %418 = vmatmul.bf16.gmra.mxu0 %v290_v27  ;;  %458 = vmatmul.bf16.gmra.mxu1 %v298_v31  ;;  %v215_v27 = vadd.f32 %v967_v12, %v147_v21 }
  0x82   :  { %498 = vmatmul.bf16.gmra.mxu2 %v306_v11 }
  0x83   :  { %v279_v31 = vmax.f32 %v215_v27, 0.0 }
  0x85   :  { %v313_v33 = vpack.c.bf16 %v279_v31, %v278_v30 }
  0x89   :  { %533 = vmatmul.bf16.gmra.mxu3 %v313_v33 }
  0x91   :  { %423 = vmatmul.bf16.gmra.mxu0 %v291_v63  ;;  %463 = vmatmul.bf16.gmra.mxu1 %v299_v1  ;;  %v151_v63 = vmul.f32 %v945_v4, %v83_v61 }
  0x92   :  { %503 = vmatmul.bf16.gmra.mxu2 %v307_v32 }
  0x93   :  { %v219_v1 = vadd.f32 %v967_v12, %v151_v63 }
  0x95   :  { %v283_v4 = vmax.f32 %v219_v1, 0.0 }
  0x97   :  { %v315_v9 = vpack.c.bf16 %v283_v4, %v282_v8 }
  0x99   :  { %538 = vmatmul.bf16.gmra.mxu3 %v314_v53 }
  0x9e   :  { %v389_v25 = vpop.f32.mrf.mxu0  ;;  %v1263_v26 = vpop.f32.mrf.mxu1 }
  0x9f   :  { %549 = vst [vmem:[%s1774_s4] sm:$0xff] %v389_v25  ;;  %v683_v36 = vmul.f32 %v389_v25, %v389_v25 }
  0xa0   :  { %565 = vst [vmem:[%s1774_s4 + $0x80] sm:$0xff] %v1263_v26 }
  0xa5   :  { %v1306_v58 = vpop.f32.mrf.mxu2 }
  0xa6   :  { %v391_v34 = vpop.f32.mrf.mxu0  ;;  %v1273_v35 = vpop.f32.mrf.mxu1  ;;  %581 = vst [vmem:[%s1774_s4 + $0x100] sm:$0xff] %v1306_v58 }
  0xa7   :  { %550 = vst [vmem:[%s1774_s4 + $0x8] sm:$0xff] %v391_v34  ;;  %v613_v37 = vadd.f32 %v391_v34, %v389_v25  ;;  %v684_v38 = vmul.f32 %v391_v34, %v391_v34 }
  0xa8   :  { %566 = vst [vmem:[%s1774_s4 + $0x88] sm:$0xff] %v1273_v35 }
  0xa9   :  { %v747_v39 = vadd.f32 %v684_v38, %v683_v36  ;;  %543 = vmatmul.bf16.gmra.mxu3 %v315_v9 }
  0xad   :  { %v1333_v7 = vpop.f32.mrf.mxu2 }
  0xae   :  { %v394_v46 = vpop.f32.mrf.mxu0  ;;  %v1292_v47 = vpop.f32.mrf.mxu1  ;;  %582 = vst [vmem:[%s1774_s4 + $0x108] sm:$0xff] %v1333_v7 }
  0xaf   :  { %551 = vst [vmem:[%s1774_s4 + $0x10] sm:$0xff] %v394_v46  ;;  %v614_v48 = vadd.f32 %v613_v37, %v394_v46  ;;  %v685_v49 = vmul.f32 %v394_v46, %v394_v46 }
  0xb0   :  { %567 = vst [vmem:[%s1774_s4 + $0x90] sm:$0xff] %v1292_v47 }
  0xb1   :  { %v748_v52 = vadd.f32 %v747_v39, %v685_v49 }
  0xb5   :  { %v1350_v13 = vpop.f32.mrf.mxu2 }
  0xb6   :  { %v396_v54 = vpop.f32.mrf.mxu0  ;;  %v1301_v55 = vpop.f32.mrf.mxu1  ;;  %583 = vst [vmem:[%s1774_s4 + $0x110] sm:$0xff] %v1350_v13 }
  0xb7   :  { %552 = vst [vmem:[%s1774_s4 + $0x18] sm:$0xff] %v396_v54  ;;  %v615_v56 = vadd.f32 %v614_v48, %v396_v54  ;;  %v686_v57 = vmul.f32 %v396_v54, %v396_v54 }
  0xb8   :  { %568 = vst [vmem:[%s1774_s4 + $0x98] sm:$0xff] %v1301_v55 }
  0xb9   :  { %v749_v59 = vadd.f32 %v748_v52, %v686_v57 }
  0xba   :  { %v1382_v20 = vpop.f32.mrf.mxu3 }
  0xbb   :  { %597 = vst [vmem:[%s1774_s4 + $0x180] sm:$0xff] %v1382_v20 }
  0xbd   :  { %v1365_v16 = vpop.f32.mrf.mxu2 }
  0xbe   :  { %v399_v2 = vpop.f32.mrf.mxu0  ;;  %v1326_v3 = vpop.f32.mrf.mxu1  ;;  %584 = vst [vmem:[%s1774_s4 + $0x118] sm:$0xff] %v1365_v16 }
  0xbf   :  { %553 = vst [vmem:[%s1774_s4 + $0x20] sm:$0xff] %v399_v2  ;;  %v1331_v5 = vadd.f32 %v615_v56, %v399_v2  ;;  %v687_v6 = vmul.f32 %v399_v2, %v399_v2 }
  0xc0   :  { %569 = vst [vmem:[%s1774_s4 + $0xa0] sm:$0xff] %v1326_v3 }
  0xc1   :  { %v1339_v12 = vadd.f32 %v749_v59, %v687_v6 }
  0xc2   :  { %v1403_v24 = vpop.f32.mrf.mxu3 }
  0xc3   :  { %598 = vst [vmem:[%s1774_s4 + $0x188] sm:$0xff] %v1403_v24 }
  0xc5   :  { %v1380_v19 = vpop.f32.mrf.mxu2 }
  0xc6   :  { %v401_v10 = vpop.f32.mrf.mxu0  ;;  %v1345_v11 = vpop.f32.mrf.mxu1  ;;  %585 = vst [vmem:[%s1774_s4 + $0x120] sm:$0xff] %v1380_v19 }
  0xc7   :  { %554 = vst [vmem:[%s1774_s4 + $0x28] sm:$0xff] %v401_v10  ;;  %v688_v43 = vmul.f32 %v401_v10, %v401_v10  ;;  %v617_v44 = vadd.f32 %v1331_v5, %v401_v10 }
  0xc8   :  { %570 = vst [vmem:[%s1774_s4 + $0xa8] sm:$0xff] %v1345_v11 }
  0xc9   :  { %v751_v46 = vadd.f32 %v1339_v12, %v688_v43 }
  0xcc   :  { %v1424_v29 = vpop.f32.mrf.mxu3 }
  0xcd   :  { %v1401_v23 = vpop.f32.mrf.mxu2  ;;  %599 = vst [vmem:[%s1774_s4 + $0x190] sm:$0xff] %v1424_v29 }
  0xce   :  { %v404_v14 = vpop.f32.mrf.mxu0  ;;  %v1360_v15 = vpop.f32.mrf.mxu1  ;;  %586 = vst [vmem:[%s1774_s4 + $0x128] sm:$0xff] %v1401_v23 }
  0xcf   :  { %555 = vst [vmem:[%s1774_s4 + $0x30] sm:$0xff] %v404_v14  ;;  %v689_v45 = vmul.f32 %v404_v14, %v404_v14  ;;  %v618_v48 = vadd.f32 %v617_v44, %v404_v14 }
  0xd0   :  { %571 = vst [vmem:[%s1774_s4 + $0xb0] sm:$0xff] %v1360_v15 }
  0xd1   :  { %v752_v52 = vadd.f32 %v751_v46, %v689_v45 }
  0xd4   :  { %v1445_v33 = vpop.f32.mrf.mxu3 }
  0xd5   :  { %v1422_v28 = vpop.f32.mrf.mxu2  ;;  %600 = vst [vmem:[%s1774_s4 + $0x198] sm:$0xff] %v1445_v33 }
  0xd6   :  { %v406_v17 = vpop.f32.mrf.mxu0  ;;  %v1375_v18 = vpop.f32.mrf.mxu1  ;;  %587 = vst [vmem:[%s1774_s4 + $0x130] sm:$0xff] %v1422_v28 }
  0xd7   :  { %556 = vst [vmem:[%s1774_s4 + $0x38] sm:$0xff] %v406_v17  ;;  %v690_v49 = vmul.f32 %v406_v17, %v406_v17  ;;  %v619_v53 = vadd.f32 %v618_v48, %v406_v17 }
  0xd8   :  { %572 = vst [vmem:[%s1774_s4 + $0xb8] sm:$0xff] %v1375_v18 }
  0xd9   :  { %v753_v59 = vadd.f32 %v752_v52, %v690_v49 }
  0xdc   :  { %v1466_v38 = vpop.f32.mrf.mxu3 }
  0xdd   :  { %v1443_v32 = vpop.f32.mrf.mxu2  ;;  %601 = vst [vmem:[%s1774_s4 + $0x1a0] sm:$0xff] %v1466_v38 }
  0xde   :  { %v409_v21 = vpop.f32.mrf.mxu0  ;;  %v1396_v22 = vpop.f32.mrf.mxu1  ;;  %588 = vst [vmem:[%s1774_s4 + $0x138] sm:$0xff] %v1443_v32 }
  0xdf   :  { %557 = vst [vmem:[%s1774_s4 + $0x40] sm:$0xff] %v409_v21  ;;  %v691_v54 = vmul.f32 %v409_v21, %v409_v21  ;;  %v620_v60 = vadd.f32 %v619_v53, %v409_v21 }
  0xe0   :  { %573 = vst [vmem:[%s1774_s4 + $0xc0] sm:$0xff] %v1396_v22 }
  0xe1   :  { %v754_v62 = vadd.f32 %v753_v59, %v691_v54 }
  0xe4   :  { %v1487_v42 = vpop.f32.mrf.mxu3 }
  0xe5   :  { %v1464_v37 = vpop.f32.mrf.mxu2  ;;  %602 = vst [vmem:[%s1774_s4 + $0x1a8] sm:$0xff] %v1487_v42 }
  0xe6   :  { %v411_v25 = vpop.f32.mrf.mxu0  ;;  %v1417_v27 = vpop.f32.mrf.mxu1  ;;  %589 = vst [vmem:[%s1774_s4 + $0x140] sm:$0xff] %v1464_v37 }
  0xe7   :  { %558 = vst [vmem:[%s1774_s4 + $0x48] sm:$0xff] %v411_v25  ;;  %v692_v61 = vmul.f32 %v411_v25, %v411_v25  ;;  %v621_v63 = vadd.f32 %v620_v60, %v411_v25 }
  0xe8   :  { %574 = vst [vmem:[%s1774_s4 + $0xc8] sm:$0xff] %v1417_v27 }
  0xe9   :  { %v755_v1 = vadd.f32 %v754_v62, %v692_v61  ;;  %v700_v61 = vmul.f32 %v1273_v35, %v1273_v35 }
  0xec   :  { %v1510_v57 = vpop.f32.mrf.mxu3 }
  0xed   :  { %v1485_v41 = vpop.f32.mrf.mxu2  ;;  %603 = vst [vmem:[%s1774_s4 + $0x1b0] sm:$0xff] %v1510_v57 }
  0xee   :  { %v414_v30 = vpop.f32.mrf.mxu0  ;;  %v1438_v31 = vpop.f32.mrf.mxu1  ;;  %590 = vst [vmem:[%s1774_s4 + $0x148] sm:$0xff] %v1485_v41 }
  0xef   :  { %559 = vst [vmem:[%s1774_s4 + $0x50] sm:$0xff] %v414_v30  ;;  %v693_v0 = vmul.f32 %v414_v30, %v414_v30  ;;  %v622_v2 = vadd.f32 %v621_v63, %v414_v30 }
  0xf0   :  { %575 = vst [vmem:[%s1774_s4 + $0xd0] sm:$0xff] %v1438_v31 }
  0xf1   :  { %v756_v4 = vadd.f32 %v755_v1, %v693_v0 }
  0xf4   :  { %v1531_v14 = vpop.f32.mrf.mxu3 }
  0xf5   :  { %v1508_v56 = vpop.f32.mrf.mxu2  ;;  %604 = vst [vmem:[%s1774_s4 + $0x1b8] sm:$0xff] %v1531_v14 }
  0xf6   :  { %v416_v34 = vpop.f32.mrf.mxu0  ;;  %v1459_v36 = vpop.f32.mrf.mxu1  ;;  %591 = vst [vmem:[%s1774_s4 + $0x150] sm:$0xff] %v1508_v56 }
  0xf7   :  { %560 = vst [vmem:[%s1774_s4 + $0x58] sm:$0xff] %v416_v34  ;;  %v694_v5 = vmul.f32 %v416_v34, %v416_v34  ;;  %v623_v12 = vadd.f32 %v622_v2, %v416_v34  ;;  %v702_v2 = vmul.f32 %v1301_v55, %v1301_v55 }
  0xf8   :  { %576 = vst [vmem:[%s1774_s4 + $0xd8] sm:$0xff] %v1459_v36 }
  0xf9   :  { %v757_v17 = vadd.f32 %v756_v4, %v694_v5 }
  0xfc   :  { %v1552_v54 = vpop.f32.mrf.mxu3 }
  0xfd   :  { %v1529_v10 = vpop.f32.mrf.mxu2  ;;  %605 = vst [vmem:[%s1774_s4 + $0x1c0] sm:$0xff] %v1552_v54 }
  0xfe   :  { %v419_v39 = vpop.f32.mrf.mxu0  ;;  %v1480_v40 = vpop.f32.mrf.mxu1  ;;  %592 = vst [vmem:[%s1774_s4 + $0x158] sm:$0xff] %v1529_v10 }
  0xff   :  { %561 = vst [vmem:[%s1774_s4 + $0x60] sm:$0xff] %v419_v39  ;;  %v695_v9 = vmul.f32 %v419_v39, %v419_v39  ;;  %v624_v21 = vadd.f32 %v623_v12, %v419_v39 }
 0x100   :  { %577 = vst [vmem:[%s1774_s4 + $0xe0] sm:$0xff] %v1480_v40 }
 0x101   :  { %v758_v30 = vadd.f32 %v757_v17, %v695_v9 }
 0x104   :  { %v1580_v12 = vpop.f32.mrf.mxu3 }
 0x105   :  { %v1550_v53 = vpop.f32.mrf.mxu2  ;;  %606 = vst [vmem:[%s1774_s4 + $0x1c8] sm:$0xff] %v1580_v12 }
 0x106   :  { %v421_v50 = vpop.f32.mrf.mxu0  ;;  %v1503_v51 = vpop.f32.mrf.mxu1  ;;  %593 = vst [vmem:[%s1774_s4 + $0x160] sm:$0xff] %v1550_v53 }
 0x107   :  { %562 = vst [vmem:[%s1774_s4 + $0x68] sm:$0xff] %v421_v50  ;;  %v696_v25 = vmul.f32 %v421_v50, %v421_v50  ;;  %v625_v34 = vadd.f32 %v624_v21, %v421_v50  ;;  %v699_v50 = vmul.f32 %v1263_v26, %v1263_v26 }
 0x108   :  { %578 = vst [vmem:[%s1774_s4 + $0xe8] sm:$0xff] %v1503_v51 }
 0x109   :  { %v759_v44 = vadd.f32 %v758_v30, %v696_v25  ;;  %v705_v25 = vmul.f32 %v1360_v15, %v1360_v15 }
 0x10d   :  { %v1578_v4 = vpop.f32.mrf.mxu2 }
 0x10e   :  { %v424_v6 = vpop.f32.mrf.mxu0  ;;  %v1524_v8 = vpop.f32.mrf.mxu1  ;;  %594 = vst [vmem:[%s1774_s4 + $0x168] sm:$0xff] %v1578_v4 }
 0x10f   :  { %563 = vst [vmem:[%s1774_s4 + $0x70] sm:$0xff] %v424_v6  ;;  %v697_v43 = vmul.f32 %v424_v6, %v424_v6  ;;  %v626_v45 = vadd.f32 %v625_v34, %v424_v6 }
 0x110   :  { %579 = vst [vmem:[%s1774_s4 + $0xf0] sm:$0xff] %v1524_v8 }
 0x111   :  { %v760_v39 = vadd.f32 %v759_v44, %v697_v43 }
 0x116   :  { %v426_v46 = vpop.f32.mrf.mxu0  ;;  %v1545_v48 = vpop.f32.mrf.mxu1 }
 0x117   :  { %564 = vst [vmem:[%s1774_s4 + $0x78] sm:$0xff] %v426_v46  ;;  %v627_v49 = vadd.f32 %v626_v45, %v426_v46  ;;  %v698_v52 = vmul.f32 %v426_v46, %v426_v46  ;;  %v1602_v45 = vpop.f32.mrf.mxu2  ;;  %v1604_v46 = vpop.f32.mrf.mxu3 }
 0x118   :  { %580 = vst [vmem:[%s1774_s4 + $0xf8] sm:$0xff] %v1545_v48 }
 0x119   :  { %v628_v59 = vadd.f32 %v627_v49, %v1263_v26  ;;  %v761_v60 = vadd.f32 %v760_v39, %v698_v52  ;;  %v701_v26 = vmul.f32 %v1292_v47, %v1292_v47  ;;  %595 = vst [vmem:[%s1774_s4 + $0x170] sm:$0xff] %v1602_v45 }
 0x11a   :  { %607 = vst [vmem:[%s1774_s4 + $0x1d0] sm:$0xff] %v1604_v46 }
 0x11b   :  { %v629_v62 = vadd.f32 %v628_v59, %v1273_v35  ;;  %v762_v63 = vadd.f32 %v761_v60, %v699_v50  ;;  %v703_v35 = vmul.f32 %v1326_v3, %v1326_v3  ;;  %v709_v50 = vmul.f32 %v1438_v31, %v1438_v31 }
 0x11d   :  { %v630_v0 = vadd.f32 %v629_v62, %v1292_v47  ;;  %v763_v1 = vadd.f32 %v762_v63, %v700_v61 }
 0x11f   :  { %v631_v5 = vadd.f32 %v630_v0, %v1301_v55  ;;  %v764_v6 = vadd.f32 %v763_v1, %v701_v26  ;;  %v704_v55 = vmul.f32 %v1345_v11, %v1345_v11  ;;  %v1626_v63 = vpop.f32.mrf.mxu2  ;;  %v1628_v26 = vpop.f32.mrf.mxu3 }
 0x120   :  { %596 = vst [vmem:[%s1774_s4 + $0x178] sm:$0xff] %v1626_v63 }
 0x121   :  { %v632_v47 = vadd.f32 %v631_v5, %v1326_v3  ;;  %v765_v9 = vadd.f32 %v764_v6, %v702_v2  ;;  %v706_v3 = vmul.f32 %v1375_v18, %v1375_v18  ;;  %608 = vst [vmem:[%s1774_s4 + $0x1d8] sm:$0xff] %v1628_v26  ;;  %v712_v2 = vmul.f32 %v1503_v51, %v1503_v51 }
 0x123   :  { %v633_v17 = vadd.f32 %v632_v47, %v1345_v11  ;;  %v766_v21 = vadd.f32 %v765_v9, %v703_v35  ;;  %v707_v11 = vmul.f32 %v1396_v22, %v1396_v22  ;;  %v713_v35 = vmul.f32 %v1524_v8, %v1524_v8 }
 0x124   :  { %v714_v9 = vmul.f32 %v1545_v48, %v1545_v48 }
 0x125   :  { %v767_v30 = vadd.f32 %v766_v21, %v704_v55  ;;  %v634_v34 = vadd.f32 %v633_v17, %v1360_v15 }
 0x127   :  { %v635_v43 = vadd.f32 %v634_v34, %v1375_v18  ;;  %v768_v44 = vadd.f32 %v767_v30, %v705_v25  ;;  %v708_v18 = vmul.f32 %v1417_v27, %v1417_v27  ;;  %v1650_v55 = vpop.f32.mrf.mxu3 }
 0x128   :  { %609 = vst [vmem:[%s1774_s4 + $0x1e0] sm:$0xff] %v1650_v55 }
 0x129   :  { %v636_v15 = vadd.f32 %v635_v43, %v1396_v22  ;;  %v769_v39 = vadd.f32 %v768_v44, %v706_v3  ;;  %v710_v22 = vmul.f32 %v1459_v36, %v1459_v36  ;;  %v718_v43 = vmul.f32 %v1365_v16, %v1365_v16 }
 0x12b   :  { %v637_v49 = vadd.f32 %v636_v15, %v1417_v27  ;;  %v770_v52 = vadd.f32 %v769_v39, %v707_v11  ;;  %v720_v39 = vmul.f32 %v1401_v23, %v1401_v23 }
 0x12d   :  { %v638_v59 = vadd.f32 %v637_v49, %v1438_v31  ;;  %v771_v60 = vadd.f32 %v770_v52, %v708_v18  ;;  %v711_v31 = vmul.f32 %v1480_v40, %v1480_v40  ;;  %v721_v49 = vmul.f32 %v1422_v28, %v1422_v28 }
 0x12f   :  { %v639_v61 = vadd.f32 %v638_v59, %v1459_v36  ;;  %v772_v62 = vadd.f32 %v771_v60, %v709_v50  ;;  %v722_v59 = vmul.f32 %v1443_v32, %v1443_v32 }
 0x131   :  { %v640_v27 = vadd.f32 %v639_v61, %v1480_v40  ;;  %v773_v0 = vadd.f32 %v772_v62, %v710_v22 }
 0x133   :  { %v774_v36 = vadd.f32 %v773_v0, %v711_v31  ;;  %v641_v1 = vadd.f32 %v640_v27, %v1503_v51  ;;  %v715_v51 = vmul.f32 %v1306_v58, %v1306_v58  ;;  %v725_v31 = vmul.f32 %v1508_v56, %v1508_v56 }
 0x135   :  { %v775_v5 = vadd.f32 %v774_v36, %v712_v2  ;;  %v642_v6 = vadd.f32 %v641_v1, %v1524_v8  ;;  %v716_v8 = vmul.f32 %v1333_v7, %v1333_v7  ;;  %v726_v2 = vmul.f32 %v1529_v10, %v1529_v10 }
 0x137   :  { %v776_v47 = vadd.f32 %v775_v5, %v713_v35  ;;  %v643_v40 = vadd.f32 %v642_v6, %v1545_v48  ;;  %v717_v48 = vmul.f32 %v1350_v13, %v1350_v13  ;;  %v727_v35 = vmul.f32 %v1550_v53, %v1550_v53 }
 0x139   :  { %v644_v17 = vadd.f32 %v643_v40, %v1306_v58  ;;  %v777_v21 = vadd.f32 %v776_v47, %v714_v9  ;;  %v1668_v58 = vpop.f32.mrf.mxu3  ;;  %v728_v40 = vmul.f32 %v1578_v4, %v1578_v4 }
 0x13a   :  { %610 = vst [vmem:[%s1774_s4 + $0x1e8] sm:$0xff] %v1668_v58 }
 0x13b   :  { %v645_v25 = vadd.f32 %v644_v17, %v1333_v7  ;;  %v778_v30 = vadd.f32 %v777_v21, %v715_v51  ;;  %v719_v7 = vmul.f32 %v1380_v19, %v1380_v19  ;;  %v729_v51 = vmul.f32 %v1602_v45, %v1602_v45 }
 0x13d   :  { %v646_v34 = vadd.f32 %v645_v25, %v1350_v13  ;;  %v779_v3 = vadd.f32 %v778_v30, %v716_v8  ;;  %v730_v8 = vmul.f32 %v1626_v63, %v1626_v63 }
 0x13f   :  { %v647_v44 = vadd.f32 %v646_v34, %v1365_v16  ;;  %v780_v11 = vadd.f32 %v779_v3, %v717_v48 }
 0x141   :  { %v648_v15 = vadd.f32 %v647_v44, %v1380_v19  ;;  %v781_v13 = vadd.f32 %v780_v11, %v718_v43  ;;  %v1686_v19 = vpop.f32.mrf.mxu3 }
 0x142   :  { %611 = vst [vmem:[%s1774_s4 + $0x1f0] sm:$0xff] %v1686_v19 }
 0x143   :  { %v649_v18 = vadd.f32 %v648_v15, %v1401_v23  ;;  %v782_v16 = vadd.f32 %v781_v13, %v719_v7  ;;  %v723_v23 = vmul.f32 %v1464_v37, %v1464_v37 }
 0x145   :  { %v783_v52 = vadd.f32 %v782_v16, %v720_v39  ;;  %v650_v50 = vadd.f32 %v649_v18, %v1422_v28  ;;  %v724_v28 = vmul.f32 %v1485_v41, %v1485_v41 }
 0x147   :  { %v651_v60 = vadd.f32 %v650_v50, %v1443_v32  ;;  %v784_v22 = vadd.f32 %v783_v52, %v721_v49 }
 0x149   :  { %v652_v61 = vadd.f32 %v651_v60, %v1464_v37  ;;  %v785_v62 = vadd.f32 %v784_v22, %v722_v59  ;;  %v546_v37 = vpop.f32.mrf.mxu3 }
 0x14a   :  { %612 = vst [vmem:[%s1774_s4 + $0x1f8] sm:$0xff] %v546_v37 }
 0x14b   :  { %v653_v27 = vadd.f32 %v652_v61, %v1485_v41  ;;  %v786_v32 = vadd.f32 %v785_v62, %v723_v23  ;;  %v742_v62 = vmul.f32 %v1628_v26, %v1628_v26 }
 0x14d   :  { %v654_v0 = vadd.f32 %v653_v27, %v1508_v56  ;;  %v787_v36 = vadd.f32 %v786_v32, %v724_v28  ;;  %v743_v32 = vmul.f32 %v1650_v55, %v1650_v55 }
 0x14f   :  { %v655_v1 = vadd.f32 %v654_v0, %v1529_v10  ;;  %v788_v5 = vadd.f32 %v787_v36, %v725_v31  ;;  %v744_v0 = vmul.f32 %v1668_v58, %v1668_v58 }
 0x151   :  { %v789_v6 = vadd.f32 %v788_v5, %v726_v2  ;;  %v656_v41 = vadd.f32 %v655_v1, %v1550_v53  ;;  %v731_v53 = vmul.f32 %v1382_v20, %v1382_v20  ;;  %v745_v1 = vmul.f32 %v1686_v19, %v1686_v19 }
 0x152   :  { %v746_v5 = vmul.f32 %v546_v37, %v546_v37 }
 0x153   :  { %v790_v47 = vadd.f32 %v789_v6, %v727_v35  ;;  %v657_v56 = vadd.f32 %v656_v41, %v1578_v4  ;;  %v732_v4 = vmul.f32 %v1403_v24, %v1403_v24 }
 0x155   :  { %v791_v9 = vadd.f32 %v790_v47, %v728_v40  ;;  %v658_v10 = vadd.f32 %v657_v56, %v1602_v45  ;;  %v733_v45 = vmul.f32 %v1424_v29, %v1424_v29 }
 0x157   :  { %v792_v17 = vadd.f32 %v791_v9, %v729_v51  ;;  %v659_v21 = vadd.f32 %v658_v10, %v1626_v63  ;;  %v734_v63 = vmul.f32 %v1445_v33, %v1445_v33 }
 0x159   :  { %v660_v25 = vadd.f32 %v659_v21, %v1382_v20  ;;  %v793_v30 = vadd.f32 %v792_v17, %v730_v8  ;;  %v735_v20 = vmul.f32 %v1466_v38, %v1466_v38 }
 0x15b   :  { %v661_v48 = vadd.f32 %v660_v25, %v1403_v24  ;;  %v794_v34 = vadd.f32 %v793_v30, %v731_v53  ;;  %v736_v24 = vmul.f32 %v1487_v42, %v1487_v42 }
 0x15d   :  { %v662_v3 = vadd.f32 %v661_v48, %v1424_v29  ;;  %v795_v43 = vadd.f32 %v794_v34, %v732_v4  ;;  %v737_v29 = vmul.f32 %v1510_v57, %v1510_v57 }
 0x15f   :  { %v663_v44 = vadd.f32 %v662_v3, %v1445_v33  ;;  %v796_v11 = vadd.f32 %v795_v43, %v733_v45  ;;  %v738_v33 = vmul.f32 %v1531_v14, %v1531_v14 }
 0x161   :  { %v664_v7 = vadd.f32 %v663_v44, %v1466_v38  ;;  %v797_v15 = vadd.f32 %v796_v11, %v734_v63  ;;  %v739_v38 = vmul.f32 %v1552_v54, %v1552_v54 }
 0x163   :  { %v665_v13 = vadd.f32 %v664_v7, %v1487_v42  ;;  %v798_v39 = vadd.f32 %v797_v15, %v735_v20  ;;  %v740_v42 = vmul.f32 %v1580_v12, %v1580_v12 }
 0x165   :  { %v799_v18 = vadd.f32 %v798_v39, %v736_v24  ;;  %v666_v16 = vadd.f32 %v665_v13, %v1510_v57  ;;  %v741_v57 = vmul.f32 %v1604_v46, %v1604_v46 }
 0x167   :  { %v667_v49 = vadd.f32 %v666_v16, %v1531_v14  ;;  %v800_v52 = vadd.f32 %v799_v18, %v737_v29 }
 0x169   :  { %v668_v50 = vadd.f32 %v667_v49, %v1552_v54  ;;  %v801_v59 = vadd.f32 %v800_v52, %v738_v33 }
 0x16b   :  { %v669_v60 = vadd.f32 %v668_v50, %v1580_v12  ;;  %v802_v22 = vadd.f32 %v801_v59, %v739_v38 }
 0x16d   :  { %v670_v23 = vadd.f32 %v669_v60, %v1604_v46  ;;  %v803_v61 = vadd.f32 %v802_v22, %v740_v42 }
 0x16f   :  { %v671_v14 = vadd.f32 %v670_v23, %v1628_v26  ;;  %v804_v28 = vadd.f32 %v803_v61, %v741_v57 }
 0x171   :  { %v805_v54 = vadd.f32 %v804_v28, %v742_v62  ;;  %v672_v27 = vadd.f32 %v671_v14, %v1650_v55 }
 0x173   :  { %v806_v12 = vadd.f32 %v805_v54, %v743_v32  ;;  %v673_v31 = vadd.f32 %v672_v27, %v1668_v58 }
 0x175   :  { %v807_v46 = vadd.f32 %v806_v12, %v744_v0  ;;  %v674_v36 = vadd.f32 %v673_v31, %v1686_v19 }
 0x177   :  { %v808_v26 = vadd.f32 %v807_v46, %v745_v1  ;;  %v675_v2 = vadd.f32 %v674_v36, %v546_v37 }
 0x179   :  { %v676_v6 = vrot.slane %v675_v2, 4  ;;  %v809_v41 = vadd.f32 %v808_v26, %v746_v5 }
 0x17b   :  { %v677_v35 = vadd.f32 %v676_v6, %v675_v2  ;;  %v810_v47 = vrot.slane %v809_v41, 4 }
 0x17d   :  { %v678_v55 = vrot.slane %v677_v35, 2  ;;  %v811_v56 = vadd.f32 %v810_v47, %v809_v41 }
 0x17f   :  { %v679_v40 = vadd.f32 %v678_v55, %v677_v35  ;;  %v812_v9 = vrot.slane %v811_v56, 2 }
 0x181   :  { %v680_v10 = vrot.slane %v679_v40, 1  ;;  %v813_v51 = vadd.f32 %v812_v9, %v811_v56 }
 0x183   :  { %v681_v58 = vadd.f32 %v680_v10, %v679_v40  ;;  %v814_v17 = vrot.slane %v813_v51, 1 }
 0x185   :  { %682 = vst [vmem:[%s1775_s5] sm:$0x1] %v681_v58  ;;  %v815_v19 = vadd.f32 %v814_v17, %v813_v51 }
 0x187   :  { %816 = vst [vmem:[%s1776_s6] sm:$0x1] %v815_v19 }

// kernel: decoder_block_forward.4
= control target key start
LH: loop header
LB: loop body
LE: loop exit
PB: predicated region body
PF: predicated region fallthrough
CT: control target
= control target key end

     0   :  { %s2184_s13 = smov 0   ;;  %s2186_s14 = smov 0   ;;  %s2947_s0 = inlined_call_operand.vmem [shape: f32[2,8,8,128], index: 0, kind: input, shape index: {}, may-alias: {0,1}]   ;;  %s2948_s1 = inlined_call_operand.vmem [shape: f32[2,8,8,128], index: 1, kind: input, shape index: {}, may-alias: {0,1}]   ;;  %s2949_s2 = inlined_call_operand.vmem [shape: f32[1,128], index: 2, kind: input, shape index: {}]   ;;  %s2950_s3 = inlined_call_operand.vmem [shape: f32[1,128], index: 3, kind: input, shape index: {}]   ;;  %s2951_s4 = inlined_call_operand.vmem [shape: bf16[128,512], index: 4, kind: input, shape index: {}]   ;;  %s2952_s5 = inlined_call_operand.vmem [shape: bf16[128,256], index: 5, kind: input, shape index: {}]   ;;  %s2953_s6 = inlined_call_operand.vmem [shape: bf16[128,256], index: 6, kind: input, shape index: {}]   ;;  %s2954_s7 = inlined_call_operand.vmem [shape: bf16[128,128], index: 7, kind: input, shape index: {}]   ;;  %s2955_s8 = inlined_call_operand.vmem [shape: f32[2,8,8,512], index: 8, kind: output, shape index: {0}]   ;;  %s2956_s9 = inlined_call_operand.vmem [shape: f32[2,1,1,128], index: 9, kind: output, shape index: {1}]   ;;  %s2957_s10 = inlined_call_operand.vmem [shape: f32[2,1,1,128], index: 10, kind: output, shape index: {2}]  }
   0x1   :  { %s2188_s15 = smov 0  }
   0x2 LB: > { %s33_s16 = sadd.s32 1, %s2123_s14  ;;  %p1655_p0 = scmp.ge.s32.totalorder %s2127_s15, 1  ;;  %s2127_s15 = sphi %s2188_s15, %s21_s15   ;;  %s2123_s14 = sphi %s2186_s14, %s2961_s14   ;;  %s2119_s13 = sphi %s2184_s13, %s2960_s13  }
   0x3   : > { %p35_p1 = scmp.ge.s32.totalorder %s33_s16, 2  ;;  %p352_p2 = scmp.lt.s32.totalorder %s2127_s15, 3 }
   0x5   : > { %s2963_s16 = smov (%p35_p1, %s33_s16), 0  ;;  %p353_p3 = pnand %p1655_p0, %p352_p2 }
   0x6   : > { %p417_p4 = scmp.lt.s32.totalorder (!%p353_p3), %s2119_s13, 1 }
   0x7   : > { %356 = sbr.rel (%p353_p3) target bundleno = 350 (0x15e), region = 52 }
   0xc   : > { %v1776_v0 = vld [vmem:[%s2951_s4 + $0xe0] sm:$0xf]  ;;  %v2021_v1 = vld [vmem:[%s2951_s4 + $0xec] sm:$0xf0]  ;;  %v1784_v2 = vld [vmem:[%s2951_s4 + $0xe8] sm:$0xf] }
   0xd   : > { %v1777_v3 = vor.u32 %v2021_v1, %v1776_v0  ;;  %v2022_v4 = vld [vmem:[%s2951_s4 + $0xf4] sm:$0xf0]  ;;  %v1760_v5 = vld [vmem:[%s2951_s4 + $0xc0] sm:$0xf]  ;;  %v2017_v6 = vld [vmem:[%s2951_s4 + $0xcc] sm:$0xf0] }
   0xe   : > { %v1785_v7 = vor.u32 %v2022_v4, %v1784_v2  ;;  %v1768_v8 = vld [vmem:[%s2951_s4 + $0xc8] sm:$0xf]  ;;  %v2018_v9 = vld [vmem:[%s2951_s4 + $0xd4] sm:$0xf0]  ;;  %v1761_v10 = vor.u32 %v2017_v6, %v1760_v5  ;;  %v1744_v12 = vld [vmem:[%s2951_s4 + $0xa0] sm:$0xf] }
   0xf   : > { %731 = vmatpush.bf16.msra.mxu0 %v1777_v3  ;;  %2063 = vmatpush.bf16.msra.mxu1 %v1777_v3  ;;  %v1769_v11 = vor.u32 %v2018_v9, %v1768_v8  ;;  %v2013_v13 = vld [vmem:[%s2951_s4 + $0xac] sm:$0xf0]  ;;  %v1752_v14 = vld [vmem:[%s2951_s4 + $0xa8] sm:$0xf]  ;;  %v2014_v15 = vld [vmem:[%s2951_s4 + $0xb4] sm:$0xf0] }
  0x10   : > { %789 = vmatpush.bf16.msra.mxu2 %v1785_v7  ;;  %v1745_v16 = vor.u32 %v2013_v13, %v1744_v12  ;;  %v1728_v17 = vld [vmem:[%s2951_s4 + $0x80] sm:$0xf]  ;;  %v1753_v18 = vor.u32 %v2014_v15, %v1752_v14  ;;  %v2009_v19 = vld [vmem:[%s2951_s4 + $0x8c] sm:$0xf0]  ;;  %v2020_v20 = vld [vmem:[%s2951_s4 + $0xec] sm:$0xf] }
  0x11   : > { %v1786_v21 = vld [vmem:[%s2951_s4 + $0xf8] sm:$0xf0]  ;;  %v1736_v22 = vld [vmem:[%s2951_s4 + $0x88] sm:$0xf]  ;;  %v2010_v23 = vld [vmem:[%s2951_s4 + $0x94] sm:$0xf0]  ;;  %v1729_v27 = vor.u32 %v2009_v19, %v1728_v17 }
  0x12   : > { %v1789_v24 = vor.u32 %v2020_v20, %v1786_v21  ;;  %v2016_v25 = vld [vmem:[%s2951_s4 + $0xcc] sm:$0xf]  ;;  %v1770_v26 = vld [vmem:[%s2951_s4 + $0xd8] sm:$0xf0]  ;;  %v1712_v28 = vld [vmem:[%s2951_s4 + $0x60] sm:$0xf]  ;;  %v1737_v31 = vor.u32 %v2010_v23, %v1736_v22 }
  0x13   : > { %732 = vmatpush.bf16.msra.mxu0 %v1761_v10  ;;  %2064 = vmatpush.bf16.msra.mxu1 %v1761_v10  ;;  %v2005_v29 = vld [vmem:[%s2951_s4 + $0x6c] sm:$0xf0]  ;;  %v1720_v30 = vld [vmem:[%s2951_s4 + $0x68] sm:$0xf]  ;;  %v2006_v32 = vld [vmem:[%s2951_s4 + $0x74] sm:$0xf0]  ;;  %v1773_v33 = vor.u32 %v2016_v25, %v1770_v26 }
  0x14   : > { %790 = vmatpush.bf16.msra.mxu2 %v1769_v11  ;;  %818 = vmatpush.bf16.msra.mxu3 %v1789_v24  ;;  %v2012_v34 = vld [vmem:[%s2951_s4 + $0xac] sm:$0xf]  ;;  %v1754_v35 = vld [vmem:[%s2951_s4 + $0xb8] sm:$0xf0]  ;;  %s2965_s13 = smov (!%p417_p4, %s2119_s13), 1  ;;  %v1713_v36 = vor.u32 %v2005_v29, %v1712_v28  ;;  %v1721_v40 = vor.u32 %v2006_v32, %v1720_v30 }
  0x15   : > { %v1696_v37 = vld [vmem:[%s2951_s4 + $0x40] sm:$0xf]  ;;  %v2001_v38 = vld [vmem:[%s2951_s4 + $0x4c] sm:$0xf0]  ;;  %v1704_v41 = vld [vmem:[%s2951_s4 + $0x48] sm:$0xf]  ;;  %v1757_v43 = vor.u32 %v2012_v34, %v1754_v35  ;;  %s447_s20 = scalar_lea.vmem %s2956_s9, %s2965_s13 }
  0x16   : > { %v2295_v39 = vld [vmem:[%s2949_s2] ss:$0 sm:$0xff]  ;;  %v2002_v42 = vld [vmem:[%s2951_s4 + $0x54] sm:$0xf0]  ;;  %s1988_s11 = sshll.u32 %s2965_s13, 6  ;;  %v1697_v47 = vor.u32 %v2001_v38, %v1696_v37 }
  0x17   : > { %733 = vmatpush.bf16.msra.mxu0 %v1745_v16  ;;  %2065 = vmatpush.bf16.msra.mxu1 %v1745_v16  ;;  %s2309_s18 = scalar_lea.vmem %s2947_s0, %s1988_s11  ;;  %v2314_v44 = vld [vmem:[%s2950_s3] ss:$0 sm:$0xff]  ;;  %v2008_v45 = vld [vmem:[%s2951_s4 + $0x8c] sm:$0xf]  ;;  %v1738_v46 = vld [vmem:[%s2951_s4 + $0x98] sm:$0xf0]  ;;  %v1705_v55 = vor.u32 %v2002_v42, %v1704_v41  ;;  %s430_s28 = scalar_lea.vmem %s2948_s1, %s1988_s11 }
  0x18   : > { %791 = vmatpush.bf16.msra.mxu2 %v1753_v18  ;;  %819 = vmatpush.bf16.msra.mxu3 %v1773_v33  ;;  %v456_v48 = vld [vmem:[%s2309_s18] sm:$0xff]  ;;  %v457_v49 = vld [vmem:[%s2309_s18 + $0x8] sm:$0xff]  ;;  %v1997_v57 = vld [vmem:[%s2951_s4 + $0x2c] sm:$0xf0]  ;;  %v1741_v60 = vor.u32 %v2008_v45, %v1738_v46  ;;  %s1990_s11 = sshll.u32 %s2965_s13, 8 }
  0x19   : > { %v460_v50 = vld [vmem:[%s2309_s18 + $0x20] sm:$0xff]  ;;  %v468_v51 = vmul.f32 %v2295_v39, %v456_v48  ;;  %v469_v52 = vmul.f32 %v2295_v39, %v457_v49  ;;  %v461_v53 = vld [vmem:[%s2309_s18 + $0x28] sm:$0xff]  ;;  %v1998_v61 = vld [vmem:[%s2951_s4 + $0x34] sm:$0xf0]  ;;  %s2814_s12 = scalar_lea.vmem %s2955_s8, %s1990_s11 }
  0x1a   : > { %v472_v54 = vmul.f32 %v2295_v39, %v460_v50  ;;  %v1680_v56 = vld [vmem:[%s2951_s4 + $0x20] sm:$0xf]  ;;  %v1688_v58 = vld [vmem:[%s2951_s4 + $0x28] sm:$0xf]  ;;  %v473_v59 = vmul.f32 %v2295_v39, %v461_v53  ;;  %v2004_v62 = vld [vmem:[%s2951_s4 + $0x6c] sm:$0xf] }
  0x1b   : > { %734 = vmatpush.bf16.msra.mxu0 %v1729_v27  ;;  %2066 = vmatpush.bf16.msra.mxu1 %v1729_v27  ;;  %v1722_v63 = vld [vmem:[%s2951_s4 + $0x78] sm:$0xf0]  ;;  %v2349_v0 = vadd.f32 %v2314_v44, %v468_v51  ;;  %v480_v1 = vadd.f32 %v2314_v44, %v469_v52  ;;  %v1681_v4 = vor.u32 %v1997_v57, %v1680_v56  ;;  %v1664_v5 = vld [vmem:[%s2951_s4] sm:$0xf]  ;;  %v1993_v6 = vld [vmem:[%s2951_s4 + $0xc] sm:$0xf0] }
  0x1c   : > { %792 = vmatpush.bf16.msra.mxu2 %v1737_v31  ;;  %820 = vmatpush.bf16.msra.mxu3 %v1757_v43  ;;  %v483_v2 = vadd.f32 %v2314_v44, %v472_v54  ;;  %v484_v3 = vadd.f32 %v2314_v44, %v473_v59  ;;  %v1672_v7 = vld [vmem:[%s2951_s4 + $0x8] sm:$0xf]  ;;  %v1689_v8 = vor.u32 %v1998_v61, %v1688_v58  ;;  %v1994_v9 = vld [vmem:[%s2951_s4 + $0x14] sm:$0xf0]  ;;  %v2019_v10 = vld [vmem:[%s2951_s4 + $0xe4] sm:$0xf] }
  0x1d   : > { %v1778_v11 = vld [vmem:[%s2951_s4 + $0xf0] sm:$0xf0]  ;;  %v1725_v12 = vor.u32 %v2004_v62, %v1722_v63  ;;  %v1848_v13 = vld [vmem:[%s2952_s5 + $0x70] sm:$0xf]  ;;  %v2038_v14 = vld [vmem:[%s2952_s5 + $0x74] sm:$0xf0]  ;;  %v1665_v21 = vor.u32 %v1993_v6, %v1664_v5  ;;  %v1673_v23 = vor.u32 %v1994_v9, %v1672_v7 }
  0x1e   : > { %v2000_v15 = vld [vmem:[%s2951_s4 + $0x4c] sm:$0xf]  ;;  %v487_v16 = vmax.f32 %v2349_v0, 0.0  ;;  %v2382_v17 = vmax.f32 %v480_v1, 0.0  ;;  %v2384_v18 = vmax.f32 %v483_v2, 0.0  ;;  %v2386_v19 = vmax.f32 %v484_v3, 0.0 }
  0x1f   : > { %735 = vmatpush.bf16.msra.mxu0 %v1713_v36  ;;  %2067 = vmatpush.bf16.msra.mxu1 %v1713_v36  ;;  %v1706_v20 = vld [vmem:[%s2951_s4 + $0x58] sm:$0xf0]  ;;  %v2015_v22 = vld [vmem:[%s2951_s4 + $0xc4] sm:$0xf]  ;;  %v1781_v24 = vor.u32 %v2019_v10, %v1778_v11  ;;  %v1762_v25 = vld [vmem:[%s2951_s4 + $0xd0] sm:$0xf0]  ;;  %v1849_v28 = vor.u32 %v2038_v14, %v1848_v13 }
  0x20   : > { %793 = vmatpush.bf16.msra.mxu2 %v1721_v40  ;;  %821 = vmatpush.bf16.msra.mxu3 %v1741_v60  ;;  %v1840_v26 = vld [vmem:[%s2952_s5 + $0x60] sm:$0xf]  ;;  %v2036_v27 = vld [vmem:[%s2952_s5 + $0x64] sm:$0xf0]  ;;  %v1709_v29 = vor.u32 %v2000_v15, %v1706_v20  ;;  %v1996_v30 = vld [vmem:[%s2951_s4 + $0x2c] sm:$0xf]  ;;  %v2415_v33 = vpack.c.bf16 %v2382_v17, %v487_v16  ;;  %v2419_v34 = vpack.c.bf16 %v2386_v19, %v2384_v18 }
  0x21   : > { %v1936_v31 = vld [vmem:[%s2953_s6 + $0x70] sm:$0xf]  ;;  %v2054_v32 = vld [vmem:[%s2953_s6 + $0x74] sm:$0xf0]  ;;  %v1690_v35 = vld [vmem:[%s2951_s4 + $0x38] sm:$0xf0]  ;;  %v1765_v41 = vor.u32 %v2015_v22, %v1762_v25  ;;  %v1841_v42 = vor.u32 %v2036_v27, %v1840_v26 }
  0x22   : > { %v458_v36 = vld [vmem:[%s2309_s18 + $0x10] sm:$0xff]  ;;  %v459_v37 = vld [vmem:[%s2309_s18 + $0x18] sm:$0xff]  ;;  %v2011_v43 = vld [vmem:[%s2951_s4 + $0xa4] sm:$0xf]  ;;  %v1693_v49 = vor.u32 %v1996_v30, %v1690_v35 }
  0x23   : > { %736 = vmatpush.bf16.msra.mxu0 %v1697_v47  ;;  %2068 = vmatpush.bf16.msra.mxu1 %v1697_v47  ;;  %v462_v38 = vld [vmem:[%s2309_s18 + $0x30] sm:$0xff]  ;;  %v463_v40 = vld [vmem:[%s2309_s18 + $0x38] sm:$0xff]  ;;  %v1937_v47 = vor.u32 %v2054_v32, %v1936_v31  ;;  %v470_v50 = vmul.f32 %v2295_v39, %v458_v36  ;;  %v471_v51 = vmul.f32 %v2295_v39, %v459_v37  ;;  %v1928_v52 = vld [vmem:[%s2953_s6 + $0x60] sm:$0xf]  ;;  %s453_s18 = scalar_lea.vmem %s2957_s10, %s2965_s13 }
  0x24   : > { %794 = vmatpush.bf16.msra.mxu2 %v1705_v55  ;;  %822 = vmatpush.bf16.msra.mxu3 %v1725_v12  ;;  %v1746_v45 = vld [vmem:[%s2951_s4 + $0xb0] sm:$0xf0]  ;;  %v1832_v46 = vld [vmem:[%s2952_s5 + $0x50] sm:$0xf]  ;;  %v2034_v48 = vld [vmem:[%s2952_s5 + $0x54] sm:$0xf0]  ;;  %v474_v54 = vmul.f32 %v2295_v39, %v462_v38  ;;  %v475_v55 = vmul.f32 %v2295_v39, %v463_v40 }
  0x25   : > { %v2052_v53 = vld [vmem:[%s2953_s6 + $0x64] sm:$0xf0]  ;;  %v1992_v56 = vld [vmem:[%s2951_s4 + $0xc] sm:$0xf]  ;;  %v1674_v57 = vld [vmem:[%s2951_s4 + $0x18] sm:$0xf0]  ;;  %v1749_v60 = vor.u32 %v2011_v43, %v1746_v45  ;;  %v1833_v61 = vor.u32 %v2034_v48, %v1832_v46  ;;  %v481_v3 = vadd.f32 %v2314_v44, %v470_v50 }
  0x26   : > { %v2053_v58 = vld [vmem:[%s2953_s6 + $0x74] sm:$0xf]  ;;  %v1938_v59 = vld [vmem:[%s2953_s6 + $0x78] sm:$0xf0]  ;;  %v1929_v62 = vor.u32 %v2052_v53, %v1928_v52  ;;  %v2007_v63 = vld [vmem:[%s2951_s4 + $0x84] sm:$0xf]  ;;  %v1677_v5 = vor.u32 %v1992_v56, %v1674_v57  ;;  %v485_v7 = vadd.f32 %v2314_v44, %v474_v54 }
  0x27   : > { %737 = vmatpush.bf16.msra.mxu0 %v1681_v4  ;;  %2069 = vmatpush.bf16.msra.mxu1 %v1681_v4  ;;  %v1730_v1 = vld [vmem:[%s2951_s4 + $0x90] sm:$0xf0]  ;;  %v1824_v2 = vld [vmem:[%s2952_s5 + $0x40] sm:$0xf]  ;;  %v482_v4 = vadd.f32 %v2314_v44, %v471_v51  ;;  %v2032_v6 = vld [vmem:[%s2952_s5 + $0x44] sm:$0xf0]  ;;  %v1941_v9 = vor.u32 %v2053_v58, %v1938_v59 }
  0x28   : > { %795 = vmatpush.bf16.msra.mxu2 %v1689_v8  ;;  %823 = vmatpush.bf16.msra.mxu3 %v1709_v29  ;;  %v486_v8 = vadd.f32 %v2314_v44, %v475_v55  ;;  %v1920_v10 = vld [vmem:[%s2953_s6 + $0x50] sm:$0xf]  ;;  %v2050_v11 = vld [vmem:[%s2953_s6 + $0x54] sm:$0xf0]  ;;  %v2051_v12 = vld [vmem:[%s2953_s6 + $0x64] sm:$0xf]  ;;  %v1733_v14 = vor.u32 %v2007_v63, %v1730_v1 }
  0x29   : > { %v1930_v13 = vld [vmem:[%s2953_s6 + $0x68] sm:$0xf0]  ;;  %v2003_v15 = vld [vmem:[%s2951_s4 + $0x64] sm:$0xf]  ;;  %v1714_v20 = vld [vmem:[%s2951_s4 + $0x70] sm:$0xf0]  ;;  %v1921_v26 = vor.u32 %v2050_v11, %v1920_v10 }
  0x2a   : > { %v2499_v22 = vmax.f32 %v481_v3, 0.0  ;;  %v2030_v25 = vld [vmem:[%s2952_s5 + $0x34] sm:$0xf0]  ;;  %v2509_v27 = vmax.f32 %v485_v7, 0.0  ;;  %v1933_v29 = vor.u32 %v2051_v12, %v1930_v13  ;;  %v1912_v30 = vld [vmem:[%s2953_s6 + $0x40] sm:$0xf]  ;;  %v1717_v32 = vor.u32 %v2003_v15, %v1714_v20 }
  0x2b   : > { %738 = vmatpush.bf16.msra.mxu0 %v1665_v21  ;;  %2070 = vmatpush.bf16.msra.mxu1 %v1665_v21  ;;  %v1825_v21 = vor.u32 %v2032_v6, %v1824_v2  ;;  %v2048_v31 = vld [vmem:[%s2953_s6 + $0x44] sm:$0xf0]  ;;  %v2049_v35 = vld [vmem:[%s2953_s6 + $0x54] sm:$0xf]  ;;  %v1922_v36 = vld [vmem:[%s2953_s6 + $0x58] sm:$0xf0] }
  0x2c   : > { %796 = vmatpush.bf16.msra.mxu2 %v1673_v23  ;;  %824 = vmatpush.bf16.msra.mxu3 %v1693_v49  ;;  %v2501_v23 = vmax.f32 %v482_v4, 0.0  ;;  %v1999_v38 = vld [vmem:[%s2951_s4 + $0x44] sm:$0xf]  ;;  %v1698_v40 = vld [vmem:[%s2951_s4 + $0x50] sm:$0xf0]  ;;  %v503_v49 = vlaneseq  ;;  %v1925_v50 = vor.u32 %v2049_v35, %v1922_v36  ;;  %v2568_v58 = vrot.slane %v487_v16, 1 }
  0x2d   : > { %v2028_v46 = vld [vmem:[%s2952_s5 + $0x24] sm:$0xf0]  ;;  %v2046_v48 = vld [vmem:[%s2953_s6 + $0x34] sm:$0xf0]  ;;  %v1701_v51 = vor.u32 %v1999_v38, %v1698_v40  ;;  %v1995_v53 = vld [vmem:[%s2951_s4 + $0x24] sm:$0xf] }
  0x2e   : > { %739 = vmatmul.bf16.vlgmr.msra.gmra.mxu0 %v2415_v33  ;;  %749 = vmatmul.bf16.vlgmr.msra.gmra.mxu1 %v2419_v34  ;;  %v2537_v43 = vpack.c.bf16 %v2501_v23, %v2499_v22  ;;  %v1682_v54 = vld [vmem:[%s2951_s4 + $0x30] sm:$0xf0]  ;;  %v1800_v56 = vld [vmem:[%s2952_s5 + $0x10] sm:$0xf]  ;;  %v2026_v57 = vld [vmem:[%s2952_s5 + $0x14] sm:$0xf0] }
  0x2f   : > { %760 = vmatpush.bf16.msrb.mxu1 %v1781_v24  ;;  %947 = vmatpush.bf16.msrb.mxu0 %v1849_v28  ;;  %v1816_v24 = vld [vmem:[%s2952_s5 + $0x30] sm:$0xf]  ;;  %v2511_v28 = vmax.f32 %v486_v8, 0.0  ;;  %v1991_v59 = vld [vmem:[%s2951_s4 + $0x4] sm:$0xf]  ;;  %v1801_v2 = vor.u32 %v2026_v57, %v1800_v56  ;;  %v2595_v4 = vrot.slane %v2382_v17, 1 }
  0x30   : > { %797 = vmatmul.bf16.vlgmr.msra.gmra.mxu2 %v2415_v33  ;;  %825 = vmatpush.bf16.msra.mxu3 %v1677_v5  ;;  %v1817_v37 = vor.u32 %v2030_v25, %v1816_v24  ;;  %v1792_v0 = vld [vmem:[%s2952_s5] sm:$0xf]  ;;  %v2047_v16 = vld [vmem:[%s2953_s6 + $0x44] sm:$0xf]  ;;  %v1914_v63 = vld [vmem:[%s2953_s6 + $0x48] sm:$0xf0] }
  0x31   : > { %1105 = vmatpush.bf16.msrb.mxu2 %v1937_v47  ;;  %v2541_v45 = vpack.c.bf16 %v2511_v28, %v2509_v27  ;;  %v1904_v47 = vld [vmem:[%s2953_s6 + $0x30] sm:$0xf]  ;;  %v1896_v1 = vld [vmem:[%s2953_s6 + $0x20] sm:$0xf]  ;;  %v2024_v3 = vld [vmem:[%s2952_s5 + $0x4] sm:$0xf0]  ;;  %v1917_v6 = vor.u32 %v2047_v16, %v1914_v63 }
  0x32   : > { %v1905_v55 = vor.u32 %v2046_v48, %v1904_v47  ;;  %v508_v5 = vrot.slane %v2499_v22, 1  ;;  %v2044_v7 = vld [vmem:[%s2953_s6 + $0x24] sm:$0xf0]  ;;  %v2037_v8 = vld [vmem:[%s2952_s5 + $0x74] sm:$0xf]  ;;  %v2059_v16 = vld [vmem:[%s2954_s7 + $0x20] sm:$0xff] }
  0x33   : > { %761 = vmatpush.bf16.msrb.mxu1 %v1765_v41  ;;  %948 = vmatpush.bf16.msrb.mxu0 %v1841_v42  ;;  %v1808_v41 = vld [vmem:[%s2952_s5 + $0x20] sm:$0xf]  ;;  %v1913_v42 = vor.u32 %v2048_v31, %v1912_v30  ;;  %v1897_v10 = vor.u32 %v2044_v7, %v1896_v1  ;;  %v1888_v11 = vld [vmem:[%s2953_s6 + $0x10] sm:$0xf]  ;;  %v2042_v12 = vld [vmem:[%s2953_s6 + $0x14] sm:$0xf0] }
  0x34   : > { %1134 = vmatpush.bf16.msrb.mxu3 %v1941_v9  ;;  %v1809_v52 = vor.u32 %v2028_v46, %v1808_v41  ;;  %v1850_v9 = vld [vmem:[%s2952_s5 + $0x78] sm:$0xf0]  ;;  %v2045_v13 = vld [vmem:[%s2953_s6 + $0x34] sm:$0xf]  ;;  %v2035_v25 = vld [vmem:[%s2952_s5 + $0x64] sm:$0xf]  ;;  %v1889_v30 = vor.u32 %v2042_v12, %v1888_v11 }
  0x35   : > { %1106 = vmatpush.bf16.msrb.mxu2 %v1929_v62  ;;  %826 = vmatmul.bf16.vlgmr.msra.gmra.mxu3 %v2415_v33  ;;  %v1685_v62 = vor.u32 %v1995_v53, %v1682_v54  ;;  %v1853_v24 = vor.u32 %v2037_v8, %v1850_v9  ;;  %v1880_v36 = vld [vmem:[%s2953_s6] sm:$0xf]  ;;  %v2033_v40 = vld [vmem:[%s2952_s5 + $0x54] sm:$0xf]  ;;  %v1834_v41 = vld [vmem:[%s2952_s5 + $0x58] sm:$0xf0]  ;;  %v1006_v9 = vpack.c.bf16 %v2384_v18, %v2501_v23 }
  0x36   : > { %v2061_v46 = vld [vmem:[%s2954_s7 + $0x30] sm:$0xff]  ;;  %v1837_v48 = vor.u32 %v2033_v40, %v1834_v41  ;;  %v1890_v56 = vld [vmem:[%s2953_s6 + $0x18] sm:$0xf0]  ;;  %v2027_v1 = vld [vmem:[%s2952_s5 + $0x24] sm:$0xf] }
  0x37   : > { %762 = vmatpush.bf16.msrb.mxu1 %v1749_v60  ;;  %949 = vmatpush.bf16.msrb.mxu0 %v1833_v61  ;;  %v1666_v60 = vld [vmem:[%s2951_s4 + $0x10] sm:$0xf0]  ;;  %v2577_v61 = vshrl.u32 %v503_v49, 7  ;;  %v2031_v49 = vld [vmem:[%s2952_s5 + $0x44] sm:$0xf] }
  0x38   : > { %1135 = vmatpush.bf16.msrb.mxu3 %v1933_v29  ;;  %v1669_v15 = vor.u32 %v1991_v59, %v1666_v60  ;;  %v2062_v29 = vld [vmem:[%s2954_s7 + $0x38] sm:$0xff]  ;;  %v2029_v57 = vld [vmem:[%s2952_s5 + $0x34] sm:$0xf] }
  0x39   : > { %1107 = vmatpush.bf16.msrb.mxu2 %v1921_v26  ;;  %vm505_vm0 = vcmp.lt.s32.totalorder %v2577_v61, 7  ;;  %v1842_v26 = vld [vmem:[%s2952_s5 + $0x68] sm:$0xf0]  ;;  %v1818_v59 = vld [vmem:[%s2952_s5 + $0x38] sm:$0xf0] }
  0x3a   : > { %v2634_v31 = vsel %vm505_vm0, %v2595_v4, %v508_v5  ;;  %v1845_v35 = vor.u32 %v2035_v25, %v1842_v26  ;;  %vm2659_vm1 = vmpackc.low %vm505_vm0, %vm505_vm0  ;;  %v1821_v63 = vor.u32 %v2029_v57, %v1818_v59  ;;  %v2025_v11 = vld [vmem:[%s2952_s5 + $0x14] sm:$0xf]  ;;  %v2056_v25 = vld [vmem:[%s2954_s7 + $0x8] sm:$0xff] }
  0x3b   : > { %763 = vmatpush.bf16.msrb.mxu1 %v1733_v14  ;;  %950 = vmatpush.bf16.msrb.mxu0 %v1825_v21  ;;  %v1906_v14 = vld [vmem:[%s2953_s6 + $0x38] sm:$0xf0]  ;;  %v1793_v21 = vor.u32 %v2024_v3, %v1792_v0  ;;  %v510_v0 = vrot.slane %v2384_v18, 1 }
  0x3c   : > { %1136 = vmatpush.bf16.msrb.mxu3 %v1925_v50  ;;  %v1909_v20 = vor.u32 %v2045_v13, %v1906_v14  ;;  %v1826_v50 = vld [vmem:[%s2952_s5 + $0x48] sm:$0xf0]  ;;  %v1802_v18 = vld [vmem:[%s2952_s5 + $0x18] sm:$0xf0]  ;;  %v2023_v13 = vld [vmem:[%s2952_s5 + $0x4] sm:$0xf] }
  0x3d   : > { %1108 = vmatpush.bf16.msrb.mxu2 %v1913_v42  ;;  %v1829_v54 = vor.u32 %v2031_v49, %v1826_v50  ;;  %v1805_v12 = vor.u32 %v2025_v11, %v1802_v18  ;;  %v1794_v14 = vld [vmem:[%s2952_s5 + $0x8] sm:$0xf0] }
  0x3e   : > { %744 = vmatmul.bf16.gmra.mxu0 %v2537_v43  ;;  %754 = vmatmul.bf16.gmra.mxu1 %v2541_v45 }
  0x3f   : > { %764 = vmatpush.bf16.msrb.mxu1 %v1717_v32  ;;  %951 = vmatpush.bf16.msrb.mxu0 %v1817_v37  ;;  %v520_v32 = vsel %vm505_vm0, %v2568_v58, %v2595_v4  ;;  %v2040_v37 = vld [vmem:[%s2953_s6 + $0x4] sm:$0xf0] }
  0x40   : > { %802 = vmatmul.bf16.gmra.mxu2 %v2537_v43  ;;  %1137 = vmatpush.bf16.msrb.mxu3 %v1917_v6  ;;  %v2648_v38 = vpack.c.bf16 %v2634_v31, %v520_v32  ;;  %v1881_v47 = vor.u32 %v2040_v37, %v1880_v36  ;;  %v1005_v32 = vpack.c.bf16 %v2499_v22, %v2382_v17  ;;  %v513_v36 = vrot.slane %v2511_v28, 1  ;;  %v464_v22 = vld [vmem:[%s430_s28] sm:$0xff] }
  0x41   : > { %1109 = vmatpush.bf16.msrb.mxu2 %v1905_v55  ;;  %v2041_v55 = vld [vmem:[%s2953_s6 + $0x14] sm:$0xf] }
  0x42   : > { %v1893_v60 = vor.u32 %v2041_v55, %v1890_v56  ;;  %v521_v17 = vsel %vm505_vm0, %v513_v36, %v2568_v58  ;;  %v1007_v58 = vpack.c.bf16 %v2509_v27, %v2386_v19 }
  0x43   : > { %765 = vmatpush.bf16.msrb.mxu1 %v1701_v51  ;;  %952 = vmatpush.bf16.msrb.mxu0 %v1809_v52  ;;  %v2060_v51 = vld [vmem:[%s2954_s7 + $0x28] sm:$0xff] }
  0x44   : > { %1138 = vmatpush.bf16.msrb.mxu3 %v1909_v20  ;;  %v1898_v52 = vld [vmem:[%s2953_s6 + $0x28] sm:$0xf0]  ;;  %v2057_v20 = vld [vmem:[%s2954_s7 + $0x10] sm:$0xff] }
  0x45   : > { %1110 = vmatpush.bf16.msrb.mxu2 %v1897_v10  ;;  %831 = vmatmul.bf16.gmra.mxu3 %v2537_v43  ;;  %v2039_v10 = vld [vmem:[%s2953_s6 + $0x4] sm:$0xf] }
  0x47   : > { %766 = vmatpush.bf16.msrb.mxu1 %v1685_v62  ;;  %953 = vmatpush.bf16.msrb.mxu0 %v1801_v2  ;;  %v509_v62 = vrot.slane %v2501_v23, 1  ;;  %v1810_v2 = vld [vmem:[%s2952_s5 + $0x28] sm:$0xf0] }
  0x48   : > { %v1813_v7 = vor.u32 %v2027_v1, %v1810_v2 }
  0x49   : > { %1111 = vmatpush.bf16.msrb.mxu2 %v1889_v30  ;;  %v2711_v3 = vsel %vm505_vm0, %v509_v62, %v510_v0  ;;  %v2717_v6 = vsel %vm505_vm0, %v508_v5, %v509_v62  ;;  %v1882_v5 = vld [vmem:[%s2953_s6 + $0x8] sm:$0xf0] }
  0x4a   : > { %v2722_v8 = vpack.c.bf16 %v2711_v3, %v2717_v6  ;;  %v1885_v23 = vor.u32 %v2039_v10, %v1882_v5  ;;  %v1975_v40 = vpack.c.bf16 %v2717_v6, %v2634_v31 }
  0x4b   : > { %767 = vmatpush.bf16.msrb.mxu1 %v1669_v15  ;;  %954 = vmatpush.bf16.msrb.mxu0 %v1793_v21  ;;  %v1797_v15 = vor.u32 %v2023_v13, %v1794_v14  ;;  %v511_v21 = vrot.slane %v2386_v19, 1 }
  0x4d   : > { %1112 = vmatpush.bf16.msrb.mxu2 %v1881_v47 }
  0x4e   : > { %768 = vmatmul.bf16.vlgmr.msrb.gmra.mxu1 %v2415_v33  ;;  %1856 = vmatmul.msk.bf16.vlgmr.msrb.gmra.mxu0 %vm2659_vm1, %v2648_v38  ;;  %v2043_v33 = vld [vmem:[%s2953_s6 + $0x24] sm:$0xf] }
  0x4f   : > { %976 = vmatpush.bf16.msra.mxu1 %v1853_v24  ;;  %1231 = vmatpush.bf16.msra.mxu0 %v2062_v29  ;;  %v1901_v53 = vor.u32 %v2043_v33, %v1898_v52  ;;  %v512_v24 = vrot.slane %v2509_v27, 1 }
  0x50   : > { %807 = vmatmul.bf16.gmra.mxu2 %v2419_v34 }
  0x51   : > { %2071 = vmatpush.bf16.msra.mxu2 %v2062_v29  ;;  %1139 = vmatpush.bf16.msrb.mxu3 %v1901_v53  ;;  %v515_v26 = vsel %vm505_vm0, %v511_v21, %v512_v24  ;;  %v516_v29 = vsel %vm505_vm0, %v510_v0, %v511_v21  ;;  %v514_v37 = vsel %vm505_vm0, %v512_v24, %v513_v36 }
  0x52   : > { %v1861_v30 = vpack.c.bf16 %v515_v26, %v516_v29  ;;  %v1978_v31 = vpack.c.bf16 %v516_v29, %v2711_v3  ;;  %v1981_v27 = vpack.c.bf16 %v514_v37, %v515_v26 }
  0x53   : > { %977 = vmatpush.bf16.msra.mxu1 %v1845_v35  ;;  %1232 = vmatpush.bf16.msra.mxu0 %v2061_v46  ;;  %v2055_v35 = vld [vmem:[%s2954_s7] sm:$0xff] }
  0x55   : > { %2072 = vmatpush.bf16.msra.mxu2 %v2061_v46  ;;  %1140 = vmatpush.bf16.msrb.mxu3 %v1893_v60 }
  0x56   : > { %836 = vmatmul.bf16.gmra.mxu3 %v2419_v34 }
  0x57   : > { %978 = vmatpush.bf16.msra.mxu1 %v1837_v48  ;;  %1233 = vmatpush.bf16.msra.mxu0 %v2060_v51 }
  0x59   : > { %2073 = vmatpush.bf16.msra.mxu2 %v2060_v51  ;;  %1141 = vmatpush.bf16.msrb.mxu3 %v1885_v23 }
  0x5b   : > { %979 = vmatpush.bf16.msra.mxu1 %v1829_v54  ;;  %1234 = vmatpush.bf16.msra.mxu0 %v2059_v16 }
  0x5d   : > { %2074 = vmatpush.bf16.msra.mxu2 %v2059_v16 }
  0x5e   : > { %773 = vmatmul.bf16.gmra.mxu1 %v2537_v43  ;;  %1859 = vmatmul.msk.bf16.gmra.mxu0 %vm2659_vm1, %v2722_v8  ;;  %v2058_v43 = vld [vmem:[%s2954_s7 + $0x18] sm:$0xff] }
  0x5f   : > { %980 = vmatpush.bf16.msra.mxu1 %v1821_v63  ;;  %1235 = vmatpush.bf16.msra.mxu0 %v2058_v43 }
  0x60   : > { %812 = vmatmul.bf16.gmra.mxu2 %v2541_v45 }
  0x61   : > { %2075 = vmatpush.bf16.msra.mxu2 %v2058_v43 }
  0x63   : > { %981 = vmatpush.bf16.msra.mxu1 %v1813_v7  ;;  %1236 = vmatpush.bf16.msra.mxu0 %v2057_v20 }
  0x65   : > { %2076 = vmatpush.bf16.msra.mxu2 %v2057_v20 }
  0x66   : > { %841 = vmatmul.bf16.gmra.mxu3 %v2541_v45 }
  0x67   : > { %982 = vmatpush.bf16.msra.mxu1 %v1805_v12  ;;  %1237 = vmatpush.bf16.msra.mxu0 %v2056_v25 }
  0x69   : > { %2077 = vmatpush.bf16.msra.mxu2 %v2056_v25 }
  0x6b   : > { %983 = vmatpush.bf16.msra.mxu1 %v1797_v15  ;;  %1238 = vmatpush.bf16.msra.mxu0 %v2055_v35 }
  0x6d   : > { %2078 = vmatpush.bf16.msra.mxu2 %v2055_v35 }
  0x6e   : > { %778 = vmatmul.bf16.gmra.mxu1 %v2419_v34  ;;  %1862 = vmatmul.msk.bf16.gmra.mxu0 %vm2659_vm1, %v1861_v30  ;;  %v1864_v34 = vpack.c.bf16 %v521_v17, %v514_v37 }
  0x70   : > { %1113 = vmatmul.bf16.vlgmr.msrb.gmra.mxu2 %v1005_v32 }
  0x76   : > { %1142 = vmatmul.bf16.vlgmr.msrb.gmra.mxu3 %v1005_v32 }
  0x7e   : > { %783 = vmatmul.bf16.gmra.mxu1 %v2541_v45  ;;  %1865 = vmatmul.msk.bf16.gmra.mxu0 %vm2659_vm1, %v1864_v34  ;;  %v495_v45 = vmul.f32 %v2295_v39, %v464_v22 }
  0x80   : > { %1118 = vmatmul.bf16.gmra.mxu2 %v1006_v9  ;;  %v496_v41 = vadd.f32 %v2314_v44, %v495_v45 }
  0x82   : > { %v497_v46 = vmax.f32 %v496_v41, 0.0 }
  0x84   : > { %v502_v47 = vmul.f32 0.0, %v497_v46 }
  0x86   : > { %1147 = vmatmul.bf16.gmra.mxu3 %v1006_v9  ;;  %v1008_v48 = vpack.c.bf16 %v502_v47, %v2511_v28  ;;  %v530_v39 = vrot.slane %v502_v47, 1 }
  0x88   : > { %v531_v44 = vsel %vm505_vm0, %v513_v36, %v530_v39  ;;  %v532_v19 = vsel %vm505_vm0, %v530_v39, %v2595_v4 }
  0x89   : > { %v1984_v28 = vpack.c.bf16 %v532_v19, %v531_v44 }
  0x8e   : > { %1868 = vmatmul.msk.bf16.vlgmr.msra.gmra.mxu1 %vm2659_vm1, %v2648_v38  ;;  %1976 = vmatmul.msk.bf16.vlgmr.msra.gmra.mxu0 %vm2659_vm1, %v1975_v40 }
  0x90   : > { %1123 = vmatmul.bf16.gmra.mxu2 %v1007_v58 }
  0x96   : > { %1152 = vmatmul.bf16.gmra.mxu3 %v1007_v58 }
  0x9e   : > { %1871 = vmatmul.msk.bf16.gmra.mxu1 %vm2659_vm1, %v2722_v8  ;;  %1979 = vmatmul.msk.bf16.gmra.mxu0 %vm2659_vm1, %v1978_v31 }
  0xa0   : > { %1128 = vmatmul.bf16.gmra.mxu2 %v1008_v48 }
  0xa6   : > { %1157 = vmatmul.bf16.gmra.mxu3 %v1008_v48 }
  0xab   : > { %v740_v38 = vpop.f32.mrf.mxu0  ;;  %v750_v49 = vpop.f32.mrf.mxu1 }
  0xac   : > { %1300 = vst [vmem:[%s2814_s12] sm:$0xff] %v740_v38  ;;  %v1387_v61 = vmul.f32 %v740_v38, %v740_v38  ;;  %v1391_v6 = vmul.f32 %v750_v49, %v750_v49 }
  0xad   : > { %1304 = vst [vmem:[%s2814_s12 + $0x80] sm:$0xff] %v750_v49 }
  0xae   : > { %1874 = vmatmul.msk.bf16.gmra.mxu1 %vm2659_vm1, %v1861_v30  ;;  %1982 = vmatmul.msk.bf16.gmra.mxu0 %vm2659_vm1, %v1981_v27 }
  0xb0   : > { %1985 = vmatmul.msk.bf16.vlgmr.msra.gmra.mxu2 %vm2659_vm1, %v1984_v28 }
  0xb3   : > { %v2824_v4 = vpop.f32.mrf.mxu2  ;;  %v742_v50 = vpop.f32.mrf.mxu0 }
  0xb4   : > { %v752_v51 = vpop.f32.mrf.mxu1  ;;  %1301 = vst [vmem:[%s2814_s12 + $0x20] sm:$0xff] %v742_v50  ;;  %v1332_v33 = vadd.f32 %v742_v50, %v740_v38  ;;  %v1388_v52 = vmul.f32 %v742_v50, %v742_v50 }
  0xb5   : > { %1305 = vst [vmem:[%s2814_s12 + $0xa0] sm:$0xff] %v752_v51  ;;  %v1392_v9 = vmul.f32 %v752_v51, %v752_v51 }
  0xb6   : > { %v1395_v53 = vadd.f32 %v1388_v52, %v1387_v61 }
  0xb8   : > { %v2831_v60 = vpop.f32.mrf.mxu3 }
  0xbb   : > { %v2828_v54 = vpop.f32.mrf.mxu2  ;;  %v745_v55 = vpop.f32.mrf.mxu0 }
  0xbc   : > { %v755_v56 = vpop.f32.mrf.mxu1  ;;  %1302 = vst [vmem:[%s2814_s12 + $0x40] sm:$0xff] %v745_v55  ;;  %v1333_v57 = vadd.f32 %v1332_v33, %v745_v55  ;;  %v1389_v59 = vmul.f32 %v745_v55, %v745_v55 }
  0xbd   : > { %1306 = vst [vmem:[%s2814_s12 + $0xc0] sm:$0xff] %v755_v56  ;;  %v1393_v11 = vmul.f32 %v755_v56, %v755_v56 }
  0xbe   : > { %v1396_v62 = vadd.f32 %v1395_v53, %v1389_v59  ;;  %1877 = vmatmul.msk.bf16.gmra.mxu1 %vm2659_vm1, %v1864_v34 }
  0xc0   : > { %v2839_v3 = vpop.f32.mrf.mxu3 }
  0xc3   : > { %v2836_v0 = vpop.f32.mrf.mxu2  ;;  %v747_v16 = vpop.f32.mrf.mxu0 }
  0xc4   : > { %v757_v63 = vpop.f32.mrf.mxu1  ;;  %1303 = vst [vmem:[%s2814_s12 + $0x60] sm:$0xff] %v747_v16  ;;  %v1334_v1 = vadd.f32 %v1333_v57, %v747_v16  ;;  %v1390_v2 = vmul.f32 %v747_v16, %v747_v16 }
  0xc5   : > { %1307 = vst [vmem:[%s2814_s12 + $0xe0] sm:$0xff] %v757_v63  ;;  %v1394_v14 = vmul.f32 %v757_v63, %v757_v63 }
  0xc6   : > { %v1335_v7 = vadd.f32 %v1334_v1, %v750_v49  ;;  %v1397_v8 = vadd.f32 %v1396_v62, %v1390_v2 }
  0xc8   : > { %v1398_v10 = vadd.f32 %v1397_v8, %v1391_v6  ;;  %v1336_v5 = vadd.f32 %v1335_v7, %v752_v51  ;;  %v2846_v21 = vpop.f32.mrf.mxu3 }
  0xca   : > { %v1337_v42 = vadd.f32 %v1336_v5, %v755_v56  ;;  %v1399_v18 = vadd.f32 %v1398_v10, %v1392_v9 }
  0xcb   : > { %v2842_v23 = vpop.f32.mrf.mxu2  ;;  %v956_v43 = vpop.f32.mrf.mxu0 }
  0xcc   : > { %v769_v12 = vpop.f32.mrf.mxu1  ;;  %v2844_v13 = vadd.f32 %v1337_v42, %v757_v63  ;;  %v1400_v15 = vadd.f32 %v1399_v18, %v1393_v11 }
  0xcd   : > { %v1260_v20 = vadd.f32 %v956_v43, %v769_v12 }
  0xce   : > { %v2848_v24 = vadd.f32 %v1400_v15, %v1394_v14  ;;  %v1339_v18 = vrot.slane %v2844_v13, 4 }
  0xcf   : > { %1308 = vst [vmem:[%s2814_s12 + $0x8] sm:$0xff] %v1260_v20  ;;  %v1408_v35 = vmul.f32 %v1260_v20, %v1260_v20 }
  0xd0   : > { %v2853_v32 = vpop.f32.mrf.mxu3 }
  0xd3   : > { %v2851_v25 = vpop.f32.mrf.mxu2  ;;  %v958_v29 = vpop.f32.mrf.mxu0 }
  0xd4   : > { %v771_v26 = vpop.f32.mrf.mxu1 }
  0xd5   : > { %v1261_v30 = vadd.f32 %v958_v29, %v771_v26 }
  0xd7   : > { %1309 = vst [vmem:[%s2814_s12 + $0x28] sm:$0xff] %v1261_v30  ;;  %v1345_v36 = vadd.f32 %v1261_v30, %v1260_v20  ;;  %v1409_v37 = vmul.f32 %v1261_v30, %v1261_v30  ;;  %v1402_v20 = vrot.slane %v2848_v24, 4 }
  0xd9   : > { %v1416_v17 = vadd.f32 %v1409_v37, %v1408_v35  ;;  %v2858_v45 = vpop.f32.mrf.mxu3  ;;  %v1403_v37 = vadd.f32 %v1402_v20, %v2848_v24 }
  0xdb   : > { %v2856_v34 = vpop.f32.mrf.mxu2  ;;  %v961_v40 = vpop.f32.mrf.mxu0 }
  0xdc   : > { %v774_v22 = vpop.f32.mrf.mxu1 }
  0xdd   : > { %v1262_v58 = vadd.f32 %v961_v40, %v774_v22 }
  0xdf   : > { %1310 = vst [vmem:[%s2814_s12 + $0x48] sm:$0xff] %v1262_v58  ;;  %v1346_v41 = vadd.f32 %v1345_v36, %v1262_v58  ;;  %v1410_v46 = vmul.f32 %v1262_v58, %v1262_v58 }
  0xe1   : > { %v1417_v47 = vadd.f32 %v1416_v17, %v1410_v46  ;;  %v2863_v19 = vpop.f32.mrf.mxu3 }
  0xe3   : > { %v2861_v31 = vpop.f32.mrf.mxu2  ;;  %v963_v39 = vpop.f32.mrf.mxu0 }
  0xe4   : > { %v776_v48 = vpop.f32.mrf.mxu1 }
  0xe5   : > { %v1263_v44 = vadd.f32 %v963_v39, %v776_v48  ;;  %v1404_v48 = vrot.slane %v1403_v37, 2 }
  0xe7   : > { %1311 = vst [vmem:[%s2814_s12 + $0x68] sm:$0xff] %v1263_v44  ;;  %v1347_v27 = vadd.f32 %v1346_v41, %v1263_v44  ;;  %v1411_v28 = vmul.f32 %v1263_v44, %v1263_v44 }
  0xe9   : > { %v1418_v38 = vadd.f32 %v1417_v47, %v1411_v28  ;;  %v2868_v33 = vpop.f32.mrf.mxu3 }
  0xeb   : > { %v2866_v49 = vpop.f32.mrf.mxu2  ;;  %v966_v50 = vpop.f32.mrf.mxu0 }
  0xec   : > { %v779_v61 = vpop.f32.mrf.mxu1 }
  0xed   : > { %v1264_v51 = vadd.f32 %v966_v50, %v779_v61 }
  0xef   : > { %1312 = vst [vmem:[%s2814_s12 + $0x88] sm:$0xff] %v1264_v51  ;;  %v1348_v52 = vadd.f32 %v1347_v27, %v1264_v51  ;;  %v1412_v53 = vmul.f32 %v1264_v51, %v1264_v51  ;;  %v1405_v51 = vadd.f32 %v1404_v48, %v1403_v37 }
  0xf1   : > { %v1419_v55 = vadd.f32 %v1418_v38, %v1412_v53  ;;  %v2872_v63 = vpop.f32.mrf.mxu3 }
  0xf3   : > { %v1114_v56 = vpop.f32.mrf.mxu2  ;;  %v968_v62 = vpop.f32.mrf.mxu0 }
  0xf4   : > { %v1268_v57 = vadd.f32 %v1114_v56, %v2824_v4  ;;  %v781_v59 = vpop.f32.mrf.mxu1 }
  0xf5   : > { %v1265_v16 = vadd.f32 %v968_v62, %v781_v59 }
  0xf6   : > { %1316 = vst [vmem:[%s2814_s12 + $0x10] sm:$0xff] %v1268_v57  ;;  %v1430_v11 = vmul.f32 %v1268_v57, %v1268_v57 }
  0xf7   : > { %1313 = vst [vmem:[%s2814_s12 + $0xa8] sm:$0xff] %v1265_v16  ;;  %v1349_v1 = vadd.f32 %v1348_v52, %v1265_v16  ;;  %v1413_v2 = vmul.f32 %v1265_v16, %v1265_v16 }
  0xf9   : > { %v1420_v6 = vadd.f32 %v1419_v55, %v1413_v2  ;;  %v1143_v14 = vpop.f32.mrf.mxu3 }
  0xfb   : > { %v1116_v7 = vpop.f32.mrf.mxu2  ;;  %v971_v10 = vpop.f32.mrf.mxu0 }
  0xfc   : > { %v1269_v8 = vadd.f32 %v1116_v7, %v2828_v54  ;;  %v784_v9 = vpop.f32.mrf.mxu1  ;;  %v1340_v54 = vadd.f32 %v1339_v18, %v2844_v13 }
  0xfd   : > { %v1266_v5 = vadd.f32 %v971_v10, %v784_v9 }
  0xfe   : > { %1317 = vst [vmem:[%s2814_s12 + $0x30] sm:$0xff] %v1269_v8  ;;  %v1359_v4 = vadd.f32 %v1269_v8, %v1268_v57  ;;  %v1431_v42 = vmul.f32 %v1269_v8, %v1269_v8  ;;  %v1341_v58 = vrot.slane %v1340_v54, 2 }
  0xff   : > { %1314 = vst [vmem:[%s2814_s12 + $0xc8] sm:$0xff] %v1266_v5  ;;  %v1350_v12 = vadd.f32 %v1349_v1, %v1266_v5  ;;  %v1414_v43 = vmul.f32 %v1266_v5, %v1266_v5 }
 0x100   : > { %v1438_v15 = vadd.f32 %v1431_v42, %v1430_v11  ;;  %v1342_v27 = vadd.f32 %v1341_v58, %v1340_v54 }
 0x101   : > { %v1421_v26 = vadd.f32 %v1420_v6, %v1414_v43  ;;  %v1145_v44 = vpop.f32.mrf.mxu3  ;;  %v1406_v6 = vrot.slane %v1405_v51, 1 }
 0x102   : > { %v1343_v59 = vrot.slane %v1342_v27, 1 }
 0x103   : > { %v1119_v29 = vpop.f32.mrf.mxu2  ;;  %v973_v36 = vpop.f32.mrf.mxu0 }
 0x104   : > { %v1270_v30 = vadd.f32 %v1119_v29, %v2836_v0  ;;  %v786_v35 = vpop.f32.mrf.mxu1  ;;  %v1344_v9 = vadd.f32 %v1343_v59, %v1342_v27 }
 0x105   : > { %v1267_v17 = vadd.f32 %v973_v36, %v786_v35 }
 0x106   : > { %1318 = vst [vmem:[%s2814_s12 + $0x50] sm:$0xff] %v1270_v30  ;;  %v1360_v22 = vadd.f32 %v1359_v4, %v1270_v30  ;;  %v1432_v40 = vmul.f32 %v1270_v30, %v1270_v30 }
 0x107   : > { %1315 = vst [vmem:[%s2814_s12 + $0xe8] sm:$0xff] %v1267_v17  ;;  %v1351_v41 = vadd.f32 %v1350_v12, %v1267_v17  ;;  %v1415_v46 = vmul.f32 %v1267_v17, %v1267_v17  ;;  %v1407_v12 = vadd.f32 %v1406_v6, %v1405_v51 }
 0x108   : > { %v1439_v47 = vadd.f32 %v1438_v15, %v1432_v40 }
 0x109   : > { %v1352_v39 = vrot.slane %v1351_v41, 4  ;;  %v1422_v13 = vadd.f32 %v1421_v26, %v1415_v46  ;;  %v1148_v11 = vpop.f32.mrf.mxu3 }
 0x10b   : > { %v1353_v0 = vadd.f32 %v1352_v39, %v1351_v41  ;;  %v1423_v28 = vrot.slane %v1422_v13, 4  ;;  %v1121_v38 = vpop.f32.mrf.mxu2  ;;  %v1240_v50 = vpop.f32.mrf.mxu0 }
 0x10c   : > { %v1271_v24 = vadd.f32 %v1121_v38, %v2842_v23  ;;  %v985_v61 = vpop.f32.mrf.mxu1 }
 0x10d   : > { %v1354_v52 = vrot.slane %v1353_v0, 2  ;;  %v1424_v53 = vadd.f32 %v1423_v28, %v1422_v13  ;;  %v1276_v55 = vadd.f32 %v985_v61, %v2831_v60 }
 0x10e   : > { %1319 = vst [vmem:[%s2814_s12 + $0x70] sm:$0xff] %v1271_v24  ;;  %v1361_v56 = vadd.f32 %v1360_v22, %v1271_v24  ;;  %v1433_v57 = vmul.f32 %v1271_v24, %v1271_v24 }
 0x10f   : > { %v1355_v62 = vadd.f32 %v1354_v52, %v1353_v0  ;;  %v1425_v16 = vrot.slane %v1424_v53, 2  ;;  %v1284_v1 = vadd.f32 %v1276_v55, %v1143_v14 }
 0x110   : > { %v1440_v2 = vadd.f32 %v1439_v47, %v1433_v57 }
 0x111   : > { %v1356_v7 = vrot.slane %v1355_v62, 1  ;;  %v1426_v23 = vadd.f32 %v1425_v16, %v1424_v53  ;;  %v2889_v8 = vadd.f32 %v1284_v1, %v1240_v50  ;;  %v1150_v58 = vpop.f32.mrf.mxu3 }
 0x113   : > { %v1357_v10 = vadd.f32 %v1356_v7, %v1355_v62  ;;  %v1427_v5 = vrot.slane %v1426_v23, 1  ;;  %1324 = vst [vmem:[%s2814_s12 + $0x18] sm:$0xff] %v2889_v8  ;;  %v1124_v60 = vpop.f32.mrf.mxu2  ;;  %v1242_v18 = vpop.f32.mrf.mxu0 }
 0x114   : > { %v1272_v4 = vadd.f32 %v1124_v60, %v2851_v25  ;;  %v987_v42 = vpop.f32.mrf.mxu1 }
 0x115   : > { %v2894_v43 = vadd.f32 %v1357_v10, %v1344_v9  ;;  %v1428_v14 = vadd.f32 %v1427_v5, %v1426_v23  ;;  %v1277_v15 = vadd.f32 %v987_v42, %v2839_v3 }
 0x116   : > { %1320 = vst [vmem:[%s2814_s12 + $0x90] sm:$0xff] %v1272_v4  ;;  %v1362_v20 = vadd.f32 %v1361_v56, %v1272_v4  ;;  %v1434_v26 = vmul.f32 %v1272_v4, %v1272_v4 }
 0x117   : > { %v2898_v54 = vadd.f32 %v1428_v14, %v1407_v12  ;;  %v1285_v29 = vadd.f32 %v1277_v15, %v1145_v44 }
 0x118   : > { %v1441_v30 = vadd.f32 %v1440_v2, %v1434_v26 }
 0x119   : > { %v2900_v35 = vadd.f32 %v1285_v29, %v1242_v18  ;;  %v1153_v38 = vpop.f32.mrf.mxu3 }
 0x11b   : > { %1325 = vst [vmem:[%s2814_s12 + $0x38] sm:$0xff] %v2900_v35  ;;  %v1126_v25 = vpop.f32.mrf.mxu2  ;;  %v1245_v17 = vpop.f32.mrf.mxu0 }
 0x11c   : > { %v1273_v36 = vadd.f32 %v1126_v25, %v2856_v34  ;;  %v990_v37 = vpop.f32.mrf.mxu1  ;;  %v1373_v25 = vadd.f32 %v2900_v35, %v2889_v8 }
 0x11d   : > { %v1278_v3 = vadd.f32 %v990_v37, %v2846_v21 }
 0x11e   : > { %1321 = vst [vmem:[%s2814_s12 + $0xb0] sm:$0xff] %v1273_v36  ;;  %v1363_v22 = vadd.f32 %v1362_v20, %v1273_v36  ;;  %v1435_v40 = vmul.f32 %v1273_v36, %v1273_v36  ;;  %v1453_v20 = vmul.f32 %v2900_v35, %v2900_v35 }
 0x11f   : > { %v1286_v41 = vadd.f32 %v1278_v3, %v1148_v11 }
 0x120   : > { %v1442_v46 = vadd.f32 %v1441_v30, %v1435_v40  ;;  %v1452_v30 = vmul.f32 %v2889_v8, %v2889_v8 }
 0x121   : > { %v1294_v47 = vadd.f32 %v1286_v41, %v1245_v17  ;;  %v1155_v1 = vpop.f32.mrf.mxu3 }
 0x122   : > { %v1460_v37 = vadd.f32 %v1453_v20, %v1452_v30 }
 0x123   : > { %1326 = vst [vmem:[%s2814_s12 + $0x58] sm:$0xff] %v1294_v47  ;;  %v1129_v48 = vpop.f32.mrf.mxu2  ;;  %v1247_v34 = vpop.f32.mrf.mxu0  ;;  %v1454_v36 = vmul.f32 %v1294_v47, %v1294_v47  ;;  %v1374_v17 = vadd.f32 %v1373_v25, %v1294_v47 }
 0x124   : > { %v1274_v39 = vadd.f32 %v1129_v48, %v2861_v31  ;;  %v992_v13 = vpop.f32.mrf.mxu1 }
 0x125   : > { %v1279_v44 = vadd.f32 %v992_v13, %v2853_v32  ;;  %v1461_v40 = vadd.f32 %v1460_v37, %v1454_v36 }
 0x126   : > { %1322 = vst [vmem:[%s2814_s12 + $0xd0] sm:$0xff] %v1274_v39  ;;  %v1364_v27 = vadd.f32 %v1363_v22, %v1274_v39  ;;  %v1436_v21 = vmul.f32 %v1274_v39, %v1274_v39 }
 0x127   : > { %v1287_v0 = vadd.f32 %v1279_v44, %v1150_v58 }
 0x128   : > { %v1443_v28 = vadd.f32 %v1442_v46, %v1436_v21 }
 0x129   : > { %v1295_v24 = vadd.f32 %v1287_v0, %v1247_v34  ;;  %v1158_v14 = vpop.f32.mrf.mxu3 }
 0x12b   : > { %1327 = vst [vmem:[%s2814_s12 + $0x78] sm:$0xff] %v1295_v24  ;;  %v1131_v61 = vpop.f32.mrf.mxu2  ;;  %v1250_v52 = vpop.f32.mrf.mxu0  ;;  %v1455_v3 = vmul.f32 %v1295_v24, %v1295_v24  ;;  %v1375_v58 = vadd.f32 %v1374_v17, %v1295_v24 }
 0x12c   : > { %v1275_v50 = vadd.f32 %v1131_v61, %v2866_v49  ;;  %v995_v51 = vpop.f32.mrf.mxu1 }
 0x12d   : > { %v1280_v31 = vadd.f32 %v995_v51, %v2858_v45 }
 0x12e   : > { %1323 = vst [vmem:[%s2814_s12 + $0xf0] sm:$0xff] %v1275_v50  ;;  %v1365_v53 = vadd.f32 %v1364_v27, %v1275_v50  ;;  %v1437_v55 = vmul.f32 %v1275_v50, %v1275_v50 }
 0x12f   : > { %v1288_v32 = vadd.f32 %v1280_v31, %v1153_v38 }
 0x130   : > { %v1366_v56 = vrot.slane %v1365_v53, 4  ;;  %v1444_v57 = vadd.f32 %v1443_v28, %v1437_v55 }
 0x131   : > { %v1296_v59 = vadd.f32 %v1288_v32, %v1250_v52  ;;  %v1160_v13 = vpop.f32.mrf.mxu3 }
 0x132   : > { %v1367_v62 = vadd.f32 %v1366_v56, %v1365_v53  ;;  %v1445_v16 = vrot.slane %v1444_v57, 4 }
 0x133   : > { %1328 = vst [vmem:[%s2814_s12 + $0x98] sm:$0xff] %v1296_v59  ;;  %v1252_v45 = vpop.f32.mrf.mxu0  ;;  %v1255_v29 = vpop.f32.mrf.mxu2  ;;  %v1456_v41 = vmul.f32 %v1296_v59, %v1296_v59  ;;  %v1376_v46 = vadd.f32 %v1375_v58, %v1296_v59 }
 0x134   : > { %v1368_v2 = vrot.slane %v1367_v62, 2  ;;  %v1446_v6 = vadd.f32 %v1445_v16, %v1444_v57  ;;  %v997_v7 = vpop.f32.mrf.mxu1 }
 0x135   : > { %v1281_v49 = vadd.f32 %v997_v7, %v2863_v19 }
 0x136   : > { %v1369_v23 = vadd.f32 %v1368_v2, %v1367_v62  ;;  %v1447_v9 = vrot.slane %v1446_v6, 2 }
 0x137   : > { %v1289_v10 = vadd.f32 %v1281_v49, %v1155_v1 }
 0x138   : > { %v1370_v5 = vrot.slane %v1369_v23, 1  ;;  %v1448_v60 = vadd.f32 %v1447_v9, %v1446_v6 }
 0x139   : > { %v1297_v11 = vadd.f32 %v1289_v10, %v1252_v45 }
 0x13a   : > { %v1371_v4 = vadd.f32 %v1370_v5, %v1369_v23  ;;  %v1449_v42 = vrot.slane %v1448_v60, 1 }
 0x13b   : > { %1329 = vst [vmem:[%s2814_s12 + $0xb8] sm:$0xff] %v1297_v11  ;;  %v1457_v48 = vmul.f32 %v1297_v11, %v1297_v11  ;;  %v1377_v8 = vadd.f32 %v1376_v46, %v1297_v11  ;;  %v1257_v27 = vpop.f32.mrf.mxu2 }
 0x13c   : > { %v1372_v18 = vadd.f32 %v1371_v4, %v2894_v43  ;;  %v1450_v12 = vadd.f32 %v1449_v42, %v1448_v60  ;;  %v1000_v15 = vpop.f32.mrf.mxu1 }
 0x13d   : > { %v1282_v19 = vadd.f32 %v1000_v15, %v2868_v33 }
 0x13e   : > { %v1451_v26 = vadd.f32 %v1450_v12, %v2898_v54  ;;  %v1462_v54 = vadd.f32 %v1461_v40, %v1455_v3 }
 0x13f   : > { %v1290_v43 = vadd.f32 %v1282_v19, %v1158_v14 }
 0x140   : > { %v1463_v34 = vadd.f32 %v1462_v54, %v1456_v41 }
 0x141   : > { %v1298_v22 = vadd.f32 %v1290_v43, %v1255_v29 }
 0x142   : > { %v1464_v47 = vadd.f32 %v1463_v34, %v1457_v48 }
 0x143   : > { %1330 = vst [vmem:[%s2814_s12 + $0xd8] sm:$0xff] %v1298_v22  ;;  %v1458_v35 = vmul.f32 %v1298_v22, %v1298_v22  ;;  %v1378_v21 = vadd.f32 %v1377_v8, %v1298_v22 }
 0x144   : > { %v1002_v33 = vpop.f32.mrf.mxu1 }
 0x145   : > { %v1283_v39 = vadd.f32 %v1002_v33, %v2872_v63  ;;  %v1465_v28 = vadd.f32 %v1464_v47, %v1458_v35 }
 0x147   : > { %v1291_v44 = vadd.f32 %v1283_v39, %v1160_v13 }
 0x149   : > { %v1299_v0 = vadd.f32 %v1291_v44, %v1257_v27 }
 0x14b   : > { %1331 = vst [vmem:[%s2814_s12 + $0xf8] sm:$0xff] %v1299_v0  ;;  %v1379_v38 = vadd.f32 %v1378_v21, %v1299_v0  ;;  %v1459_v24 = vmul.f32 %v1299_v0, %v1299_v0 }
 0x14d   : > { %v1380_v61 = vrot.slane %v1379_v38, 4  ;;  %v1466_v50 = vadd.f32 %v1465_v28, %v1459_v24 }
 0x14f   : > { %v1381_v51 = vadd.f32 %v1380_v61, %v1379_v38  ;;  %v1467_v52 = vrot.slane %v1466_v50, 4 }
 0x151   : > { %v1382_v63 = vrot.slane %v1381_v51, 2  ;;  %v1468_v31 = vadd.f32 %v1467_v52, %v1466_v50 }
 0x153   : > { %v1383_v53 = vadd.f32 %v1382_v63, %v1381_v51  ;;  %v1469_v55 = vrot.slane %v1468_v31, 2 }
 0x155   : > { %v1384_v32 = vrot.slane %v1383_v53, 1  ;;  %v1470_v56 = vadd.f32 %v1469_v55, %v1468_v31 }
 0x157   : > { %v1385_v57 = vadd.f32 %v1384_v32, %v1383_v53  ;;  %v1471_v59 = vrot.slane %v1470_v56, 1 }
 0x159   : > { %v1386_v62 = vadd.f32 %v1385_v57, %v1372_v18  ;;  %v1472_v16 = vadd.f32 %v1471_v59, %v1470_v56 }
 0x15b   : > { %v1473_v1 = vadd.f32 %v1472_v16, %v1451_v26  ;;  %1474 = vst [vmem:[%s447_s20] sm:$0x1] %v1386_v62 }
 0x15d   : > { %1475 = vst [vmem:[%s453_s18] sm:$0x1] %v1473_v1 }
 0x15e PF: > { %s21_s15 = sadd.s32 1, %s2127_s15   ;;  %s2960_s13 = smov %s2123_s14 }
 0x15f   : > { %p18_p5 = scmp.ge.s32.totalorder %s21_s15, 4   ;;  %s2961_s14 = smov %s2963_s16 }
 0x161   :  { %20 = sbr.rel (!%p18_p5) target bundleno = 2 (0x2), region = 109 }

</bundles_post_ra>
